<compile_context>
chip_gen: v7x
topology: tpu7x:2x2x1
jax: 0.10.0
libtpu: 0.0.40
codegen_flags: <defaults>
</compile_context>

<pallas_src>
import functools
import math

import jax
import jax.numpy as jnp
import numpy as np
from jax.experimental import pallas as pl
from jax.experimental.pallas import tpu as pltpu

K = 3            # kernel size
STRIDE = 2
PAD = 1
OUT_PAD = 1


def _tpu_generation():
    try:
        kind = jax.devices()[0].device_kind.lower()
    except Exception:
        return 6
    if "7x" in kind or "v7" in kind:
        return 7
    for g in (6, 5, 4, 3, 2):
        if f"v{g}" in kind:
            return g
    return 6


GEN = _tpu_generation()
WIDE = GEN >= 6                       # v6e/v7x: 2x256x256 MXU -> K=256 / N=256 dots
GRID_STEPS = 2 if GEN >= 7 else 1     # 2 TensorCores per chip only on v7x


# ------------------------------- kernels ------------------------------------


def _convt_relu_kernel_wide(x_ref, w_ref, b_ref, o_ref, *, th):
    """v6e/v7x path: 2 MXU-native dots (M, 256) x (256, 256) per grid step.

    x_ref: (H+1, W, 2*C_in)   bf16  -- lanes fold (column shift, ci)
    w_ref: (2, 2*C_in, 4*C_out) bf16 -- slab 0 for rows m, slab 1 for rows m+1;
                                        output lanes fold (row phase, col phase, co)
    b_ref: (1, 1, 2*C_out)    f32   -- bias replicated over the column phase
    o_ref: (TH, 2, W, 2*C_out)      -- axis 1 = output row phase (even / odd)
    """
    r0 = pl.multiple_of(pl.program_id(0) * th, th)
    dn = (((2,), (0,)), ((), ()))            # contract lane axis with rhs dim 0

    x0 = x_ref[pl.ds(r0, th)]                # rows m    (TH, W, 2*C_in)
    x1 = x_ref[pl.ds(r0 + 1, th)]            # rows m+1

    acc = jax.lax.dot_general(x0, w_ref[0], dn, preferred_element_type=jnp.float32)
    acc = acc + jax.lax.dot_general(x1, w_ref[1], dn,
                                    preferred_element_type=jnp.float32)

    b = b_ref[...]
    npw = b.shape[-1]                        # 2*C_out (even/odd split at a 128 boundary)
    o_ref[:, 0] = jnp.maximum(acc[:, :, :npw] + b, 0.0).astype(o_ref.dtype)
    o_ref[:, 1] = jnp.maximum(acc[:, :, npw:] + b, 0.0).astype(o_ref.dtype)


def _convt_relu_kernel_narrow(x_ref, w_ref, b_ref, o_ref, *, th, c_in):
    """v5e path: six 128x128x128 dots per grid step (matches the 4x128x128 MXU).

    x_ref: (H+1, W, 2*C_in)   bf16  -- same concat input; split by free lane slices
    w_ref: (6, C_in, 2*C_out) bf16  -- per-(slab, row-phase) weights, lanes=(pw, c)
    b_ref: (1, 1, 2*C_out)    f32
    o_ref: (TH, 2, W, 2*C_out)
    """
    r0 = pl.multiple_of(pl.program_id(0) * th, th)
    dn = (((2,), (0,)), ((), ()))
    b = b_ref[...]

    x0 = x_ref[pl.ds(r0, th)]
    x00 = x0[:, :, :c_in]                    # x[m, n]    (lane slice at 128 -> free)
    x01 = x0[:, :, c_in:]                    # x[m, n+1]

    # even output rows (oh = 2m): only kh = 1 contributes
    even = jax.lax.dot_general(x00, w_ref[0], dn, preferred_element_type=jnp.float32)
    even = even + jax.lax.dot_general(x01, w_ref[1], dn,
                                      preferred_element_type=jnp.float32)
    o_ref[:, 0] = jnp.maximum(even + b, 0.0).astype(o_ref.dtype)

    x1 = x_ref[pl.ds(r0 + 1, th)]
    x10 = x1[:, :, :c_in]                    # x[m+1, n]
    x11 = x1[:, :, c_in:]                    # x[m+1, n+1]

    # odd output rows (oh = 2m+1): rows m use kh=2, rows m+1 use kh=0
    odd = jax.lax.dot_general(x00, w_ref[2], dn, preferred_element_type=jnp.float32)
    odd = odd + jax.lax.dot_general(x01, w_ref[3], dn,
                                    preferred_element_type=jnp.float32)
    odd = odd + jax.lax.dot_general(x10, w_ref[4], dn,
                                    preferred_element_type=jnp.float32)
    odd = odd + jax.lax.dot_general(x11, w_ref[5], dn,
                                    preferred_element_type=jnp.float32)
    o_ref[:, 1] = jnp.maximum(odd + b, 0.0).astype(o_ref.dtype)


# ----------------------- one-time parameter packing -------------------------


def pack_params(w_t, bias, *, wide=WIDE):
    """Pack ConvTranspose2d params once (hoisted out of the per-call jitted path).

    y[2m+ph, 2n+pw, co] = sum_{r,c in {0,1}} x[m+r, n+c, ci] * w_t[ci, co, KH[r][ph], KW[c][pw]]
    with KH[0]=(1,2), KH[1]=(None,0) (None -> zero block); same table for KW.
    """
    c_in, c_out = w_t.shape[0], w_t.shape[1]
    wk = lambda kh, kw: w_t[:, :, kh, kw]                       # (C_in, C_out)
    z = jnp.zeros((c_in, c_out), w_t.dtype)
    if wide:
        # K axis folds (column shift c, ci); N axis folds (ph, pw, co) -> 4*C_out.
        w_a = jnp.concatenate([                                  # rows m
            jnp.concatenate([wk(1, 1), wk(1, 2), wk(2, 1), wk(2, 2)], axis=1),
            jnp.concatenate([z,        wk(1, 0), z,        wk(2, 0)], axis=1)],
            axis=0)
        w_b = jnp.concatenate([                                  # rows m+1 (odd only)
            jnp.concatenate([z, z, wk(0, 1), wk(0, 2)], axis=1),
            jnp.concatenate([z, z, z,        wk(0, 0)], axis=1)],
            axis=0)
        w_packed = jnp.stack([w_a, w_b]).astype(jnp.bfloat16)    # (2, 2*C_in, 4*C_out)
    else:
        w_packed = jnp.stack([
            jnp.concatenate([wk(1, 1), wk(1, 2)], axis=1),       # x[m,   n  ] -> even
            jnp.concatenate([z,        wk(1, 0)], axis=1),       # x[m,   n+1] -> even
            jnp.concatenate([wk(2, 1), wk(2, 2)], axis=1),       # x[m,   n  ] -> odd
            jnp.concatenate([z,        wk(2, 0)], axis=1),       # x[m,   n+1] -> odd
            jnp.concatenate([wk(0, 1), wk(0, 2)], axis=1),       # x[m+1, n  ] -> odd
            jnp.concatenate([z,        wk(0, 0)], axis=1),       # x[m+1, n+1] -> odd
        ]).astype(jnp.bfloat16)                                  # (6, C_in, 2*C_out)
    b_packed = jnp.concatenate([bias, bias]).reshape(1, 1, 2 * c_out).astype(jnp.float32)
    return jax.device_put(w_packed), jax.device_put(b_packed)


# --------------------------------- forward ----------------------------------


@jax.jit
def conv_transpose_leaky(x_nchw, w_packed, b_packed):
    """x_nchw: (1, C_in, H, W) f32; w_packed/b_packed: from pack_params()."""
    n, c_in, h, w = x_nchw.shape
    assert n == 1
    c_out2 = b_packed.shape[-1]              # 2*C_out (= lane-folded output width)
    c_out = c_out2 // 2
    assert h % GRID_STEPS == 0
    th = h // GRID_STEPS

    # layout glue (plain JAX): cast to bf16 first so transpose/pad move half the bytes
    x_hwc = jnp.transpose(x_nchw[0].astype(jnp.bfloat16), (1, 2, 0))      # (H, W, C_in)
    xp = jnp.pad(x_hwc, ((0, 1), (0, 1), (0, 0)))                         # (H+1, W+1, C_in)
    # single shifted-concat input: lanes fold (column shift, ci)
    x2 = jnp.concatenate([xp[:, :w, :], xp[:, 1:, :]], axis=-1)           # (H+1, W, 2*C_in)

    if WIDE:
        kern = functools.partial(_convt_relu_kernel_wide, th=th)
    else:
        kern = functools.partial(_convt_relu_kernel_narrow, th=th, c_in=c_in)

    out = pl.pallas_call(
        kern,
        out_shape=jax.ShapeDtypeStruct((h, 2, w, c_out2), x_nchw.dtype),
        grid_spec=pltpu.PrefetchScalarGridSpec(
            num_scalar_prefetch=0,
            grid=(GRID_STEPS,),
            in_specs=[
                pl.BlockSpec((h + 1, w, 2 * c_in), lambda i: (0, 0, 0)),
                pl.BlockSpec(w_packed.shape, lambda i: (0, 0, 0)),
                pl.BlockSpec((1, 1, c_out2), lambda i: (0, 0, 0)),
            ],
            out_specs=pl.BlockSpec((th, 2, w, c_out2), lambda i: (i, 0, 0, 0)),
        ),
        compiler_params=pltpu.CompilerParams(dimension_semantics=("parallel",)),
    )(x2, w_packed, b_packed)

    # (H, 2, W, 2*C_out) row-major == (2H, 2W, C_out) row-major -> free reshape.
    y_hwc = out.reshape(2 * h, 2 * w, c_out)
    return jnp.transpose(y_hwc, (2, 0, 1))[None]                          # back to NCHW


# -------------------------------- reference ---------------------------------


def _reference(x_nchw, w_t, bias):
    """Pure-JAX reference (conv_general_dilated expresses the transposed conv)."""
    c_out = w_t.shape[1]
    x_nhwc = jnp.transpose(x_nchw, (0, 2, 3, 1))
    w_hwio = jnp.transpose(w_t, (2, 3, 0, 1))[::-1, ::-1]
    p_lo, p_hi = K - 1 - PAD, K - 1 - PAD + OUT_PAD
    v1 = jax.lax.conv_general_dilated(
        x_nhwc, w_hwio, window_strides=(1, 1),
        padding=((p_lo, p_hi), (p_lo, p_hi)),
        lhs_dilation=(STRIDE, STRIDE),
        dimension_numbers=("NHWC", "HWIO", "NHWC"),
        precision=jax.lax.Precision.HIGHEST,
    ) + bias.reshape(1, 1, 1, c_out)
    v4 = jnp.where(v1 > 0, v1, 0.0)
    out = jnp.where(v4 > 0, v4, 0.01 * v4)
    return jnp.transpose(out, (0, 3, 1, 2))


if __name__ == "__main__":
    # Shapes of the original module: ConvTranspose2d(128 -> 64), input (1, 128, 32, 32).
    C_IN, C_OUT, H, W = 128, 64, 32, 32

    key = jax.random.PRNGKey(0)
    kx, kw, kb = jax.random.split(key, 3)
    x = jax.random.normal(kx, (1, C_IN, H, W), dtype=jnp.float32)

    # deterministic, torch-like uniform init for ConvTranspose2d params
    fan_in = C_IN * K * K
    bound = 1.0 / math.sqrt(fan_in)
    w_t = jax.random.uniform(kw, (C_IN, C_OUT, K, K), jnp.float32, -bound, bound)
    bias = jax.random.uniform(kb, (C_OUT,), jnp.float32, -bound, bound)

    # one-time parameter packing (hoisted out of the per-call jitted path)
    w_packed, b_packed = pack_params(w_t, bias)

    y = jax.block_until_ready(conv_transpose_leaky(x, w_packed, b_packed))

    # Reference on bf16-quantized operands (the kernel feeds bf16 to the MXU with f32
    # accumulation), so the check isolates decomposition/packing correctness.
    xq = x.astype(jnp.bfloat16).astype(jnp.float32)
    wq = w_t.astype(jnp.bfloat16).astype(jnp.float32)
    y_ref = jax.block_until_ready(_reference(xq, wq, bias))

    assert y.shape == (1, C_OUT, 2 * H, 2 * W), y.shape
    np.testing.assert_allclose(np.asarray(y), np.asarray(y_ref), rtol=2e-3, atol=2e-3)
    print("KERNEL_OK")
</pallas_src>

<mosaic_0001>
module attributes {stable_mosaic.version = 11 : i64} {
  func.func @_convt_relu_kernel_wide(%arg0: i32, %arg1: memref<33x32x256xbf16, #tpu.memory_space<vmem>>, %arg2: memref<2x256x256xbf16, #tpu.memory_space<vmem>>, %arg3: memref<1x1x128xf32, #tpu.memory_space<vmem>>, %arg4: memref<32x2x32x128xf32, #tpu.memory_space<vmem>>) attributes {dimension_semantics = [#tpu.dimension_semantics<parallel>], iteration_bounds = array<i64: 1>, scalar_prefetch = 0 : i64, scratch_operands = 0 : i64, tpu.core_type = #tpu.core_type<tc>, window_params = [{pipeline_mode = #tpu.pipeline_mode<synchronous>, transform_indices = @transform_0, window_bounds = array<i64: 33, 32, 256>}, {pipeline_mode = #tpu.pipeline_mode<synchronous>, transform_indices = @transform_1, window_bounds = array<i64: 2, 256, 256>}, {pipeline_mode = #tpu.pipeline_mode<synchronous>, transform_indices = @transform_2, window_bounds = array<i64: 1, 1, 128>}, {transform_indices = @transform_3, window_bounds = array<i64: 32, 2, 32, 128>}]} {
    %c32_i32 = arith.constant 32 : i32
    %0 = arith.muli %arg0, %c32_i32 : i32
    %1 = tpu.assume_multiple %0, 32 : i32
    %2 = arith.index_cast %1 : i32 to index
    %c0 = arith.constant 0 : index
    %c0_0 = arith.constant 0 : index
    %3 = vector.load %arg1[%2, %c0, %c0_0] : memref<33x32x256xbf16, #tpu.memory_space<vmem>>, vector<32x32x256xbf16>
    %c1_i32 = arith.constant 1 : i32
    %4 = arith.addi %1, %c1_i32 : i32
    %5 = arith.index_cast %4 : i32 to index
    %c0_1 = arith.constant 0 : index
    %c0_2 = arith.constant 0 : index
    %6 = vector.load %arg1[%5, %c0_1, %c0_2] : memref<33x32x256xbf16, #tpu.memory_space<vmem>>, vector<32x32x256xbf16>
    %c0_3 = arith.constant 0 : index
    %c0_4 = arith.constant 0 : index
    %c0_5 = arith.constant 0 : index
    %7 = vector.load %arg2[%c0_3, %c0_4, %c0_5] : memref<2x256x256xbf16, #tpu.memory_space<vmem>>, vector<1x256x256xbf16>
    %8 = vector.shape_cast %7 : vector<1x256x256xbf16> to vector<256x256xbf16>
    %cst = arith.constant dense<0.000000e+00> : vector<32x32x256xf32>
    %9 = tpu.matmul %3, %8, %cst {dimension_numbers = #tpu.dot_dimension_numbers<[2], [0], [0, 1], [1], [0, 0, 0, 1, 1, 1], [], []>} : vector<32x32x256xbf16>, vector<256x256xbf16>, vector<32x32x256xf32> -> vector<32x32x256xf32>
    %c1 = arith.constant 1 : index
    %c0_6 = arith.constant 0 : index
    %c0_7 = arith.constant 0 : index
    %10 = vector.load %arg2[%c1, %c0_6, %c0_7] : memref<2x256x256xbf16, #tpu.memory_space<vmem>>, vector<1x256x256xbf16>
    %11 = vector.shape_cast %10 : vector<1x256x256xbf16> to vector<256x256xbf16>
    %cst_8 = arith.constant dense<0.000000e+00> : vector<32x32x256xf32>
    %12 = tpu.matmul %6, %11, %cst_8 {dimension_numbers = #tpu.dot_dimension_numbers<[2], [0], [0, 1], [1], [0, 0, 0, 1, 1, 1], [], []>} : vector<32x32x256xbf16>, vector<256x256xbf16>, vector<32x32x256xf32> -> vector<32x32x256xf32>
    %13 = arith.addf %9, %12 : vector<32x32x256xf32>
    %c0_9 = arith.constant 0 : index
    %c0_10 = arith.constant 0 : index
    %c0_11 = arith.constant 0 : index
    %14 = vector.load %arg3[%c0_9, %c0_10, %c0_11] : memref<1x1x128xf32, #tpu.memory_space<vmem>>, vector<1x1x128xf32>
    %15 = vector.extract_strided_slice %13 {offsets = [0, 0, 0], sizes = [32, 32, 128], strides = [1, 1, 1]} : vector<32x32x256xf32> to vector<32x32x128xf32>
    %16 = vector.broadcast %14 : vector<1x1x128xf32> to vector<32x32x128xf32>
    %17 = arith.addf %15, %16 : vector<32x32x128xf32>
    %cst_12 = arith.constant 0.000000e+00 : f32
    %18 = vector.broadcast %cst_12 : f32 to vector<32x32x128xf32>
    %19 = arith.maximumf %17, %18 : vector<32x32x128xf32>
    %c0_13 = arith.constant 0 : index
    %c0_14 = arith.constant 0 : index
    %c0_15 = arith.constant 0 : index
    %c0_16 = arith.constant 0 : index
    %20 = vector.load %arg4[%c0_13, %c0_14, %c0_15, %c0_16] : memref<32x2x32x128xf32, #tpu.memory_space<vmem>>, vector<32x1x32x128xf32>
    %21 = vector.shape_cast %20 : vector<32x1x32x128xf32> to vector<32x32x128xf32>
    %22 = vector.shape_cast %19 : vector<32x32x128xf32> to vector<32x1x32x128xf32>
    tpu.vector_store %arg4[%c0_13, %c0_14, %c0_15, %c0_16], %22 {strides = array<i32>} : memref<32x2x32x128xf32, #tpu.memory_space<vmem>>, vector<32x1x32x128xf32>,
    %23 = vector.extract_strided_slice %13 {offsets = [0, 0, 128], sizes = [32, 32, 128], strides = [1, 1, 1]} : vector<32x32x256xf32> to vector<32x32x128xf32>
    %24 = vector.broadcast %14 : vector<1x1x128xf32> to vector<32x32x128xf32>
    %25 = arith.addf %23, %24 : vector<32x32x128xf32>
    %cst_17 = arith.constant 0.000000e+00 : f32
    %26 = vector.broadcast %cst_17 : f32 to vector<32x32x128xf32>
    %27 = arith.maximumf %25, %26 : vector<32x32x128xf32>
    %c0_18 = arith.constant 0 : index
    %c1_19 = arith.constant 1 : index
    %c0_20 = arith.constant 0 : index
    %c0_21 = arith.constant 0 : index
    %28 = vector.load %arg4[%c0_18, %c1_19, %c0_20, %c0_21] : memref<32x2x32x128xf32, #tpu.memory_space<vmem>>, vector<32x1x32x128xf32>
    %29 = vector.shape_cast %28 : vector<32x1x32x128xf32> to vector<32x32x128xf32>
    %30 = vector.shape_cast %27 : vector<32x32x128xf32> to vector<32x1x32x128xf32>
    tpu.vector_store %arg4[%c0_18, %c1_19, %c0_20, %c0_21], %30 {strides = array<i32>} : memref<32x2x32x128xf32, #tpu.memory_space<vmem>>, vector<32x1x32x128xf32>,
    return
  }
  func.func @transform_0(%arg0: i32) -> (i32, i32, i32) {
    %c0_i32 = arith.constant 0 : i32
    %c0_i32_0 = arith.constant 0 : i32
    %c0_i32_1 = arith.constant 0 : i32
    %c0_i32_2 = arith.constant 0 : i32
    return %c0_i32, %c0_i32_0, %c0_i32_1 : i32, i32, i32
  }
  func.func @transform_1(%arg0: i32) -> (i32, i32, i32) {
    %c0_i32 = arith.constant 0 : i32
    %c0_i32_0 = arith.constant 0 : i32
    %c0_i32_1 = arith.constant 0 : i32
    %c0_i32_2 = arith.constant 0 : i32
    return %c0_i32, %c0_i32_0, %c0_i32_1 : i32, i32, i32
  }
  func.func @transform_2(%arg0: i32) -> (i32, i32, i32) {
    %c0_i32 = arith.constant 0 : i32
    %c0_i32_0 = arith.constant 0 : i32
    %c0_i32_1 = arith.constant 0 : i32
    %c0_i32_2 = arith.constant 0 : i32
    return %c0_i32, %c0_i32_0, %c0_i32_1 : i32, i32, i32
  }
  func.func @transform_3(%arg0: i32) -> (i32, i32, i32, i32) {
    %c0_i32 = arith.constant 0 : i32
    %c0_i32_0 = arith.constant 0 : i32
    %c0_i32_1 = arith.constant 0 : i32
    %c0_i32_2 = arith.constant 0 : i32
    return %arg0, %c0_i32, %c0_i32_0, %c0_i32_1 : i32, i32, i32, i32
  }
}

</mosaic_0001>

<bundles_post_ra>
// kernel: conv_transpose_leaky.1
= control target key start
LH: loop header
LB: loop body
LE: loop exit
PB: predicated region body
PF: predicated region fallthrough
CT: control target
= control target key end

     0   :  { %s7160_s1 = inlined_call_operand.vmem [shape: bf16[2,256,256], index: 1, kind: input, shape index: {}]   ;;  %s7161_s0 = inlined_call_operand.vmem [shape: bf16[33,32,256], index: 0, kind: input, shape index: {}]   ;;  %s7162_s2 = inlined_call_operand.vmem [shape: f32[1,1,128], index: 2, kind: input, shape index: {}]   ;;  %s7163_s3 = inlined_call_operand.vmem [shape: f32[32,2,32,128], index: 3, kind: output, shape index: {}]  }
   0x1   :  { %v4935_v0 = vld [vmem:[%s7160_s1 + $0x104] ss:$8 sps:$4 sm:$0xff]   ;;  %v4939_v2 = vld [vmem:[%s7160_s1 + $0x100] ss:$8 sps:$4 sm:$0xff]   ;;  %v4941_v4 = vld [vmem:[%s7160_s1 + $0x114] ss:$8 sps:$4 sm:$0xff]  }
   0x2   :  { %v4937_v1 = vld [vmem:[%s7160_s1 + $0x4] ss:$8 sps:$4 sm:$0xff]   ;;  %1143 = vmatprep.subr.bf16.mxu1 %v4935_v0  ;;  %v4940_v3 = vld [vmem:[%s7160_s1] ss:$8 sps:$4 sm:$0xff]   ;;  %v4943_v5 = vld [vmem:[%s7160_s1 + $0x14] ss:$8 sps:$4 sm:$0xff]  }
   0x3   :  { %2616 = vmatprep.subr.bf16.mxu0 %v4937_v1  ;;  %1144 = vmatpush1.bf16.msra.mxu1 %v4939_v2  ;;  %v4945_v6 = vld [vmem:[%s7160_s1 + $0x110] ss:$8 sps:$4 sm:$0xff]   ;;  %v4947_v8 = vld [vmem:[%s7160_s1 + $0x124] ss:$8 sps:$4 sm:$0xff]   ;;  %v4951_v10 = vld [vmem:[%s7160_s1 + $0x120] ss:$8 sps:$4 sm:$0xff]  }
   0x4   :  { %2617 = vmatpush1.bf16.msra.mxu0 %v4940_v3  ;;  %1145 = vmatprep.subr.bf16.mxu1 %v4941_v4  ;;  %v4946_v7 = vld [vmem:[%s7160_s1 + $0x10] ss:$8 sps:$4 sm:$0xff]   ;;  %v4949_v9 = vld [vmem:[%s7160_s1 + $0x24] ss:$8 sps:$4 sm:$0xff]   ;;  %v4952_v11 = vld [vmem:[%s7160_s1 + $0x20] ss:$8 sps:$4 sm:$0xff]  }
   0x5   :  { %2618 = vmatprep.subr.bf16.mxu0 %v4943_v5  ;;  %v4953_v12 = vld [vmem:[%s7160_s1 + $0x134] ss:$8 sps:$4 sm:$0xff]   ;;  %v4957_v14 = vld [vmem:[%s7160_s1 + $0x130] ss:$8 sps:$4 sm:$0xff]   ;;  %v4959_v16 = vld [vmem:[%s7160_s1 + $0x144] ss:$8 sps:$4 sm:$0xff]  }
   0x6   :  { %v4955_v13 = vld [vmem:[%s7160_s1 + $0x34] ss:$8 sps:$4 sm:$0xff]   ;;  %v4958_v15 = vld [vmem:[%s7160_s1 + $0x30] ss:$8 sps:$4 sm:$0xff]   ;;  %v4961_v17 = vld [vmem:[%s7160_s1 + $0x44] ss:$8 sps:$4 sm:$0xff]  }
   0x7   :  { %1146 = vmatpush1.bf16.msra.mxu1 %v4945_v6  ;;  %v4963_v18 = vld [vmem:[%s7160_s1 + $0x140] ss:$8 sps:$4 sm:$0xff]   ;;  %v4965_v20 = vld [vmem:[%s7160_s1 + $0x154] ss:$8 sps:$4 sm:$0xff]   ;;  %v4969_v22 = vld [vmem:[%s7160_s1 + $0x150] ss:$8 sps:$4 sm:$0xff]  }
   0x8   :  { %2619 = vmatpush1.bf16.msra.mxu0 %v4946_v7  ;;  %1147 = vmatprep.subr.bf16.mxu1 %v4947_v8  ;;  %v4964_v19 = vld [vmem:[%s7160_s1 + $0x40] ss:$8 sps:$4 sm:$0xff]   ;;  %v4967_v21 = vld [vmem:[%s7160_s1 + $0x54] ss:$8 sps:$4 sm:$0xff]   ;;  %v4970_v23 = vld [vmem:[%s7160_s1 + $0x50] ss:$8 sps:$4 sm:$0xff]  }
   0x9   :  { %2620 = vmatprep.subr.bf16.mxu0 %v4949_v9  ;;  %v4971_v24 = vld [vmem:[%s7160_s1 + $0x164] ss:$8 sps:$4 sm:$0xff]   ;;  %v4975_v26 = vld [vmem:[%s7160_s1 + $0x160] ss:$8 sps:$4 sm:$0xff]   ;;  %v4977_v28 = vld [vmem:[%s7160_s1 + $0x174] ss:$8 sps:$4 sm:$0xff]  }
   0xa   :  { %v4973_v25 = vld [vmem:[%s7160_s1 + $0x64] ss:$8 sps:$4 sm:$0xff]   ;;  %v4976_v27 = vld [vmem:[%s7160_s1 + $0x60] ss:$8 sps:$4 sm:$0xff]   ;;  %v4979_v29 = vld [vmem:[%s7160_s1 + $0x74] ss:$8 sps:$4 sm:$0xff]  }
   0xb   :  { %1148 = vmatpush1.bf16.msra.mxu1 %v4951_v10  ;;  %v4981_v30 = vld [vmem:[%s7160_s1 + $0x170] ss:$8 sps:$4 sm:$0xff]   ;;  %v4983_v32 = vld [vmem:[%s7160_s1 + $0x184] ss:$8 sps:$4 sm:$0xff]   ;;  %v4987_v34 = vld [vmem:[%s7160_s1 + $0x180] ss:$8 sps:$4 sm:$0xff]  }
   0xc   :  { %2621 = vmatpush1.bf16.msra.mxu0 %v4952_v11  ;;  %1149 = vmatprep.subr.bf16.mxu1 %v4953_v12  ;;  %v4982_v31 = vld [vmem:[%s7160_s1 + $0x70] ss:$8 sps:$4 sm:$0xff]   ;;  %v4985_v33 = vld [vmem:[%s7160_s1 + $0x84] ss:$8 sps:$4 sm:$0xff]   ;;  %v4988_v35 = vld [vmem:[%s7160_s1 + $0x80] ss:$8 sps:$4 sm:$0xff]  }
   0xd   :  { %2622 = vmatprep.subr.bf16.mxu0 %v4955_v13  ;;  %v4989_v36 = vld [vmem:[%s7160_s1 + $0x194] ss:$8 sps:$4 sm:$0xff]   ;;  %v4993_v38 = vld [vmem:[%s7160_s1 + $0x190] ss:$8 sps:$4 sm:$0xff]   ;;  %v4995_v40 = vld [vmem:[%s7160_s1 + $0x1a4] ss:$8 sps:$4 sm:$0xff]  }
   0xe   :  { %v4991_v37 = vld [vmem:[%s7160_s1 + $0x94] ss:$8 sps:$4 sm:$0xff]   ;;  %v4994_v39 = vld [vmem:[%s7160_s1 + $0x90] ss:$8 sps:$4 sm:$0xff]   ;;  %v4997_v41 = vld [vmem:[%s7160_s1 + $0xa4] ss:$8 sps:$4 sm:$0xff]  }
   0xf   :  { %1150 = vmatpush1.bf16.msra.mxu1 %v4957_v14  ;;  %v4999_v42 = vld [vmem:[%s7160_s1 + $0x1a0] ss:$8 sps:$4 sm:$0xff]   ;;  %v5001_v44 = vld [vmem:[%s7160_s1 + $0x1b4] ss:$8 sps:$4 sm:$0xff]   ;;  %v5005_v46 = vld [vmem:[%s7160_s1 + $0x1b0] ss:$8 sps:$4 sm:$0xff]  }
  0x10   :  { %2623 = vmatpush1.bf16.msra.mxu0 %v4958_v15  ;;  %1151 = vmatprep.subr.bf16.mxu1 %v4959_v16  ;;  %v5000_v43 = vld [vmem:[%s7160_s1 + $0xa0] ss:$8 sps:$4 sm:$0xff]   ;;  %v5003_v45 = vld [vmem:[%s7160_s1 + $0xb4] ss:$8 sps:$4 sm:$0xff]   ;;  %v5006_v47 = vld [vmem:[%s7160_s1 + $0xb0] ss:$8 sps:$4 sm:$0xff]  }
  0x11   :  { %2624 = vmatprep.subr.bf16.mxu0 %v4961_v17  ;;  %v5007_v48 = vld [vmem:[%s7160_s1 + $0x1c4] ss:$8 sps:$4 sm:$0xff]   ;;  %v5011_v52 = vld [vmem:[%s7160_s1 + $0x1c0] ss:$8 sps:$4 sm:$0xff]   ;;  %v5013_v54 = vld [vmem:[%s7160_s1 + $0x1d4] ss:$8 sps:$4 sm:$0xff]  }
  0x12   :  { %v5033_v49 = vld [vmem:[%s7161_s0 + $0x24] ss:$8 sps:$4 sm:$0xff]   ;;  %v5012_v53 = vld [vmem:[%s7160_s1 + $0xc0] ss:$8 sps:$4 sm:$0xff]   ;;  %v5015_v55 = vld [vmem:[%s7160_s1 + $0xd4] ss:$8 sps:$4 sm:$0xff]  }
  0x13   :  { %1152 = vmatpush1.bf16.msra.mxu1 %v4963_v18  ;;  %v5009_v50 = vld [vmem:[%s7160_s1 + $0xc4] ss:$8 sps:$4 sm:$0xff]   ;;  %1175 = vmatprep.mubr.bf16.mxu1 %v5033_v49  ;;  %v5017_v56 = vld [vmem:[%s7160_s1 + $0x1d0] ss:$8 sps:$4 sm:$0xff]   ;;  %v5023_v60 = vld [vmem:[%s7160_s1 + $0x1e0] ss:$8 sps:$4 sm:$0xff]  }
  0x14   :  { %2625 = vmatpush1.bf16.msra.mxu0 %v4964_v19  ;;  %1153 = vmatprep.subr.bf16.mxu1 %v4965_v20  ;;  %v5036_v51 = vld [vmem:[%s7161_s0 + $0x4] ss:$8 sps:$4 sm:$0xff]   ;;  %v5018_v57 = vld [vmem:[%s7160_s1 + $0xd0] ss:$8 sps:$4 sm:$0xff]   ;;  %v5024_v61 = vld [vmem:[%s7160_s1 + $0xe0] ss:$8 sps:$4 sm:$0xff]  }
  0x15   :  { %2626 = vmatprep.subr.bf16.mxu0 %v4967_v21  ;;  %2648 = vmatprep.mubr.bf16.mxu0 %v5036_v51  ;;  %v5019_v58 = vld [vmem:[%s7160_s1 + $0x1e4] ss:$8 sps:$4 sm:$0xff]   ;;  %v5025_v62 = vld [vmem:[%s7160_s1 + $0x1f4] ss:$8 sps:$4 sm:$0xff]   ;;  %v5029_v0 = vld [vmem:[%s7160_s1 + $0x1f0] ss:$8 sps:$4 sm:$0xff]  }
  0x16   :  { %v5021_v59 = vld [vmem:[%s7160_s1 + $0xe4] ss:$8 sps:$4 sm:$0xff]   ;;  %v5027_v63 = vld [vmem:[%s7160_s1 + $0xf4] ss:$8 sps:$4 sm:$0xff]   ;;  %v5030_v1 = vld [vmem:[%s7160_s1 + $0xf0] ss:$8 sps:$4 sm:$0xff]  }
  0x17   :  { %1154 = vmatpush1.bf16.msra.mxu1 %v4969_v22  ;;  %v5031_v2 = vld [vmem:[%s7161_s0 + $0x20] ss:$8 sps:$4 sm:$0xff]   ;;  %v5037_v4 = vld [vmem:[%s7161_s0 + $0x34] ss:$8 sps:$4 sm:$0xff]   ;;  %v5041_v6 = vld [vmem:[%s7161_s0 + $0x30] ss:$8 sps:$4 sm:$0xff]  }
  0x18   :  { %2627 = vmatpush1.bf16.msra.mxu0 %v4970_v23  ;;  %1155 = vmatprep.subr.bf16.mxu1 %v4971_v24  ;;  %v5034_v3 = vld [vmem:[%s7161_s0] ss:$8 sps:$4 sm:$0xff]   ;;  %v5039_v5 = vld [vmem:[%s7161_s0 + $0x14] ss:$8 sps:$4 sm:$0xff]   ;;  %v5042_v7 = vld [vmem:[%s7161_s0 + $0x10] ss:$8 sps:$4 sm:$0xff]  }
  0x19   :  { %2628 = vmatprep.subr.bf16.mxu0 %v4973_v25  ;;  %v5043_v8 = vld [vmem:[%s7161_s0 + $0x44] ss:$8 sps:$4 sm:$0xff]   ;;  %v5045_v9 = vld [vmem:[%s7161_s0 + $0x40] ss:$8 sps:$4 sm:$0xff]   ;;  %v5046_v10 = vld [vmem:[%s7161_s0 + $0x54] ss:$8 sps:$4 sm:$0xff]  }
  0x1a   :  { %v5048_v11 = vld [vmem:[%s7161_s0 + $0x50] ss:$8 sps:$4 sm:$0xff]   ;;  %v5049_v12 = vld [vmem:[%s7161_s0 + $0x64] ss:$8 sps:$4 sm:$0xff]   ;;  %v5051_v13 = vld [vmem:[%s7161_s0 + $0x60] ss:$8 sps:$4 sm:$0xff]  }
  0x1b   :  { %1156 = vmatpush1.bf16.msra.mxu1 %v4975_v26  ;;  %v5052_v14 = vld [vmem:[%s7161_s0 + $0x74] ss:$8 sps:$4 sm:$0xff]   ;;  %v5054_v15 = vld [vmem:[%s7161_s0 + $0x70] ss:$8 sps:$4 sm:$0xff]   ;;  %v5055_v16 = vld [vmem:[%s7161_s0 + $0x84] ss:$8 sps:$4 sm:$0xff]  }
  0x1c   :  { %2629 = vmatpush1.bf16.msra.mxu0 %v4976_v27  ;;  %1157 = vmatprep.subr.bf16.mxu1 %v4977_v28  ;;  %v5057_v17 = vld [vmem:[%s7161_s0 + $0x80] ss:$8 sps:$4 sm:$0xff]   ;;  %v5058_v18 = vld [vmem:[%s7161_s0 + $0x94] ss:$8 sps:$4 sm:$0xff]   ;;  %v5060_v19 = vld [vmem:[%s7161_s0 + $0x90] ss:$8 sps:$4 sm:$0xff]  }
  0x1d   :  { %2630 = vmatprep.subr.bf16.mxu0 %v4979_v29  ;;  %v5061_v20 = vld [vmem:[%s7161_s0 + $0xa4] ss:$8 sps:$4 sm:$0xff]   ;;  %v5063_v21 = vld [vmem:[%s7161_s0 + $0xa0] ss:$8 sps:$4 sm:$0xff]   ;;  %v5064_v22 = vld [vmem:[%s7161_s0 + $0xb4] ss:$8 sps:$4 sm:$0xff]  }
  0x1e   :  { %v5066_v23 = vld [vmem:[%s7161_s0 + $0xb0] ss:$8 sps:$4 sm:$0xff]   ;;  %v5067_v24 = vld [vmem:[%s7161_s0 + $0xc4] ss:$8 sps:$4 sm:$0xff]   ;;  %v5069_v25 = vld [vmem:[%s7161_s0 + $0xc0] ss:$8 sps:$4 sm:$0xff]  }
  0x1f   :  { %1158 = vmatpush1.bf16.msra.mxu1 %v4981_v30  ;;  %v5070_v26 = vld [vmem:[%s7161_s0 + $0xd4] ss:$8 sps:$4 sm:$0xff]   ;;  %v5072_v27 = vld [vmem:[%s7161_s0 + $0xd0] ss:$8 sps:$4 sm:$0xff]   ;;  %v5073_v28 = vld [vmem:[%s7161_s0 + $0xe4] ss:$8 sps:$4 sm:$0xff]  }
  0x20   :  { %2631 = vmatpush1.bf16.msra.mxu0 %v4982_v31  ;;  %1159 = vmatprep.subr.bf16.mxu1 %v4983_v32  ;;  %v5075_v29 = vld [vmem:[%s7161_s0 + $0xe0] ss:$8 sps:$4 sm:$0xff]   ;;  %v5076_v30 = vld [vmem:[%s7161_s0 + $0xf4] ss:$8 sps:$4 sm:$0xff]   ;;  %v5078_v31 = vld [vmem:[%s7161_s0 + $0xf0] ss:$8 sps:$4 sm:$0xff]  }
  0x21   :  { %2632 = vmatprep.subr.bf16.mxu0 %v4985_v33  ;;  %v5079_v32 = vld [vmem:[%s7161_s0 + $0x104] ss:$8 sps:$4 sm:$0xff]   ;;  %v5081_v33 = vld [vmem:[%s7161_s0 + $0x100] ss:$8 sps:$4 sm:$0xff]   ;;  %v5108_v51 = vld [vmem:[%s7161_s0 + $0x190] ss:$8 sps:$4 sm:$0xff]  }
  0x23   :  { %1160 = vmatpush1.bf16.msra.mxu1 %v4987_v34  ;;  %v5082_v34 = vld [vmem:[%s7161_s0 + $0x114] ss:$8 sps:$4 sm:$0xff]  }
  0x24   :  { %2633 = vmatpush1.bf16.msra.mxu0 %v4988_v35  ;;  %1161 = vmatprep.subr.bf16.mxu1 %v4989_v36  ;;  %v5084_v35 = vld [vmem:[%s7161_s0 + $0x110] ss:$8 sps:$4 sm:$0xff]   ;;  %v5085_v36 = vld [vmem:[%s7161_s0 + $0x124] ss:$8 sps:$4 sm:$0xff]  }
  0x25   :  { %2634 = vmatprep.subr.bf16.mxu0 %v4991_v37  ;;  %v5087_v37 = vld [vmem:[%s7161_s0 + $0x120] ss:$8 sps:$4 sm:$0xff]  }
  0x27   :  { %1162 = vmatpush1.bf16.msra.mxu1 %v4993_v38  ;;  %v5088_v38 = vld [vmem:[%s7161_s0 + $0x134] ss:$8 sps:$4 sm:$0xff]  }
  0x28   :  { %2635 = vmatpush1.bf16.msra.mxu0 %v4994_v39  ;;  %1163 = vmatprep.subr.bf16.mxu1 %v4995_v40  ;;  %v5090_v39 = vld [vmem:[%s7161_s0 + $0x130] ss:$8 sps:$4 sm:$0xff]   ;;  %v5091_v40 = vld [vmem:[%s7161_s0 + $0x144] ss:$8 sps:$4 sm:$0xff]  }
  0x29   :  { %2636 = vmatprep.subr.bf16.mxu0 %v4997_v41  ;;  %v5093_v41 = vld [vmem:[%s7161_s0 + $0x140] ss:$8 sps:$4 sm:$0xff]  }
  0x2b   :  { %1164 = vmatpush1.bf16.msra.mxu1 %v4999_v42  ;;  %v5094_v42 = vld [vmem:[%s7161_s0 + $0x154] ss:$8 sps:$4 sm:$0xff]  }
  0x2c   :  { %2637 = vmatpush1.bf16.msra.mxu0 %v5000_v43  ;;  %1165 = vmatprep.subr.bf16.mxu1 %v5001_v44  ;;  %v5096_v43 = vld [vmem:[%s7161_s0 + $0x150] ss:$8 sps:$4 sm:$0xff]   ;;  %v5097_v44 = vld [vmem:[%s7161_s0 + $0x164] ss:$8 sps:$4 sm:$0xff]  }
  0x2d   :  { %2638 = vmatprep.subr.bf16.mxu0 %v5003_v45  ;;  %v5099_v45 = vld [vmem:[%s7161_s0 + $0x160] ss:$8 sps:$4 sm:$0xff]  }
  0x2f   :  { %1166 = vmatpush1.bf16.msra.mxu1 %v5005_v46  ;;  %v5100_v46 = vld [vmem:[%s7161_s0 + $0x174] ss:$8 sps:$4 sm:$0xff]  }
  0x30   :  { %2639 = vmatpush1.bf16.msra.mxu0 %v5006_v47  ;;  %1167 = vmatprep.subr.bf16.mxu1 %v5007_v48  ;;  %v5102_v47 = vld [vmem:[%s7161_s0 + $0x170] ss:$8 sps:$4 sm:$0xff]   ;;  %v5103_v48 = vld [vmem:[%s7161_s0 + $0x184] ss:$8 sps:$4 sm:$0xff]  }
  0x31   :  { %2640 = vmatprep.subr.bf16.mxu0 %v5009_v50  ;;  %v5106_v50 = vld [vmem:[%s7161_s0 + $0x194] ss:$8 sps:$4 sm:$0xff]  }
  0x33   :  { %1168 = vmatpush1.bf16.msra.mxu1 %v5011_v52  ;;  %v5109_v52 = vld [vmem:[%s7161_s0 + $0x1a4] ss:$8 sps:$4 sm:$0xff]  }
  0x34   :  { %2641 = vmatpush1.bf16.msra.mxu0 %v5012_v53  ;;  %1169 = vmatprep.subr.bf16.mxu1 %v5013_v54  ;;  %v5111_v53 = vld [vmem:[%s7161_s0 + $0x1a0] ss:$8 sps:$4 sm:$0xff]   ;;  %v5112_v54 = vld [vmem:[%s7161_s0 + $0x1b4] ss:$8 sps:$4 sm:$0xff]  }
  0x35   :  { %2642 = vmatprep.subr.bf16.mxu0 %v5015_v55  ;;  %v5114_v55 = vld [vmem:[%s7161_s0 + $0x1b0] ss:$8 sps:$4 sm:$0xff]  }
  0x37   :  { %1170 = vmatpush1.bf16.msra.mxu1 %v5017_v56  ;;  %v5115_v56 = vld [vmem:[%s7161_s0 + $0x1c4] ss:$8 sps:$4 sm:$0xff]  }
  0x38   :  { %2643 = vmatpush1.bf16.msra.mxu0 %v5018_v57  ;;  %1171 = vmatprep.subr.bf16.mxu1 %v5019_v58  ;;  %v5117_v57 = vld [vmem:[%s7161_s0 + $0x1c0] ss:$8 sps:$4 sm:$0xff]   ;;  %v5118_v58 = vld [vmem:[%s7161_s0 + $0x1d4] ss:$8 sps:$4 sm:$0xff]  }
  0x39   :  { %2644 = vmatprep.subr.bf16.mxu0 %v5021_v59 }
  0x3b   :  { %1172 = vmatpush1.bf16.msra.mxu1 %v5023_v60 }
  0x3c   :  { %2645 = vmatpush1.bf16.msra.mxu0 %v5024_v61  ;;  %1173 = vmatprep.subr.bf16.mxu1 %v5025_v62  ;;  %v5624_v61 = vld [vmem:[%s7162_s2] ss:$0 sm:$0xff] }
  0x3d   :  { %2646 = vmatprep.subr.bf16.mxu0 %v5027_v63 }
  0x3f   :  { %1174 = vmatpush1.bf16.msra.mxu1 %v5029_v0 }
  0x40   :  { %2647 = vmatpush1.bf16.msra.mxu0 %v5030_v1  ;;  %v5629_v1 = vld [vmem:[%s7161_s0 + $0x1d0] ss:$8 sps:$4 sm:$0xff]  }
  0x42   :  { %1176 = vmatmul.mubr.bf16.vlgmr.msra.gmra.mrb[0].mxu1 %v5031_v2 }
  0x43   :  { %2649 = vmatmul.mubr.bf16.vlgmr.msra.gmra.mrb[0].mxu0 %v5034_v3  ;;  %1185 = vmatprep.mubr.bf16.mxu1 %v5037_v4 }
  0x44   :  { %2658 = vmatprep.mubr.bf16.mxu0 %v5039_v5  ;;  %v5634_v5 = vld [vmem:[%s7161_s0 + $0x1e4] ss:$8 sps:$4 sm:$0xff]  }
  0x4a   :  { %1186 = vmatmul.mubr.bf16.gmra.mrb[4].mxu1 %v5041_v6 }
  0x4b   :  { %2659 = vmatmul.mubr.bf16.gmra.mrb[4].mxu0 %v5042_v7  ;;  %1195 = vmatprep.mubr.bf16.mxu1 %v5043_v8 }
  0x4c   :  { %2668 = vmatprep.mubr.bf16.mxu0 %v5033_v49  ;;  %v5105_v49 = vld [vmem:[%s7161_s0 + $0x180] ss:$8 sps:$4 sm:$0xff]  }
  0x52   :  { %1196 = vmatmul.mubr.bf16.gmra.mrb[8].mxu1 %v5045_v9 }
  0x53   :  { %2669 = vmatmul.mubr.bf16.gmra.mrb[8].mxu0 %v5031_v2  ;;  %1205 = vmatprep.mubr.bf16.mxu1 %v5046_v10 }
  0x54   :  { %2678 = vmatprep.mubr.bf16.mxu0 %v5037_v4 }
  0x5a   :  { %1206 = vmatmul.mubr.bf16.gmra.mrb[12].mxu1 %v5048_v11 }
  0x5b   :  { %2679 = vmatmul.mubr.bf16.gmra.mrb[12].mxu0 %v5041_v6  ;;  %1215 = vmatprep.mubr.bf16.mxu1 %v5049_v12 }
  0x5c   :  { %2688 = vmatprep.mubr.bf16.mxu0 %v5043_v8 }
  0x62   :  { %1216 = vmatmul.mubr.bf16.gmra.mrb[16].mxu1 %v5051_v13 }
  0x63   :  { %2689 = vmatmul.mubr.bf16.gmra.mrb[16].mxu0 %v5045_v9  ;;  %1225 = vmatprep.mubr.bf16.mxu1 %v5052_v14 }
  0x64   :  { %2698 = vmatprep.mubr.bf16.mxu0 %v5046_v10 }
  0x6a   :  { %1226 = vmatmul.mubr.bf16.gmra.mrb[20].mxu1 %v5054_v15 }
  0x6b   :  { %2699 = vmatmul.mubr.bf16.gmra.mrb[20].mxu0 %v5048_v11  ;;  %1235 = vmatprep.mubr.bf16.mxu1 %v5055_v16 }
  0x6c   :  { %2708 = vmatprep.mubr.bf16.mxu0 %v5049_v12 }
  0x72   :  { %1236 = vmatmul.mubr.bf16.gmra.mrb[24].mxu1 %v5057_v17 }
  0x73   :  { %2709 = vmatmul.mubr.bf16.gmra.mrb[24].mxu0 %v5051_v13  ;;  %1245 = vmatprep.mubr.bf16.mxu1 %v5058_v18 }
  0x74   :  { %2718 = vmatprep.mubr.bf16.mxu0 %v5052_v14 }
  0x7a   :  { %1246 = vmatmul.mubr.bf16.gmra.mrb[28].mxu1 %v5060_v19 }
  0x7b   :  { %2719 = vmatmul.mubr.bf16.gmra.mrb[28].mxu0 %v5054_v15  ;;  %1255 = vmatprep.mubr.bf16.mxu1 %v5061_v20 }
  0x7c   :  { %2728 = vmatprep.mubr.bf16.mxu0 %v5055_v16 }
  0x82   :  { %1256 = vmatmul.mubr.bf16.gmra.mrb[32].mxu1 %v5063_v21 }
  0x83   :  { %2729 = vmatmul.mubr.bf16.gmra.mrb[32].mxu0 %v5057_v17  ;;  %1265 = vmatprep.mubr.bf16.mxu1 %v5064_v22 }
  0x84   :  { %2738 = vmatprep.mubr.bf16.mxu0 %v5058_v18 }
  0x8a   :  { %1266 = vmatmul.mubr.bf16.gmra.mrb[36].mxu1 %v5066_v23 }
  0x8b   :  { %2739 = vmatmul.mubr.bf16.gmra.mrb[36].mxu0 %v5060_v19  ;;  %1275 = vmatprep.mubr.bf16.mxu1 %v5067_v24 }
  0x8c   :  { %2748 = vmatprep.mubr.bf16.mxu0 %v5061_v20 }
  0x92   :  { %1276 = vmatmul.mubr.bf16.gmra.mrb[40].mxu1 %v5069_v25 }
  0x93   :  { %2749 = vmatmul.mubr.bf16.gmra.mrb[40].mxu0 %v5063_v21  ;;  %1285 = vmatprep.mubr.bf16.mxu1 %v5070_v26 }
  0x94   :  { %2758 = vmatprep.mubr.bf16.mxu0 %v5064_v22 }
  0x9a   :  { %1286 = vmatmul.mubr.bf16.gmra.mrb[44].mxu1 %v5072_v27 }
  0x9b   :  { %2759 = vmatmul.mubr.bf16.gmra.mrb[44].mxu0 %v5066_v23  ;;  %1295 = vmatprep.mubr.bf16.mxu1 %v5073_v28  ;;  %v5654_v23 = vld [vmem:[%s7161_s0 + $0x1e0] ss:$8 sps:$4 sm:$0xff]  }
  0x9c   :  { %2768 = vmatprep.mubr.bf16.mxu0 %v5067_v24 }
  0xa2   :  { %1296 = vmatmul.mubr.bf16.gmra.mrb[48].mxu1 %v5075_v29 }
  0xa3   :  { %2769 = vmatmul.mubr.bf16.gmra.mrb[48].mxu0 %v5069_v25  ;;  %1305 = vmatprep.mubr.bf16.mxu1 %v5076_v30 }
  0xa4   :  { %2778 = vmatprep.mubr.bf16.mxu0 %v5070_v26 }
  0xaa   :  { %1306 = vmatmul.mubr.bf16.gmra.mrb[52].mxu1 %v5078_v31 }
  0xab   :  { %2779 = vmatmul.mubr.bf16.gmra.mrb[52].mxu0 %v5072_v27  ;;  %1315 = vmatprep.mubr.bf16.mxu1 %v5079_v32  ;;  %v5662_v27 = vld [vmem:[%s7161_s0 + $0x1f4] ss:$8 sps:$4 sm:$0xff]  }
  0xac   :  { %2788 = vmatprep.mubr.bf16.mxu0 %v5073_v28 }
  0xb2   :  { %1316 = vmatmul.mubr.bf16.gmra.mrb[56].mxu1 %v5081_v33 }
  0xb3   :  { %2789 = vmatmul.mubr.bf16.gmra.mrb[56].mxu0 %v5075_v29  ;;  %1325 = vmatprep.mubr.bf16.mxu1 %v5082_v34 }
  0xb4   :  { %2798 = vmatprep.mubr.bf16.mxu0 %v5076_v30 }
  0xba   :  { %1326 = vmatmul.mubr.bf16.gmra.mrb[60].mxu1 %v5084_v35 }
  0xbb   :  { %2799 = vmatmul.mubr.bf16.gmra.mrb[60].mxu0 %v5078_v31  ;;  %1335 = vmatprep.mubr.bf16.mxu1 %v5085_v36 }
  0xbc   :  { %2808 = vmatprep.mubr.bf16.mxu0 %v5079_v32 }
  0xc2   :  { %1336 = vmatmul.mubr.bf16.gmra.mrb[64].mxu1 %v5087_v37 }
  0xc3   :  { %2809 = vmatmul.mubr.bf16.gmra.mrb[64].mxu0 %v5081_v33  ;;  %1345 = vmatprep.mubr.bf16.mxu1 %v5088_v38 }
  0xc4   :  { %2818 = vmatprep.mubr.bf16.mxu0 %v5082_v34 }
  0xca   :  { %1346 = vmatmul.mubr.bf16.gmra.mrb[68].mxu1 %v5090_v39 }
  0xcb   :  { %2819 = vmatmul.mubr.bf16.gmra.mrb[68].mxu0 %v5084_v35  ;;  %1355 = vmatprep.mubr.bf16.mxu1 %v5091_v40 }
  0xcc   :  { %2828 = vmatprep.mubr.bf16.mxu0 %v5085_v36 }
  0xd2   :  { %1356 = vmatmul.mubr.bf16.gmra.mrb[72].mxu1 %v5093_v41 }
  0xd3   :  { %2829 = vmatmul.mubr.bf16.gmra.mrb[72].mxu0 %v5087_v37  ;;  %1365 = vmatprep.mubr.bf16.mxu1 %v5094_v42 }
  0xd4   :  { %2838 = vmatprep.mubr.bf16.mxu0 %v5088_v38 }
  0xda   :  { %1366 = vmatmul.mubr.bf16.gmra.mrb[76].mxu1 %v5096_v43 }
  0xdb   :  { %2839 = vmatmul.mubr.bf16.gmra.mrb[76].mxu0 %v5090_v39  ;;  %1375 = vmatprep.mubr.bf16.mxu1 %v5097_v44 }
  0xdc   :  { %2848 = vmatprep.mubr.bf16.mxu0 %v5091_v40 }
  0xe2   :  { %1376 = vmatmul.mubr.bf16.gmra.mrb[80].mxu1 %v5099_v45 }
  0xe3   :  { %2849 = vmatmul.mubr.bf16.gmra.mrb[80].mxu0 %v5093_v41  ;;  %1385 = vmatprep.mubr.bf16.mxu1 %v5100_v46 }
  0xe4   :  { %2858 = vmatprep.mubr.bf16.mxu0 %v5094_v42 }
  0xea   :  { %1386 = vmatmul.mubr.bf16.gmra.mrb[84].mxu1 %v5102_v47 }
  0xeb   :  { %2859 = vmatmul.mubr.bf16.gmra.mrb[84].mxu0 %v5096_v43  ;;  %1395 = vmatprep.mubr.bf16.mxu1 %v5103_v48 }
  0xec   :  { %2868 = vmatprep.mubr.bf16.mxu0 %v5097_v44 }
  0xf2   :  { %1396 = vmatmul.mubr.bf16.gmra.mrb[88].mxu1 %v5105_v49 }
  0xf3   :  { %2869 = vmatmul.mubr.bf16.gmra.mrb[88].mxu0 %v5099_v45  ;;  %1405 = vmatprep.mubr.bf16.mxu1 %v5106_v50  ;;  %v5682_v45 = vld [vmem:[%s7161_s0 + $0x1f0] ss:$8 sps:$4 sm:$0xff]  }
  0xf4   :  { %2878 = vmatprep.mubr.bf16.mxu0 %v5100_v46 }
  0xfa   :  { %1406 = vmatmul.mubr.bf16.gmra.mrb[92].mxu1 %v5108_v51 }
  0xfb   :  { %2879 = vmatmul.mubr.bf16.gmra.mrb[92].mxu0 %v5102_v47  ;;  %1415 = vmatprep.mubr.bf16.mxu1 %v5109_v52 }
  0xfc   :  { %2888 = vmatprep.mubr.bf16.mxu0 %v5103_v48 }
 0x102   :  { %1416 = vmatmul.mubr.bf16.gmra.mrb[96].mxu1 %v5111_v53 }
 0x103   :  { %2889 = vmatmul.mubr.bf16.gmra.mrb[96].mxu0 %v5105_v49  ;;  %1425 = vmatprep.mubr.bf16.mxu1 %v5112_v54  ;;  %v5690_v49 = vld [vmem:[%s7161_s0 + $0x204] ss:$8 sps:$4 sm:$0xff]  }
 0x104   :  { %2898 = vmatprep.mubr.bf16.mxu0 %v5106_v50 }
 0x10a   :  { %1426 = vmatmul.mubr.bf16.gmra.mrb[100].mxu1 %v5114_v55 }
 0x10b   :  { %2899 = vmatmul.mubr.bf16.gmra.mrb[100].mxu0 %v5108_v51  ;;  %1435 = vmatprep.mubr.bf16.mxu1 %v5115_v56 }
 0x10c   :  { %2908 = vmatprep.mubr.bf16.mxu0 %v5109_v52 }
 0x112   :  { %1436 = vmatmul.mubr.bf16.gmra.mrb[104].mxu1 %v5117_v57 }
 0x113   :  { %2909 = vmatmul.mubr.bf16.gmra.mrb[104].mxu0 %v5111_v53  ;;  %1445 = vmatprep.mubr.bf16.mxu1 %v5118_v58 }
 0x114   :  { %2918 = vmatprep.mubr.bf16.mxu0 %v5112_v54 }
 0x115   :  { %v1177_v59 = vpop.f32.mrb[0].mxu1 }
 0x116   :  { %v2650_v60 = vpop.f32.mrb[0].mxu0  ;;  %v1179_v63 = vpop.f32.mrb[1].mxu1 }
 0x117   :  { %v2651_v62 = vadd.f32 %v2650_v60, %v1177_v59  ;;  %v2652_v0 = vpop.f32.mrb[1].mxu0  ;;  %v1181_v3 = vpop.f32.mrb[2].mxu1 }
 0x118   :  { %v2653_v2 = vadd.f32 %v2652_v0, %v1179_v63  ;;  %v2654_v4 = vpop.f32.mrb[2].mxu0  ;;  %v1183_v8 = vpop.f32.mrb[3].mxu1 }
 0x119   :  { %v3296_v6 = vadd.f32 %v5624_v61, %v2651_v62  ;;  %v2655_v7 = vadd.f32 %v2654_v4, %v1181_v3  ;;  %v2656_v9 = vpop.f32.mrb[3].mxu0  ;;  %v5712_v4 = vld [vmem:[%s7161_s0 + $0x200] ss:$8 sps:$4 sm:$0xff]  }
 0x11a   :  { %v3680_v10 = vadd.f32 %v5624_v61, %v2653_v2  ;;  %v2657_v11 = vadd.f32 %v2656_v9, %v1183_v8  ;;  %1446 = vmatmul.mubr.bf16.gmra.mrb[108].mxu1 %v5629_v1  ;;  %v5720_v8 = vld [vmem:[%s7161_s0 + $0x214] ss:$8 sps:$4 sm:$0xff]  }
 0x11b   :  { %v3424_v12 = vmax.f32 %v3296_v6, 0.0  ;;  %v3297_v13 = vadd.f32 %v5624_v61, %v2655_v7  ;;  %2919 = vmatmul.mubr.bf16.gmra.mrb[108].mxu0 %v5114_v55  ;;  %1455 = vmatprep.mubr.bf16.mxu1 %v5634_v5 }
 0x11c   :  { %v3808_v14 = vmax.f32 %v3680_v10, 0.0  ;;  %v3681_v15 = vadd.f32 %v5624_v61, %v2657_v11  ;;  %2928 = vmatprep.mubr.bf16.mxu0 %v5115_v56 }
 0x11d   :  { %3552 = vst [vmem:[%s7163_s3] sm:$0xff] %v3424_v12  ;;  %v3425_v16 = vmax.f32 %v3297_v13, 0.0  ;;  %v1187_v18 = vpop.f32.mrb[4].mxu1 }
 0x11e   :  { %4551 = vst [vmem:[%s7163_s3 + $0x20] sm:$0xff] %v3808_v14  ;;  %v3809_v17 = vmax.f32 %v3681_v15, 0.0  ;;  %v2660_v19 = vpop.f32.mrb[4].mxu0  ;;  %v1189_v21 = vpop.f32.mrb[5].mxu1 }
 0x11f   :  { %3553 = vst [vmem:[%s7163_s3 + $0x8] sm:$0xff] %v3425_v16  ;;  %v2661_v20 = vadd.f32 %v2660_v19, %v1187_v18  ;;  %v2662_v22 = vpop.f32.mrb[5].mxu0  ;;  %v1191_v25 = vpop.f32.mrb[6].mxu1 }
 0x120   :  { %4552 = vst [vmem:[%s7163_s3 + $0x28] sm:$0xff] %v3809_v17  ;;  %v2663_v24 = vadd.f32 %v2662_v22, %v1189_v21  ;;  %v2664_v26 = vpop.f32.mrb[6].mxu0  ;;  %v1193_v30 = vpop.f32.mrb[7].mxu1 }
 0x121   :  { %v3298_v28 = vadd.f32 %v5624_v61, %v2661_v20  ;;  %v2665_v29 = vadd.f32 %v2664_v26, %v1191_v25  ;;  %v2666_v31 = vpop.f32.mrb[7].mxu0  ;;  %v5742_v26 = vld [vmem:[%s7161_s0 + $0x210] ss:$8 sps:$4 sm:$0xff]  }
 0x122   :  { %v3682_v32 = vadd.f32 %v5624_v61, %v2663_v24  ;;  %v2667_v33 = vadd.f32 %v2666_v31, %v1193_v30  ;;  %1456 = vmatmul.mubr.bf16.gmra.mrb[112].mxu1 %v5654_v23  ;;  %v5750_v30 = vld [vmem:[%s7161_s0 + $0x224] ss:$8 sps:$4 sm:$0xff]  }
 0x123   :  { %v3426_v34 = vmax.f32 %v3298_v28, 0.0  ;;  %v3299_v35 = vadd.f32 %v5624_v61, %v2665_v29  ;;  %2929 = vmatmul.mubr.bf16.gmra.mrb[112].mxu0 %v5117_v57  ;;  %1465 = vmatprep.mubr.bf16.mxu1 %v5662_v27 }
 0x124   :  { %v3810_v36 = vmax.f32 %v3682_v32, 0.0  ;;  %v3683_v37 = vadd.f32 %v5624_v61, %v2667_v33  ;;  %2938 = vmatprep.mubr.bf16.mxu0 %v5118_v58 }
 0x125   :  { %3554 = vst [vmem:[%s7163_s3 + $0x10] sm:$0xff] %v3426_v34  ;;  %v3427_v38 = vmax.f32 %v3299_v35, 0.0  ;;  %v1197_v40 = vpop.f32.mrb[8].mxu1 }
 0x126   :  { %4553 = vst [vmem:[%s7163_s3 + $0x30] sm:$0xff] %v3810_v36  ;;  %v3811_v39 = vmax.f32 %v3683_v37, 0.0  ;;  %v2670_v41 = vpop.f32.mrb[8].mxu0  ;;  %v1199_v43 = vpop.f32.mrb[9].mxu1 }
 0x127   :  { %3555 = vst [vmem:[%s7163_s3 + $0x18] sm:$0xff] %v3427_v38  ;;  %v2671_v42 = vadd.f32 %v2670_v41, %v1197_v40  ;;  %v2672_v44 = vpop.f32.mrb[9].mxu0  ;;  %v1201_v47 = vpop.f32.mrb[10].mxu1 }
 0x128   :  { %4554 = vst [vmem:[%s7163_s3 + $0x38] sm:$0xff] %v3811_v39  ;;  %v2673_v46 = vadd.f32 %v2672_v44, %v1199_v43  ;;  %v2674_v48 = vpop.f32.mrb[10].mxu0  ;;  %v1203_v52 = vpop.f32.mrb[11].mxu1 }
 0x129   :  { %v3300_v50 = vadd.f32 %v5624_v61, %v2671_v42  ;;  %v2675_v51 = vadd.f32 %v2674_v48, %v1201_v47  ;;  %v2676_v53 = vpop.f32.mrb[11].mxu0  ;;  %v5772_v48 = vld [vmem:[%s7161_s0 + $0x220] ss:$8 sps:$4 sm:$0xff]  }
 0x12a   :  { %v3684_v54 = vadd.f32 %v5624_v61, %v2673_v46  ;;  %v2677_v55 = vadd.f32 %v2676_v53, %v1203_v52  ;;  %1466 = vmatmul.mubr.bf16.gmra.mrb[116].mxu1 %v5682_v45  ;;  %v5780_v52 = vld [vmem:[%s7161_s0 + $0x234] ss:$8 sps:$4 sm:$0xff]  }
 0x12b   :  { %v3428_v56 = vmax.f32 %v3300_v50, 0.0  ;;  %v3301_v57 = vadd.f32 %v5624_v61, %v2675_v51  ;;  %2939 = vmatmul.mubr.bf16.gmra.mrb[116].mxu0 %v5629_v1  ;;  %1475 = vmatprep.mubr.bf16.mxu1 %v5690_v49 }
 0x12c   :  { %v3812_v58 = vmax.f32 %v3684_v54, 0.0  ;;  %v3685_v59 = vadd.f32 %v5624_v61, %v2677_v55  ;;  %2948 = vmatprep.mubr.bf16.mxu0 %v5634_v5 }
 0x12d   :  { %3556 = vst [vmem:[%s7163_s3 + $0x40] sm:$0xff] %v3428_v56  ;;  %v3429_v60 = vmax.f32 %v3301_v57, 0.0  ;;  %v1207_v63 = vpop.f32.mrb[12].mxu1 }
 0x12e   :  { %4555 = vst [vmem:[%s7163_s3 + $0x60] sm:$0xff] %v3812_v58  ;;  %v3813_v62 = vmax.f32 %v3685_v59, 0.0  ;;  %v2680_v0 = vpop.f32.mrb[12].mxu0  ;;  %v1209_v2 = vpop.f32.mrb[13].mxu1 }
 0x12f   :  { %3557 = vst [vmem:[%s7163_s3 + $0x48] sm:$0xff] %v3429_v60  ;;  %v2681_v1 = vadd.f32 %v2680_v0, %v1207_v63  ;;  %v2682_v3 = vpop.f32.mrb[13].mxu0  ;;  %v1211_v6 = vpop.f32.mrb[14].mxu1 }
 0x130   :  { %4556 = vst [vmem:[%s7163_s3 + $0x68] sm:$0xff] %v3813_v62  ;;  %v2683_v5 = vadd.f32 %v2682_v3, %v1209_v2  ;;  %v2684_v7 = vpop.f32.mrb[14].mxu0  ;;  %v1213_v11 = vpop.f32.mrb[15].mxu1 }
 0x131   :  { %v3302_v9 = vadd.f32 %v5624_v61, %v2681_v1  ;;  %v2685_v10 = vadd.f32 %v2684_v7, %v1211_v6  ;;  %v2686_v12 = vpop.f32.mrb[15].mxu0  ;;  %v5802_v7 = vld [vmem:[%s7161_s0 + $0x230] ss:$8 sps:$4 sm:$0xff]  }
 0x132   :  { %v3686_v13 = vadd.f32 %v5624_v61, %v2683_v5  ;;  %v2687_v14 = vadd.f32 %v2686_v12, %v1213_v11  ;;  %1476 = vmatmul.mubr.bf16.gmra.mrb[120].mxu1 %v5712_v4  ;;  %v5810_v11 = vld [vmem:[%s7161_s0 + $0x244] ss:$8 sps:$4 sm:$0xff]  }
 0x133   :  { %v3430_v15 = vmax.f32 %v3302_v9, 0.0  ;;  %v3303_v16 = vadd.f32 %v5624_v61, %v2685_v10  ;;  %2949 = vmatmul.mubr.bf16.gmra.mrb[120].mxu0 %v5654_v23  ;;  %1485 = vmatprep.mubr.bf16.mxu1 %v5720_v8 }
 0x134   :  { %v3814_v17 = vmax.f32 %v3686_v13, 0.0  ;;  %v3687_v18 = vadd.f32 %v5624_v61, %v2687_v14  ;;  %2958 = vmatprep.mubr.bf16.mxu0 %v5662_v27 }
 0x135   :  { %3558 = vst [vmem:[%s7163_s3 + $0x50] sm:$0xff] %v3430_v15  ;;  %v3431_v19 = vmax.f32 %v3303_v16, 0.0  ;;  %v1217_v21 = vpop.f32.mrb[16].mxu1 }
 0x136   :  { %4557 = vst [vmem:[%s7163_s3 + $0x70] sm:$0xff] %v3814_v17  ;;  %v3815_v20 = vmax.f32 %v3687_v18, 0.0  ;;  %v2690_v22 = vpop.f32.mrb[16].mxu0  ;;  %v1219_v24 = vpop.f32.mrb[17].mxu1 }
 0x137   :  { %3559 = vst [vmem:[%s7163_s3 + $0x58] sm:$0xff] %v3431_v19  ;;  %v2691_v23 = vadd.f32 %v2690_v22, %v1217_v21  ;;  %v2692_v25 = vpop.f32.mrb[17].mxu0  ;;  %v1221_v28 = vpop.f32.mrb[18].mxu1 }
 0x138   :  { %4558 = vst [vmem:[%s7163_s3 + $0x78] sm:$0xff] %v3815_v20  ;;  %v2693_v27 = vadd.f32 %v2692_v25, %v1219_v24  ;;  %v2694_v29 = vpop.f32.mrb[18].mxu0  ;;  %v1223_v33 = vpop.f32.mrb[19].mxu1 }
 0x139   :  { %v3304_v31 = vadd.f32 %v5624_v61, %v2691_v23  ;;  %v2695_v32 = vadd.f32 %v2694_v29, %v1221_v28  ;;  %v2696_v34 = vpop.f32.mrb[19].mxu0  ;;  %v5832_v29 = vld [vmem:[%s7161_s0 + $0x240] ss:$8 sps:$4 sm:$0xff]  }
 0x13a   :  { %v3688_v35 = vadd.f32 %v5624_v61, %v2693_v27  ;;  %v2697_v36 = vadd.f32 %v2696_v34, %v1223_v33  ;;  %1486 = vmatmul.mubr.bf16.gmra.mrb[124].mxu1 %v5742_v26  ;;  %v5840_v33 = vld [vmem:[%s7161_s0 + $0x254] ss:$8 sps:$4 sm:$0xff]  }
 0x13b   :  { %v3432_v37 = vmax.f32 %v3304_v31, 0.0  ;;  %v3305_v38 = vadd.f32 %v5624_v61, %v2695_v32  ;;  %2959 = vmatmul.mubr.bf16.gmra.mrb[124].mxu0 %v5682_v45  ;;  %1495 = vmatprep.mubr.bf16.mxu1 %v5750_v30 }
 0x13c   :  { %v3816_v39 = vmax.f32 %v3688_v35, 0.0  ;;  %v3689_v40 = vadd.f32 %v5624_v61, %v2697_v36  ;;  %2968 = vmatprep.mubr.bf16.mxu0 %v5690_v49 }
 0x13d   :  { %3560 = vst [vmem:[%s7163_s3 + $0x80] sm:$0xff] %v3432_v37  ;;  %v3433_v41 = vmax.f32 %v3305_v38, 0.0  ;;  %v1227_v43 = vpop.f32.mrb[20].mxu1 }
 0x13e   :  { %4559 = vst [vmem:[%s7163_s3 + $0xa0] sm:$0xff] %v3816_v39  ;;  %v3817_v42 = vmax.f32 %v3689_v40, 0.0  ;;  %v2700_v44 = vpop.f32.mrb[20].mxu0  ;;  %v1229_v46 = vpop.f32.mrb[21].mxu1 }
 0x13f   :  { %3561 = vst [vmem:[%s7163_s3 + $0x88] sm:$0xff] %v3433_v41  ;;  %v2701_v45 = vadd.f32 %v2700_v44, %v1227_v43  ;;  %v2702_v47 = vpop.f32.mrb[21].mxu0  ;;  %v1231_v50 = vpop.f32.mrb[22].mxu1 }
 0x140   :  { %4560 = vst [vmem:[%s7163_s3 + $0xa8] sm:$0xff] %v3817_v42  ;;  %v2703_v49 = vadd.f32 %v2702_v47, %v1229_v46  ;;  %v2704_v51 = vpop.f32.mrb[22].mxu0  ;;  %v1233_v55 = vpop.f32.mrb[23].mxu1 }
 0x141   :  { %v3306_v53 = vadd.f32 %v5624_v61, %v2701_v45  ;;  %v2705_v54 = vadd.f32 %v2704_v51, %v1231_v50  ;;  %v2706_v56 = vpop.f32.mrb[23].mxu0  ;;  %v5862_v51 = vld [vmem:[%s7161_s0 + $0x250] ss:$8 sps:$4 sm:$0xff]  }
 0x142   :  { %v3690_v57 = vadd.f32 %v5624_v61, %v2703_v49  ;;  %v2707_v58 = vadd.f32 %v2706_v56, %v1233_v55  ;;  %1496 = vmatmul.mubr.bf16.gmra.mrb[128].mxu1 %v5772_v48  ;;  %v5870_v55 = vld [vmem:[%s7161_s0 + $0x264] ss:$8 sps:$4 sm:$0xff]  }
 0x143   :  { %v3434_v59 = vmax.f32 %v3306_v53, 0.0  ;;  %v3307_v60 = vadd.f32 %v5624_v61, %v2705_v54  ;;  %2969 = vmatmul.mubr.bf16.gmra.mrb[128].mxu0 %v5712_v4  ;;  %1505 = vmatprep.mubr.bf16.mxu1 %v5780_v52 }
 0x144   :  { %v3818_v62 = vmax.f32 %v3690_v57, 0.0  ;;  %v3691_v63 = vadd.f32 %v5624_v61, %v2707_v58  ;;  %2978 = vmatprep.mubr.bf16.mxu0 %v5720_v8 }
 0x145   :  { %3562 = vst [vmem:[%s7163_s3 + $0x90] sm:$0xff] %v3434_v59  ;;  %v3435_v0 = vmax.f32 %v3307_v60, 0.0  ;;  %v1237_v2 = vpop.f32.mrb[24].mxu1 }
 0x146   :  { %4561 = vst [vmem:[%s7163_s3 + $0xb0] sm:$0xff] %v3818_v62  ;;  %v3819_v1 = vmax.f32 %v3691_v63, 0.0  ;;  %v2710_v3 = vpop.f32.mrb[24].mxu0  ;;  %v1239_v5 = vpop.f32.mrb[25].mxu1 }
 0x147   :  { %3563 = vst [vmem:[%s7163_s3 + $0x98] sm:$0xff] %v3435_v0  ;;  %v2711_v4 = vadd.f32 %v2710_v3, %v1237_v2  ;;  %v2712_v6 = vpop.f32.mrb[25].mxu0  ;;  %v1241_v9 = vpop.f32.mrb[26].mxu1 }
 0x148   :  { %4562 = vst [vmem:[%s7163_s3 + $0xb8] sm:$0xff] %v3819_v1  ;;  %v2713_v8 = vadd.f32 %v2712_v6, %v1239_v5  ;;  %v2714_v10 = vpop.f32.mrb[26].mxu0  ;;  %v1243_v14 = vpop.f32.mrb[27].mxu1 }
 0x149   :  { %v3308_v12 = vadd.f32 %v5624_v61, %v2711_v4  ;;  %v2715_v13 = vadd.f32 %v2714_v10, %v1241_v9  ;;  %v2716_v15 = vpop.f32.mrb[27].mxu0  ;;  %v5892_v10 = vld [vmem:[%s7161_s0 + $0x260] ss:$8 sps:$4 sm:$0xff]  }
 0x14a   :  { %v3692_v16 = vadd.f32 %v5624_v61, %v2713_v8  ;;  %v2717_v17 = vadd.f32 %v2716_v15, %v1243_v14  ;;  %1506 = vmatmul.mubr.bf16.gmra.mrb[132].mxu1 %v5802_v7  ;;  %v5900_v14 = vld [vmem:[%s7161_s0 + $0x274] ss:$8 sps:$4 sm:$0xff]  }
 0x14b   :  { %v3436_v18 = vmax.f32 %v3308_v12, 0.0  ;;  %v3309_v19 = vadd.f32 %v5624_v61, %v2715_v13  ;;  %2979 = vmatmul.mubr.bf16.gmra.mrb[132].mxu0 %v5742_v26  ;;  %1515 = vmatprep.mubr.bf16.mxu1 %v5810_v11 }
 0x14c   :  { %v3820_v20 = vmax.f32 %v3692_v16, 0.0  ;;  %v3693_v21 = vadd.f32 %v5624_v61, %v2717_v17  ;;  %2988 = vmatprep.mubr.bf16.mxu0 %v5750_v30 }
 0x14d   :  { %3564 = vst [vmem:[%s7163_s3 + $0xc0] sm:$0xff] %v3436_v18  ;;  %v3437_v22 = vmax.f32 %v3309_v19, 0.0  ;;  %v1247_v24 = vpop.f32.mrb[28].mxu1 }
 0x14e   :  { %4563 = vst [vmem:[%s7163_s3 + $0xe0] sm:$0xff] %v3820_v20  ;;  %v3821_v23 = vmax.f32 %v3693_v21, 0.0  ;;  %v2720_v25 = vpop.f32.mrb[28].mxu0  ;;  %v1249_v27 = vpop.f32.mrb[29].mxu1 }
 0x14f   :  { %3565 = vst [vmem:[%s7163_s3 + $0xc8] sm:$0xff] %v3437_v22  ;;  %v2721_v26 = vadd.f32 %v2720_v25, %v1247_v24  ;;  %v2722_v28 = vpop.f32.mrb[29].mxu0  ;;  %v1251_v31 = vpop.f32.mrb[30].mxu1 }
 0x150   :  { %4564 = vst [vmem:[%s7163_s3 + $0xe8] sm:$0xff] %v3821_v23  ;;  %v2723_v30 = vadd.f32 %v2722_v28, %v1249_v27  ;;  %v2724_v32 = vpop.f32.mrb[30].mxu0  ;;  %v1253_v36 = vpop.f32.mrb[31].mxu1 }
 0x151   :  { %v3310_v34 = vadd.f32 %v5624_v61, %v2721_v26  ;;  %v2725_v35 = vadd.f32 %v2724_v32, %v1251_v31  ;;  %v2726_v37 = vpop.f32.mrb[31].mxu0  ;;  %v5922_v32 = vld [vmem:[%s7161_s0 + $0x270] ss:$8 sps:$4 sm:$0xff]  }
 0x152   :  { %v3694_v38 = vadd.f32 %v5624_v61, %v2723_v30  ;;  %v2727_v39 = vadd.f32 %v2726_v37, %v1253_v36  ;;  %1516 = vmatmul.mubr.bf16.gmra.mrb[136].mxu1 %v5832_v29  ;;  %v5930_v36 = vld [vmem:[%s7161_s0 + $0x284] ss:$8 sps:$4 sm:$0xff]  }
 0x153   :  { %v3438_v40 = vmax.f32 %v3310_v34, 0.0  ;;  %v3311_v41 = vadd.f32 %v5624_v61, %v2725_v35  ;;  %2989 = vmatmul.mubr.bf16.gmra.mrb[136].mxu0 %v5772_v48  ;;  %1525 = vmatprep.mubr.bf16.mxu1 %v5840_v33 }
 0x154   :  { %v3822_v42 = vmax.f32 %v3694_v38, 0.0  ;;  %v3695_v43 = vadd.f32 %v5624_v61, %v2727_v39  ;;  %2998 = vmatprep.mubr.bf16.mxu0 %v5780_v52 }
 0x155   :  { %3566 = vst [vmem:[%s7163_s3 + $0xd0] sm:$0xff] %v3438_v40  ;;  %v3439_v44 = vmax.f32 %v3311_v41, 0.0  ;;  %v1257_v46 = vpop.f32.mrb[32].mxu1 }
 0x156   :  { %4565 = vst [vmem:[%s7163_s3 + $0xf0] sm:$0xff] %v3822_v42  ;;  %v3823_v45 = vmax.f32 %v3695_v43, 0.0  ;;  %v2730_v47 = vpop.f32.mrb[32].mxu0  ;;  %v1259_v49 = vpop.f32.mrb[33].mxu1 }
 0x157   :  { %3567 = vst [vmem:[%s7163_s3 + $0xd8] sm:$0xff] %v3439_v44  ;;  %v2731_v48 = vadd.f32 %v2730_v47, %v1257_v46  ;;  %v2732_v50 = vpop.f32.mrb[33].mxu0  ;;  %v1261_v53 = vpop.f32.mrb[34].mxu1 }
 0x158   :  { %4566 = vst [vmem:[%s7163_s3 + $0xf8] sm:$0xff] %v3823_v45  ;;  %v2733_v52 = vadd.f32 %v2732_v50, %v1259_v49  ;;  %v2734_v54 = vpop.f32.mrb[34].mxu0  ;;  %v1263_v58 = vpop.f32.mrb[35].mxu1 }
 0x159   :  { %v3312_v56 = vadd.f32 %v5624_v61, %v2731_v48  ;;  %v2735_v57 = vadd.f32 %v2734_v54, %v1261_v53  ;;  %v2736_v59 = vpop.f32.mrb[35].mxu0  ;;  %v5952_v54 = vld [vmem:[%s7161_s0 + $0x280] ss:$8 sps:$4 sm:$0xff]  }
 0x15a   :  { %v3696_v60 = vadd.f32 %v5624_v61, %v2733_v52  ;;  %v2737_v62 = vadd.f32 %v2736_v59, %v1263_v58  ;;  %1526 = vmatmul.mubr.bf16.gmra.mrb[140].mxu1 %v5862_v51  ;;  %v5960_v58 = vld [vmem:[%s7161_s0 + $0x294] ss:$8 sps:$4 sm:$0xff]  }
 0x15b   :  { %v3440_v63 = vmax.f32 %v3312_v56, 0.0  ;;  %v3313_v0 = vadd.f32 %v5624_v61, %v2735_v57  ;;  %2999 = vmatmul.mubr.bf16.gmra.mrb[140].mxu0 %v5802_v7  ;;  %1535 = vmatprep.mubr.bf16.mxu1 %v5870_v55 }
 0x15c   :  { %v3824_v1 = vmax.f32 %v3696_v60, 0.0  ;;  %v3697_v2 = vadd.f32 %v5624_v61, %v2737_v62  ;;  %3008 = vmatprep.mubr.bf16.mxu0 %v5810_v11 }
 0x15d   :  { %3568 = vst [vmem:[%s7163_s3 + $0x100] sm:$0xff] %v3440_v63  ;;  %v3441_v3 = vmax.f32 %v3313_v0, 0.0  ;;  %v1267_v5 = vpop.f32.mrb[36].mxu1 }
 0x15e   :  { %4567 = vst [vmem:[%s7163_s3 + $0x120] sm:$0xff] %v3824_v1  ;;  %v3825_v4 = vmax.f32 %v3697_v2, 0.0  ;;  %v2740_v6 = vpop.f32.mrb[36].mxu0  ;;  %v1269_v8 = vpop.f32.mrb[37].mxu1 }
 0x15f   :  { %3569 = vst [vmem:[%s7163_s3 + $0x108] sm:$0xff] %v3441_v3  ;;  %v2741_v7 = vadd.f32 %v2740_v6, %v1267_v5  ;;  %v2742_v9 = vpop.f32.mrb[37].mxu0  ;;  %v1271_v12 = vpop.f32.mrb[38].mxu1 }
 0x160   :  { %4568 = vst [vmem:[%s7163_s3 + $0x128] sm:$0xff] %v3825_v4  ;;  %v2743_v11 = vadd.f32 %v2742_v9, %v1269_v8  ;;  %v2744_v13 = vpop.f32.mrb[38].mxu0  ;;  %v1273_v17 = vpop.f32.mrb[39].mxu1 }
 0x161   :  { %v3314_v15 = vadd.f32 %v5624_v61, %v2741_v7  ;;  %v2745_v16 = vadd.f32 %v2744_v13, %v1271_v12  ;;  %v2746_v18 = vpop.f32.mrb[39].mxu0  ;;  %v5982_v13 = vld [vmem:[%s7161_s0 + $0x290] ss:$8 sps:$4 sm:$0xff]  }
 0x162   :  { %v3698_v19 = vadd.f32 %v5624_v61, %v2743_v11  ;;  %v2747_v20 = vadd.f32 %v2746_v18, %v1273_v17  ;;  %1536 = vmatmul.mubr.bf16.gmra.mrb[144].mxu1 %v5892_v10  ;;  %v5990_v17 = vld [vmem:[%s7161_s0 + $0x2a4] ss:$8 sps:$4 sm:$0xff]  }
 0x163   :  { %v3442_v21 = vmax.f32 %v3314_v15, 0.0  ;;  %v3315_v22 = vadd.f32 %v5624_v61, %v2745_v16  ;;  %3009 = vmatmul.mubr.bf16.gmra.mrb[144].mxu0 %v5832_v29  ;;  %1545 = vmatprep.mubr.bf16.mxu1 %v5900_v14 }
 0x164   :  { %v3826_v23 = vmax.f32 %v3698_v19, 0.0  ;;  %v3699_v24 = vadd.f32 %v5624_v61, %v2747_v20  ;;  %3018 = vmatprep.mubr.bf16.mxu0 %v5840_v33 }
 0x165   :  { %3570 = vst [vmem:[%s7163_s3 + $0x110] sm:$0xff] %v3442_v21  ;;  %v3443_v25 = vmax.f32 %v3315_v22, 0.0  ;;  %v1277_v27 = vpop.f32.mrb[40].mxu1 }
 0x166   :  { %4569 = vst [vmem:[%s7163_s3 + $0x130] sm:$0xff] %v3826_v23  ;;  %v3827_v26 = vmax.f32 %v3699_v24, 0.0  ;;  %v2750_v28 = vpop.f32.mrb[40].mxu0  ;;  %v1279_v30 = vpop.f32.mrb[41].mxu1 }
 0x167   :  { %3571 = vst [vmem:[%s7163_s3 + $0x118] sm:$0xff] %v3443_v25  ;;  %v2751_v29 = vadd.f32 %v2750_v28, %v1277_v27  ;;  %v2752_v31 = vpop.f32.mrb[41].mxu0  ;;  %v1281_v34 = vpop.f32.mrb[42].mxu1 }
 0x168   :  { %4570 = vst [vmem:[%s7163_s3 + $0x138] sm:$0xff] %v3827_v26  ;;  %v2753_v33 = vadd.f32 %v2752_v31, %v1279_v30  ;;  %v2754_v35 = vpop.f32.mrb[42].mxu0  ;;  %v1283_v39 = vpop.f32.mrb[43].mxu1 }
 0x169   :  { %v3316_v37 = vadd.f32 %v5624_v61, %v2751_v29  ;;  %v2755_v38 = vadd.f32 %v2754_v35, %v1281_v34  ;;  %v2756_v40 = vpop.f32.mrb[43].mxu0  ;;  %v6012_v35 = vld [vmem:[%s7161_s0 + $0x2a0] ss:$8 sps:$4 sm:$0xff]  }
 0x16a   :  { %v3700_v41 = vadd.f32 %v5624_v61, %v2753_v33  ;;  %v2757_v42 = vadd.f32 %v2756_v40, %v1283_v39  ;;  %1546 = vmatmul.mubr.bf16.gmra.mrb[148].mxu1 %v5922_v32  ;;  %v6020_v39 = vld [vmem:[%s7161_s0 + $0x2b4] ss:$8 sps:$4 sm:$0xff]  }
 0x16b   :  { %v3444_v43 = vmax.f32 %v3316_v37, 0.0  ;;  %v3317_v44 = vadd.f32 %v5624_v61, %v2755_v38  ;;  %3019 = vmatmul.mubr.bf16.gmra.mrb[148].mxu0 %v5862_v51  ;;  %1555 = vmatprep.mubr.bf16.mxu1 %v5930_v36 }
 0x16c   :  { %v3828_v45 = vmax.f32 %v3700_v41, 0.0  ;;  %v3701_v46 = vadd.f32 %v5624_v61, %v2757_v42  ;;  %3028 = vmatprep.mubr.bf16.mxu0 %v5870_v55 }
 0x16d   :  { %3572 = vst [vmem:[%s7163_s3 + $0x140] sm:$0xff] %v3444_v43  ;;  %v3445_v47 = vmax.f32 %v3317_v44, 0.0  ;;  %v1287_v49 = vpop.f32.mrb[44].mxu1 }
 0x16e   :  { %4571 = vst [vmem:[%s7163_s3 + $0x160] sm:$0xff] %v3828_v45  ;;  %v3829_v48 = vmax.f32 %v3701_v46, 0.0  ;;  %v2760_v50 = vpop.f32.mrb[44].mxu0  ;;  %v1289_v52 = vpop.f32.mrb[45].mxu1 }
 0x16f   :  { %3573 = vst [vmem:[%s7163_s3 + $0x148] sm:$0xff] %v3445_v47  ;;  %v2761_v51 = vadd.f32 %v2760_v50, %v1287_v49  ;;  %v2762_v53 = vpop.f32.mrb[45].mxu0  ;;  %v1291_v56 = vpop.f32.mrb[46].mxu1 }
 0x170   :  { %4572 = vst [vmem:[%s7163_s3 + $0x168] sm:$0xff] %v3829_v48  ;;  %v2763_v55 = vadd.f32 %v2762_v53, %v1289_v52  ;;  %v2764_v57 = vpop.f32.mrb[46].mxu0  ;;  %v1293_v62 = vpop.f32.mrb[47].mxu1 }
 0x171   :  { %v3318_v59 = vadd.f32 %v5624_v61, %v2761_v51  ;;  %v2765_v60 = vadd.f32 %v2764_v57, %v1291_v56  ;;  %v2766_v63 = vpop.f32.mrb[47].mxu0  ;;  %v6042_v57 = vld [vmem:[%s7161_s0 + $0x2b0] ss:$8 sps:$4 sm:$0xff]  }
 0x172   :  { %v3702_v0 = vadd.f32 %v5624_v61, %v2763_v55  ;;  %v2767_v1 = vadd.f32 %v2766_v63, %v1293_v62  ;;  %1556 = vmatmul.mubr.bf16.gmra.mrb[152].mxu1 %v5952_v54  ;;  %v6050_v62 = vld [vmem:[%s7161_s0 + $0x2c4] ss:$8 sps:$4 sm:$0xff]  }
 0x173   :  { %v3446_v2 = vmax.f32 %v3318_v59, 0.0  ;;  %v3319_v3 = vadd.f32 %v5624_v61, %v2765_v60  ;;  %3029 = vmatmul.mubr.bf16.gmra.mrb[152].mxu0 %v5892_v10  ;;  %1565 = vmatprep.mubr.bf16.mxu1 %v5960_v58 }
 0x174   :  { %v3830_v4 = vmax.f32 %v3702_v0, 0.0  ;;  %v3703_v5 = vadd.f32 %v5624_v61, %v2767_v1  ;;  %3038 = vmatprep.mubr.bf16.mxu0 %v5900_v14 }
 0x175   :  { %3574 = vst [vmem:[%s7163_s3 + $0x150] sm:$0xff] %v3446_v2  ;;  %v3447_v6 = vmax.f32 %v3319_v3, 0.0  ;;  %v1297_v8 = vpop.f32.mrb[48].mxu1 }
 0x176   :  { %4573 = vst [vmem:[%s7163_s3 + $0x170] sm:$0xff] %v3830_v4  ;;  %v3831_v7 = vmax.f32 %v3703_v5, 0.0  ;;  %v2770_v9 = vpop.f32.mrb[48].mxu0  ;;  %v1299_v11 = vpop.f32.mrb[49].mxu1 }
 0x177   :  { %3575 = vst [vmem:[%s7163_s3 + $0x158] sm:$0xff] %v3447_v6  ;;  %v2771_v10 = vadd.f32 %v2770_v9, %v1297_v8  ;;  %v2772_v12 = vpop.f32.mrb[49].mxu0  ;;  %v1301_v15 = vpop.f32.mrb[50].mxu1 }
 0x178   :  { %4574 = vst [vmem:[%s7163_s3 + $0x178] sm:$0xff] %v3831_v7  ;;  %v2773_v14 = vadd.f32 %v2772_v12, %v1299_v11  ;;  %v2774_v16 = vpop.f32.mrb[50].mxu0  ;;  %v1303_v20 = vpop.f32.mrb[51].mxu1 }
 0x179   :  { %v3320_v18 = vadd.f32 %v5624_v61, %v2771_v10  ;;  %v2775_v19 = vadd.f32 %v2774_v16, %v1301_v15  ;;  %v2776_v21 = vpop.f32.mrb[51].mxu0  ;;  %v6072_v16 = vld [vmem:[%s7161_s0 + $0x2c0] ss:$8 sps:$4 sm:$0xff]  }
 0x17a   :  { %v3704_v22 = vadd.f32 %v5624_v61, %v2773_v14  ;;  %v2777_v23 = vadd.f32 %v2776_v21, %v1303_v20  ;;  %1566 = vmatmul.mubr.bf16.gmra.mrb[156].mxu1 %v5982_v13  ;;  %v6080_v20 = vld [vmem:[%s7161_s0 + $0x2d4] ss:$8 sps:$4 sm:$0xff]  }
 0x17b   :  { %v3448_v24 = vmax.f32 %v3320_v18, 0.0  ;;  %v3321_v25 = vadd.f32 %v5624_v61, %v2775_v19  ;;  %3039 = vmatmul.mubr.bf16.gmra.mrb[156].mxu0 %v5922_v32  ;;  %1575 = vmatprep.mubr.bf16.mxu1 %v5990_v17 }
 0x17c   :  { %v3832_v26 = vmax.f32 %v3704_v22, 0.0  ;;  %v3705_v27 = vadd.f32 %v5624_v61, %v2777_v23  ;;  %3048 = vmatprep.mubr.bf16.mxu0 %v5930_v36 }
 0x17d   :  { %3576 = vst [vmem:[%s7163_s3 + $0x180] sm:$0xff] %v3448_v24  ;;  %v3449_v28 = vmax.f32 %v3321_v25, 0.0  ;;  %v1307_v30 = vpop.f32.mrb[52].mxu1 }
 0x17e   :  { %4575 = vst [vmem:[%s7163_s3 + $0x1a0] sm:$0xff] %v3832_v26  ;;  %v3833_v29 = vmax.f32 %v3705_v27, 0.0  ;;  %v2780_v31 = vpop.f32.mrb[52].mxu0  ;;  %v1309_v33 = vpop.f32.mrb[53].mxu1 }
 0x17f   :  { %3577 = vst [vmem:[%s7163_s3 + $0x188] sm:$0xff] %v3449_v28  ;;  %v2781_v32 = vadd.f32 %v2780_v31, %v1307_v30  ;;  %v2782_v34 = vpop.f32.mrb[53].mxu0  ;;  %v1311_v37 = vpop.f32.mrb[54].mxu1 }
 0x180   :  { %4576 = vst [vmem:[%s7163_s3 + $0x1a8] sm:$0xff] %v3833_v29  ;;  %v2783_v36 = vadd.f32 %v2782_v34, %v1309_v33  ;;  %v2784_v38 = vpop.f32.mrb[54].mxu0  ;;  %v1313_v42 = vpop.f32.mrb[55].mxu1 }
 0x181   :  { %v3322_v40 = vadd.f32 %v5624_v61, %v2781_v32  ;;  %v2785_v41 = vadd.f32 %v2784_v38, %v1311_v37  ;;  %v2786_v43 = vpop.f32.mrb[55].mxu0  ;;  %v6102_v38 = vld [vmem:[%s7161_s0 + $0x2d0] ss:$8 sps:$4 sm:$0xff]  }
 0x182   :  { %v3706_v44 = vadd.f32 %v5624_v61, %v2783_v36  ;;  %v2787_v45 = vadd.f32 %v2786_v43, %v1313_v42  ;;  %1576 = vmatmul.mubr.bf16.gmra.mrb[160].mxu1 %v6012_v35  ;;  %v6110_v42 = vld [vmem:[%s7161_s0 + $0x2e4] ss:$8 sps:$4 sm:$0xff]  }
 0x183   :  { %v3450_v46 = vmax.f32 %v3322_v40, 0.0  ;;  %v3323_v47 = vadd.f32 %v5624_v61, %v2785_v41  ;;  %3049 = vmatmul.mubr.bf16.gmra.mrb[160].mxu0 %v5952_v54  ;;  %1585 = vmatprep.mubr.bf16.mxu1 %v6020_v39 }
 0x184   :  { %v3834_v48 = vmax.f32 %v3706_v44, 0.0  ;;  %v3707_v49 = vadd.f32 %v5624_v61, %v2787_v45  ;;  %3058 = vmatprep.mubr.bf16.mxu0 %v5960_v58 }
 0x185   :  { %3578 = vst [vmem:[%s7163_s3 + $0x190] sm:$0xff] %v3450_v46  ;;  %v3451_v50 = vmax.f32 %v3323_v47, 0.0  ;;  %v1317_v52 = vpop.f32.mrb[56].mxu1 }
 0x186   :  { %4577 = vst [vmem:[%s7163_s3 + $0x1b0] sm:$0xff] %v3834_v48  ;;  %v3835_v51 = vmax.f32 %v3707_v49, 0.0  ;;  %v2790_v53 = vpop.f32.mrb[56].mxu0  ;;  %v1319_v55 = vpop.f32.mrb[57].mxu1 }
 0x187   :  { %3579 = vst [vmem:[%s7163_s3 + $0x198] sm:$0xff] %v3451_v50  ;;  %v2791_v54 = vadd.f32 %v2790_v53, %v1317_v52  ;;  %v2792_v56 = vpop.f32.mrb[57].mxu0  ;;  %v1321_v59 = vpop.f32.mrb[58].mxu1 }
 0x188   :  { %4578 = vst [vmem:[%s7163_s3 + $0x1b8] sm:$0xff] %v3835_v51  ;;  %v2793_v58 = vadd.f32 %v2792_v56, %v1319_v55  ;;  %v2794_v60 = vpop.f32.mrb[58].mxu0  ;;  %v1323_v1 = vpop.f32.mrb[59].mxu1 }
 0x189   :  { %v3324_v63 = vadd.f32 %v5624_v61, %v2791_v54  ;;  %v2795_v0 = vadd.f32 %v2794_v60, %v1321_v59  ;;  %v2796_v2 = vpop.f32.mrb[59].mxu0  ;;  %v6132_v59 = vld [vmem:[%s7161_s0 + $0x2e0] ss:$8 sps:$4 sm:$0xff]  }
 0x18a   :  { %v3708_v3 = vadd.f32 %v5624_v61, %v2793_v58  ;;  %v2797_v4 = vadd.f32 %v2796_v2, %v1323_v1  ;;  %1586 = vmatmul.mubr.bf16.gmra.mrb[164].mxu1 %v6042_v57  ;;  %v6145_v1 = vld [vmem:[%s7162_s2] ss:$0 sm:$0xff] }
 0x18b   :  { %v3452_v5 = vmax.f32 %v3324_v63, 0.0  ;;  %v3325_v6 = vadd.f32 %v5624_v61, %v2795_v0  ;;  %3059 = vmatmul.mubr.bf16.gmra.mrb[164].mxu0 %v5982_v13  ;;  %1595 = vmatprep.mubr.bf16.mxu1 %v6050_v62  ;;  %v6140_v0 = vld [vmem:[%s7161_s0 + $0x2f4] ss:$8 sps:$4 sm:$0xff]  }
 0x18c   :  { %v3836_v7 = vmax.f32 %v3708_v3, 0.0  ;;  %v3709_v8 = vadd.f32 %v5624_v61, %v2797_v4  ;;  %3068 = vmatprep.mubr.bf16.mxu0 %v5990_v17 }
 0x18d   :  { %3580 = vst [vmem:[%s7163_s3 + $0x1c0] sm:$0xff] %v3452_v5  ;;  %v3453_v9 = vmax.f32 %v3325_v6, 0.0  ;;  %v1327_v11 = vpop.f32.mrb[60].mxu1 }
 0x18e   :  { %4579 = vst [vmem:[%s7163_s3 + $0x1e0] sm:$0xff] %v3836_v7  ;;  %v3837_v10 = vmax.f32 %v3709_v8, 0.0  ;;  %v2800_v12 = vpop.f32.mrb[60].mxu0  ;;  %v1329_v14 = vpop.f32.mrb[61].mxu1 }
 0x18f   :  { %3581 = vst [vmem:[%s7163_s3 + $0x1c8] sm:$0xff] %v3453_v9  ;;  %v2801_v13 = vadd.f32 %v2800_v12, %v1327_v11  ;;  %v2802_v15 = vpop.f32.mrb[61].mxu0  ;;  %v1331_v18 = vpop.f32.mrb[62].mxu1 }
 0x190   :  { %4580 = vst [vmem:[%s7163_s3 + $0x1e8] sm:$0xff] %v3837_v10  ;;  %v2803_v17 = vadd.f32 %v2802_v15, %v1329_v14  ;;  %v2804_v19 = vpop.f32.mrb[62].mxu0  ;;  %v1333_v23 = vpop.f32.mrb[63].mxu1 }
 0x191   :  { %v3326_v21 = vadd.f32 %v5624_v61, %v2801_v13  ;;  %v2805_v22 = vadd.f32 %v2804_v19, %v1331_v18  ;;  %v2806_v24 = vpop.f32.mrb[63].mxu0  ;;  %v6167_v19 = vld [vmem:[%s7161_s0 + $0x2f0] ss:$8 sps:$4 sm:$0xff]  }
 0x192   :  { %v3710_v25 = vadd.f32 %v5624_v61, %v2803_v17  ;;  %v2807_v26 = vadd.f32 %v2806_v24, %v1333_v23  ;;  %1596 = vmatmul.mubr.bf16.gmra.mrb[168].mxu1 %v6072_v16  ;;  %v6175_v23 = vld [vmem:[%s7161_s0 + $0x304] ss:$8 sps:$4 sm:$0xff]  }
 0x193   :  { %v3454_v27 = vmax.f32 %v3326_v21, 0.0  ;;  %v3327_v28 = vadd.f32 %v5624_v61, %v2805_v22  ;;  %3069 = vmatmul.mubr.bf16.gmra.mrb[168].mxu0 %v6012_v35  ;;  %1605 = vmatprep.mubr.bf16.mxu1 %v6080_v20 }
 0x194   :  { %v3838_v29 = vmax.f32 %v3710_v25, 0.0  ;;  %v3711_v30 = vadd.f32 %v5624_v61, %v2807_v26  ;;  %3078 = vmatprep.mubr.bf16.mxu0 %v6020_v39 }
 0x195   :  { %3582 = vst [vmem:[%s7163_s3 + $0x1d0] sm:$0xff] %v3454_v27  ;;  %v3455_v31 = vmax.f32 %v3327_v28, 0.0  ;;  %v1337_v33 = vpop.f32.mrb[64].mxu1 }
 0x196   :  { %4581 = vst [vmem:[%s7163_s3 + $0x1f0] sm:$0xff] %v3838_v29  ;;  %v3839_v32 = vmax.f32 %v3711_v30, 0.0  ;;  %v2810_v34 = vpop.f32.mrb[64].mxu0  ;;  %v1339_v36 = vpop.f32.mrb[65].mxu1 }
 0x197   :  { %3583 = vst [vmem:[%s7163_s3 + $0x1d8] sm:$0xff] %v3455_v31  ;;  %v2811_v35 = vadd.f32 %v2810_v34, %v1337_v33  ;;  %v2812_v37 = vpop.f32.mrb[65].mxu0  ;;  %v1341_v40 = vpop.f32.mrb[66].mxu1 }
 0x198   :  { %4582 = vst [vmem:[%s7163_s3 + $0x1f8] sm:$0xff] %v3839_v32  ;;  %v2813_v39 = vadd.f32 %v2812_v37, %v1339_v36  ;;  %v2814_v41 = vpop.f32.mrb[66].mxu0  ;;  %v1343_v45 = vpop.f32.mrb[67].mxu1 }
 0x199   :  { %v3328_v43 = vadd.f32 %v5624_v61, %v2811_v35  ;;  %v2815_v44 = vadd.f32 %v2814_v41, %v1341_v40  ;;  %v2816_v46 = vpop.f32.mrb[67].mxu0  ;;  %v6197_v41 = vld [vmem:[%s7161_s0 + $0x300] ss:$8 sps:$4 sm:$0xff]  }
 0x19a   :  { %v3712_v47 = vadd.f32 %v5624_v61, %v2813_v39  ;;  %v2817_v48 = vadd.f32 %v2816_v46, %v1343_v45  ;;  %1606 = vmatmul.mubr.bf16.gmra.mrb[172].mxu1 %v6102_v38  ;;  %v6205_v45 = vld [vmem:[%s7161_s0 + $0x314] ss:$8 sps:$4 sm:$0xff]  }
 0x19b   :  { %v3456_v49 = vmax.f32 %v3328_v43, 0.0  ;;  %v3329_v50 = vadd.f32 %v5624_v61, %v2815_v44  ;;  %3079 = vmatmul.mubr.bf16.gmra.mrb[172].mxu0 %v6042_v57  ;;  %1615 = vmatprep.mubr.bf16.mxu1 %v6110_v42 }
 0x19c   :  { %v3840_v51 = vmax.f32 %v3712_v47, 0.0  ;;  %v3713_v52 = vadd.f32 %v5624_v61, %v2817_v48  ;;  %3088 = vmatprep.mubr.bf16.mxu0 %v6050_v62 }
 0x19d   :  { %3584 = vst [vmem:[%s7163_s3 + $0x200] sm:$0xff] %v3456_v49  ;;  %v3457_v53 = vmax.f32 %v3329_v50, 0.0  ;;  %v1347_v55 = vpop.f32.mrb[68].mxu1 }
 0x19e   :  { %4583 = vst [vmem:[%s7163_s3 + $0x220] sm:$0xff] %v3840_v51  ;;  %v3841_v54 = vmax.f32 %v3713_v52, 0.0  ;;  %v2820_v56 = vpop.f32.mrb[68].mxu0  ;;  %v1349_v57 = vpop.f32.mrb[69].mxu1 }
 0x19f   :  { %3585 = vst [vmem:[%s7163_s3 + $0x208] sm:$0xff] %v3457_v53  ;;  %v2821_v61 = vadd.f32 %v2820_v56, %v1347_v55  ;;  %v2822_v58 = vpop.f32.mrb[69].mxu0  ;;  %v1351_v62 = vpop.f32.mrb[70].mxu1 }
 0x1a0   :  { %4584 = vst [vmem:[%s7163_s3 + $0x228] sm:$0xff] %v3841_v54  ;;  %v2823_v60 = vadd.f32 %v2822_v58, %v1349_v57  ;;  %v2824_v63 = vpop.f32.mrb[70].mxu0  ;;  %v1353_v4 = vpop.f32.mrb[71].mxu1 }
 0x1a1   :  { %v3330_v2 = vadd.f32 %v6145_v1, %v2821_v61  ;;  %v2825_v3 = vadd.f32 %v2824_v63, %v1351_v62  ;;  %v2826_v5 = vpop.f32.mrb[71].mxu0  ;;  %v6227_v63 = vld [vmem:[%s7161_s0 + $0x310] ss:$8 sps:$4 sm:$0xff]  }
 0x1a2   :  { %v3714_v6 = vadd.f32 %v6145_v1, %v2823_v60  ;;  %v2827_v7 = vadd.f32 %v2826_v5, %v1353_v4  ;;  %1616 = vmatmul.mubr.bf16.gmra.mrb[176].mxu1 %v6132_v59  ;;  %v6235_v4 = vld [vmem:[%s7161_s0 + $0x324] ss:$8 sps:$4 sm:$0xff]  }
 0x1a3   :  { %v3458_v8 = vmax.f32 %v3330_v2, 0.0  ;;  %v3331_v9 = vadd.f32 %v6145_v1, %v2825_v3  ;;  %3089 = vmatmul.mubr.bf16.gmra.mrb[176].mxu0 %v6072_v16  ;;  %1625 = vmatprep.mubr.bf16.mxu1 %v6140_v0 }
 0x1a4   :  { %v3842_v10 = vmax.f32 %v3714_v6, 0.0  ;;  %v3715_v11 = vadd.f32 %v6145_v1, %v2827_v7  ;;  %3098 = vmatprep.mubr.bf16.mxu0 %v6080_v20 }
 0x1a5   :  { %3586 = vst [vmem:[%s7163_s3 + $0x210] sm:$0xff] %v3458_v8  ;;  %v3459_v12 = vmax.f32 %v3331_v9, 0.0  ;;  %v1357_v14 = vpop.f32.mrb[72].mxu1 }
 0x1a6   :  { %4585 = vst [vmem:[%s7163_s3 + $0x230] sm:$0xff] %v3842_v10  ;;  %v3843_v13 = vmax.f32 %v3715_v11, 0.0  ;;  %v2830_v15 = vpop.f32.mrb[72].mxu0  ;;  %v1359_v17 = vpop.f32.mrb[73].mxu1 }
 0x1a7   :  { %3587 = vst [vmem:[%s7163_s3 + $0x218] sm:$0xff] %v3459_v12  ;;  %v2831_v16 = vadd.f32 %v2830_v15, %v1357_v14  ;;  %v2832_v18 = vpop.f32.mrb[73].mxu0  ;;  %v1361_v21 = vpop.f32.mrb[74].mxu1 }
 0x1a8   :  { %4586 = vst [vmem:[%s7163_s3 + $0x238] sm:$0xff] %v3843_v13  ;;  %v2833_v20 = vadd.f32 %v2832_v18, %v1359_v17  ;;  %v2834_v22 = vpop.f32.mrb[74].mxu0  ;;  %v1363_v26 = vpop.f32.mrb[75].mxu1 }
 0x1a9   :  { %v3332_v24 = vadd.f32 %v6145_v1, %v2831_v16  ;;  %v2835_v25 = vadd.f32 %v2834_v22, %v1361_v21  ;;  %v2836_v27 = vpop.f32.mrb[75].mxu0  ;;  %v6257_v22 = vld [vmem:[%s7161_s0 + $0x320] ss:$8 sps:$4 sm:$0xff]  }
 0x1aa   :  { %v3716_v28 = vadd.f32 %v6145_v1, %v2833_v20  ;;  %v2837_v29 = vadd.f32 %v2836_v27, %v1363_v26  ;;  %1626 = vmatmul.mubr.bf16.gmra.mrb[180].mxu1 %v6167_v19  ;;  %v6265_v26 = vld [vmem:[%s7161_s0 + $0x334] ss:$8 sps:$4 sm:$0xff]  }
 0x1ab   :  { %v3460_v30 = vmax.f32 %v3332_v24, 0.0  ;;  %v3333_v31 = vadd.f32 %v6145_v1, %v2835_v25  ;;  %3099 = vmatmul.mubr.bf16.gmra.mrb[180].mxu0 %v6102_v38  ;;  %1635 = vmatprep.mubr.bf16.mxu1 %v6175_v23 }
 0x1ac   :  { %v3844_v32 = vmax.f32 %v3716_v28, 0.0  ;;  %v3717_v33 = vadd.f32 %v6145_v1, %v2837_v29  ;;  %3108 = vmatprep.mubr.bf16.mxu0 %v6110_v42 }
 0x1ad   :  { %3588 = vst [vmem:[%s7163_s3 + $0x240] sm:$0xff] %v3460_v30  ;;  %v3461_v34 = vmax.f32 %v3333_v31, 0.0  ;;  %v1367_v36 = vpop.f32.mrb[76].mxu1 }
 0x1ae   :  { %4587 = vst [vmem:[%s7163_s3 + $0x260] sm:$0xff] %v3844_v32  ;;  %v3845_v35 = vmax.f32 %v3717_v33, 0.0  ;;  %v2840_v37 = vpop.f32.mrb[76].mxu0  ;;  %v1369_v39 = vpop.f32.mrb[77].mxu1 }
 0x1af   :  { %3589 = vst [vmem:[%s7163_s3 + $0x248] sm:$0xff] %v3461_v34  ;;  %v2841_v38 = vadd.f32 %v2840_v37, %v1367_v36  ;;  %v2842_v40 = vpop.f32.mrb[77].mxu0  ;;  %v1371_v43 = vpop.f32.mrb[78].mxu1 }
 0x1b0   :  { %4588 = vst [vmem:[%s7163_s3 + $0x268] sm:$0xff] %v3845_v35  ;;  %v2843_v42 = vadd.f32 %v2842_v40, %v1369_v39  ;;  %v2844_v44 = vpop.f32.mrb[78].mxu0  ;;  %v1373_v48 = vpop.f32.mrb[79].mxu1 }
 0x1b1   :  { %v3334_v46 = vadd.f32 %v6145_v1, %v2841_v38  ;;  %v2845_v47 = vadd.f32 %v2844_v44, %v1371_v43  ;;  %v2846_v49 = vpop.f32.mrb[79].mxu0  ;;  %v6287_v44 = vld [vmem:[%s7161_s0 + $0x330] ss:$8 sps:$4 sm:$0xff]  }
 0x1b2   :  { %v3718_v50 = vadd.f32 %v6145_v1, %v2843_v42  ;;  %v2847_v51 = vadd.f32 %v2846_v49, %v1373_v48  ;;  %1636 = vmatmul.mubr.bf16.gmra.mrb[184].mxu1 %v6197_v41  ;;  %v6295_v48 = vld [vmem:[%s7161_s0 + $0x344] ss:$8 sps:$4 sm:$0xff]  }
 0x1b3   :  { %v3462_v52 = vmax.f32 %v3334_v46, 0.0  ;;  %v3335_v53 = vadd.f32 %v6145_v1, %v2845_v47  ;;  %3109 = vmatmul.mubr.bf16.gmra.mrb[184].mxu0 %v6132_v59  ;;  %1645 = vmatprep.mubr.bf16.mxu1 %v6205_v45 }
 0x1b4   :  { %v3846_v54 = vmax.f32 %v3718_v50, 0.0  ;;  %v3719_v55 = vadd.f32 %v6145_v1, %v2847_v51  ;;  %3118 = vmatprep.mubr.bf16.mxu0 %v6140_v0 }
 0x1b5   :  { %3590 = vst [vmem:[%s7163_s3 + $0x250] sm:$0xff] %v3462_v52  ;;  %v3463_v56 = vmax.f32 %v3335_v53, 0.0  ;;  %v1377_v57 = vpop.f32.mrb[80].mxu1 }
 0x1b6   :  { %4589 = vst [vmem:[%s7163_s3 + $0x270] sm:$0xff] %v3846_v54  ;;  %v3847_v61 = vmax.f32 %v3719_v55, 0.0  ;;  %v2850_v58 = vpop.f32.mrb[80].mxu0  ;;  %v1379_v60 = vpop.f32.mrb[81].mxu1 }
 0x1b7   :  { %3591 = vst [vmem:[%s7163_s3 + $0x258] sm:$0xff] %v3463_v56  ;;  %v2851_v59 = vadd.f32 %v2850_v58, %v1377_v57  ;;  %v2852_v62 = vpop.f32.mrb[81].mxu0  ;;  %v1381_v2 = vpop.f32.mrb[82].mxu1 }
 0x1b8   :  { %4590 = vst [vmem:[%s7163_s3 + $0x278] sm:$0xff] %v3847_v61  ;;  %v2853_v0 = vadd.f32 %v2852_v62, %v1379_v60  ;;  %v2854_v3 = vpop.f32.mrb[82].mxu0  ;;  %v1383_v7 = vpop.f32.mrb[83].mxu1 }
 0x1b9   :  { %v3336_v5 = vadd.f32 %v6145_v1, %v2851_v59  ;;  %v2855_v6 = vadd.f32 %v2854_v3, %v1381_v2  ;;  %v2856_v8 = vpop.f32.mrb[83].mxu0  ;;  %v6317_v3 = vld [vmem:[%s7161_s0 + $0x340] ss:$8 sps:$4 sm:$0xff]  }
 0x1ba   :  { %v3720_v9 = vadd.f32 %v6145_v1, %v2853_v0  ;;  %v2857_v10 = vadd.f32 %v2856_v8, %v1383_v7  ;;  %1646 = vmatmul.mubr.bf16.gmra.mrb[188].mxu1 %v6227_v63  ;;  %v6325_v7 = vld [vmem:[%s7161_s0 + $0x354] ss:$8 sps:$4 sm:$0xff]  }
 0x1bb   :  { %v3464_v11 = vmax.f32 %v3336_v5, 0.0  ;;  %v3337_v12 = vadd.f32 %v6145_v1, %v2855_v6  ;;  %3119 = vmatmul.mubr.bf16.gmra.mrb[188].mxu0 %v6167_v19  ;;  %1655 = vmatprep.mubr.bf16.mxu1 %v6235_v4 }
 0x1bc   :  { %v3848_v13 = vmax.f32 %v3720_v9, 0.0  ;;  %v3721_v14 = vadd.f32 %v6145_v1, %v2857_v10  ;;  %3128 = vmatprep.mubr.bf16.mxu0 %v6175_v23 }
 0x1bd   :  { %3592 = vst [vmem:[%s7163_s3 + $0x280] sm:$0xff] %v3464_v11  ;;  %v3465_v15 = vmax.f32 %v3337_v12, 0.0  ;;  %v1387_v17 = vpop.f32.mrb[84].mxu1 }
 0x1be   :  { %4591 = vst [vmem:[%s7163_s3 + $0x2a0] sm:$0xff] %v3848_v13  ;;  %v3849_v16 = vmax.f32 %v3721_v14, 0.0  ;;  %v2860_v18 = vpop.f32.mrb[84].mxu0  ;;  %v1389_v20 = vpop.f32.mrb[85].mxu1 }
 0x1bf   :  { %3593 = vst [vmem:[%s7163_s3 + $0x288] sm:$0xff] %v3465_v15  ;;  %v2861_v19 = vadd.f32 %v2860_v18, %v1387_v17  ;;  %v2862_v21 = vpop.f32.mrb[85].mxu0  ;;  %v1391_v24 = vpop.f32.mrb[86].mxu1 }
 0x1c0   :  { %4592 = vst [vmem:[%s7163_s3 + $0x2a8] sm:$0xff] %v3849_v16  ;;  %v2863_v23 = vadd.f32 %v2862_v21, %v1389_v20  ;;  %v2864_v25 = vpop.f32.mrb[86].mxu0  ;;  %v1393_v29 = vpop.f32.mrb[87].mxu1 }
 0x1c1   :  { %v3338_v27 = vadd.f32 %v6145_v1, %v2861_v19  ;;  %v2865_v28 = vadd.f32 %v2864_v25, %v1391_v24  ;;  %v2866_v30 = vpop.f32.mrb[87].mxu0  ;;  %v6347_v25 = vld [vmem:[%s7161_s0 + $0x350] ss:$8 sps:$4 sm:$0xff]  }
 0x1c2   :  { %v3722_v31 = vadd.f32 %v6145_v1, %v2863_v23  ;;  %v2867_v32 = vadd.f32 %v2866_v30, %v1393_v29  ;;  %1656 = vmatmul.mubr.bf16.gmra.mrb[192].mxu1 %v6257_v22  ;;  %v6355_v29 = vld [vmem:[%s7161_s0 + $0x364] ss:$8 sps:$4 sm:$0xff]  }
 0x1c3   :  { %v3466_v33 = vmax.f32 %v3338_v27, 0.0  ;;  %v3339_v34 = vadd.f32 %v6145_v1, %v2865_v28  ;;  %3129 = vmatmul.mubr.bf16.gmra.mrb[192].mxu0 %v6197_v41  ;;  %1665 = vmatprep.mubr.bf16.mxu1 %v6265_v26 }
 0x1c4   :  { %v3850_v35 = vmax.f32 %v3722_v31, 0.0  ;;  %v3723_v36 = vadd.f32 %v6145_v1, %v2867_v32  ;;  %3138 = vmatprep.mubr.bf16.mxu0 %v6205_v45 }
 0x1c5   :  { %3594 = vst [vmem:[%s7163_s3 + $0x290] sm:$0xff] %v3466_v33  ;;  %v3467_v37 = vmax.f32 %v3339_v34, 0.0  ;;  %v1397_v39 = vpop.f32.mrb[88].mxu1 }
 0x1c6   :  { %4593 = vst [vmem:[%s7163_s3 + $0x2b0] sm:$0xff] %v3850_v35  ;;  %v3851_v38 = vmax.f32 %v3723_v36, 0.0  ;;  %v2870_v40 = vpop.f32.mrb[88].mxu0  ;;  %v1399_v42 = vpop.f32.mrb[89].mxu1 }
 0x1c7   :  { %3595 = vst [vmem:[%s7163_s3 + $0x298] sm:$0xff] %v3467_v37  ;;  %v2871_v41 = vadd.f32 %v2870_v40, %v1397_v39  ;;  %v2872_v43 = vpop.f32.mrb[89].mxu0  ;;  %v1401_v46 = vpop.f32.mrb[90].mxu1 }
 0x1c8   :  { %4594 = vst [vmem:[%s7163_s3 + $0x2b8] sm:$0xff] %v3851_v38  ;;  %v2873_v45 = vadd.f32 %v2872_v43, %v1399_v42  ;;  %v2874_v47 = vpop.f32.mrb[90].mxu0  ;;  %v1403_v51 = vpop.f32.mrb[91].mxu1 }
 0x1c9   :  { %v3340_v49 = vadd.f32 %v6145_v1, %v2871_v41  ;;  %v2875_v50 = vadd.f32 %v2874_v47, %v1401_v46  ;;  %v2876_v52 = vpop.f32.mrb[91].mxu0  ;;  %v6377_v47 = vld [vmem:[%s7161_s0 + $0x360] ss:$8 sps:$4 sm:$0xff]  }
 0x1ca   :  { %v3724_v53 = vadd.f32 %v6145_v1, %v2873_v45  ;;  %v2877_v54 = vadd.f32 %v2876_v52, %v1403_v51  ;;  %1666 = vmatmul.mubr.bf16.gmra.mrb[196].mxu1 %v6287_v44  ;;  %v6385_v51 = vld [vmem:[%s7161_s0 + $0x374] ss:$8 sps:$4 sm:$0xff]  }
 0x1cb   :  { %v3468_v55 = vmax.f32 %v3340_v49, 0.0  ;;  %v3341_v56 = vadd.f32 %v6145_v1, %v2875_v50  ;;  %3139 = vmatmul.mubr.bf16.gmra.mrb[196].mxu0 %v6227_v63  ;;  %1675 = vmatprep.mubr.bf16.mxu1 %v6295_v48 }
 0x1cc   :  { %v3852_v61 = vmax.f32 %v3724_v53, 0.0  ;;  %v3725_v57 = vadd.f32 %v6145_v1, %v2877_v54  ;;  %3148 = vmatprep.mubr.bf16.mxu0 %v6235_v4 }
 0x1cd   :  { %3596 = vst [vmem:[%s7163_s3 + $0x2c0] sm:$0xff] %v3468_v55  ;;  %v3469_v58 = vmax.f32 %v3341_v56, 0.0  ;;  %v1407_v60 = vpop.f32.mrb[92].mxu1 }
 0x1ce   :  { %4595 = vst [vmem:[%s7163_s3 + $0x2e0] sm:$0xff] %v3852_v61  ;;  %v3853_v59 = vmax.f32 %v3725_v57, 0.0  ;;  %v2880_v62 = vpop.f32.mrb[92].mxu0  ;;  %v1409_v0 = vpop.f32.mrb[93].mxu1 }
 0x1cf   :  { %3597 = vst [vmem:[%s7163_s3 + $0x2c8] sm:$0xff] %v3469_v58  ;;  %v2881_v63 = vadd.f32 %v2880_v62, %v1407_v60  ;;  %v2882_v2 = vpop.f32.mrb[93].mxu0  ;;  %v1411_v5 = vpop.f32.mrb[94].mxu1 }
 0x1d0   :  { %4596 = vst [vmem:[%s7163_s3 + $0x2e8] sm:$0xff] %v3853_v59  ;;  %v2883_v4 = vadd.f32 %v2882_v2, %v1409_v0  ;;  %v2884_v6 = vpop.f32.mrb[94].mxu0  ;;  %v1413_v10 = vpop.f32.mrb[95].mxu1 }
 0x1d1   :  { %v3342_v8 = vadd.f32 %v6145_v1, %v2881_v63  ;;  %v2885_v9 = vadd.f32 %v2884_v6, %v1411_v5  ;;  %v2886_v11 = vpop.f32.mrb[95].mxu0  ;;  %v6407_v6 = vld [vmem:[%s7161_s0 + $0x370] ss:$8 sps:$4 sm:$0xff]  }
 0x1d2   :  { %v3726_v12 = vadd.f32 %v6145_v1, %v2883_v4  ;;  %v2887_v13 = vadd.f32 %v2886_v11, %v1413_v10  ;;  %1676 = vmatmul.mubr.bf16.gmra.mrb[200].mxu1 %v6317_v3  ;;  %v6415_v10 = vld [vmem:[%s7161_s0 + $0x384] ss:$8 sps:$4 sm:$0xff]  }
 0x1d3   :  { %v3470_v14 = vmax.f32 %v3342_v8, 0.0  ;;  %v3343_v15 = vadd.f32 %v6145_v1, %v2885_v9  ;;  %3149 = vmatmul.mubr.bf16.gmra.mrb[200].mxu0 %v6257_v22  ;;  %1685 = vmatprep.mubr.bf16.mxu1 %v6325_v7 }
 0x1d4   :  { %v3854_v16 = vmax.f32 %v3726_v12, 0.0  ;;  %v3727_v17 = vadd.f32 %v6145_v1, %v2887_v13  ;;  %3158 = vmatprep.mubr.bf16.mxu0 %v6265_v26 }
 0x1d5   :  { %3598 = vst [vmem:[%s7163_s3 + $0x2d0] sm:$0xff] %v3470_v14  ;;  %v3471_v18 = vmax.f32 %v3343_v15, 0.0  ;;  %v1417_v20 = vpop.f32.mrb[96].mxu1 }
 0x1d6   :  { %4597 = vst [vmem:[%s7163_s3 + $0x2f0] sm:$0xff] %v3854_v16  ;;  %v3855_v19 = vmax.f32 %v3727_v17, 0.0  ;;  %v2890_v21 = vpop.f32.mrb[96].mxu0  ;;  %v1419_v23 = vpop.f32.mrb[97].mxu1 }
 0x1d7   :  { %3599 = vst [vmem:[%s7163_s3 + $0x2d8] sm:$0xff] %v3471_v18  ;;  %v2891_v22 = vadd.f32 %v2890_v21, %v1417_v20  ;;  %v2892_v24 = vpop.f32.mrb[97].mxu0  ;;  %v1421_v27 = vpop.f32.mrb[98].mxu1 }
 0x1d8   :  { %4598 = vst [vmem:[%s7163_s3 + $0x2f8] sm:$0xff] %v3855_v19  ;;  %v2893_v26 = vadd.f32 %v2892_v24, %v1419_v23  ;;  %v2894_v28 = vpop.f32.mrb[98].mxu0  ;;  %v1423_v32 = vpop.f32.mrb[99].mxu1 }
 0x1d9   :  { %v3344_v30 = vadd.f32 %v6145_v1, %v2891_v22  ;;  %v2895_v31 = vadd.f32 %v2894_v28, %v1421_v27  ;;  %v2896_v33 = vpop.f32.mrb[99].mxu0  ;;  %v6437_v28 = vld [vmem:[%s7161_s0 + $0x380] ss:$8 sps:$4 sm:$0xff]  }
 0x1da   :  { %v3728_v34 = vadd.f32 %v6145_v1, %v2893_v26  ;;  %v2897_v35 = vadd.f32 %v2896_v33, %v1423_v32  ;;  %1686 = vmatmul.mubr.bf16.gmra.mrb[204].mxu1 %v6347_v25  ;;  %v6445_v32 = vld [vmem:[%s7161_s0 + $0x394] ss:$8 sps:$4 sm:$0xff]  }
 0x1db   :  { %v3472_v36 = vmax.f32 %v3344_v30, 0.0  ;;  %v3345_v37 = vadd.f32 %v6145_v1, %v2895_v31  ;;  %3159 = vmatmul.mubr.bf16.gmra.mrb[204].mxu0 %v6287_v44  ;;  %1695 = vmatprep.mubr.bf16.mxu1 %v6355_v29 }
 0x1dc   :  { %v3856_v38 = vmax.f32 %v3728_v34, 0.0  ;;  %v3729_v39 = vadd.f32 %v6145_v1, %v2897_v35  ;;  %3168 = vmatprep.mubr.bf16.mxu0 %v6295_v48 }
 0x1dd   :  { %3600 = vst [vmem:[%s7163_s3 + $0x300] sm:$0xff] %v3472_v36  ;;  %v3473_v40 = vmax.f32 %v3345_v37, 0.0  ;;  %v1427_v42 = vpop.f32.mrb[100].mxu1 }
 0x1de   :  { %4599 = vst [vmem:[%s7163_s3 + $0x320] sm:$0xff] %v3856_v38  ;;  %v3857_v41 = vmax.f32 %v3729_v39, 0.0  ;;  %v2900_v43 = vpop.f32.mrb[100].mxu0  ;;  %v1429_v45 = vpop.f32.mrb[101].mxu1 }
 0x1df   :  { %3601 = vst [vmem:[%s7163_s3 + $0x308] sm:$0xff] %v3473_v40  ;;  %v2901_v44 = vadd.f32 %v2900_v43, %v1427_v42  ;;  %v2902_v46 = vpop.f32.mrb[101].mxu0  ;;  %v1431_v49 = vpop.f32.mrb[102].mxu1 }
 0x1e0   :  { %4600 = vst [vmem:[%s7163_s3 + $0x328] sm:$0xff] %v3857_v41  ;;  %v2903_v48 = vadd.f32 %v2902_v46, %v1429_v45  ;;  %v2904_v50 = vpop.f32.mrb[102].mxu0  ;;  %v1433_v54 = vpop.f32.mrb[103].mxu1 }
 0x1e1   :  { %v3346_v52 = vadd.f32 %v6145_v1, %v2901_v44  ;;  %v2905_v53 = vadd.f32 %v2904_v50, %v1431_v49  ;;  %v2906_v55 = vpop.f32.mrb[103].mxu0  ;;  %v6467_v50 = vld [vmem:[%s7161_s0 + $0x390] ss:$8 sps:$4 sm:$0xff]  }
 0x1e2   :  { %v3730_v56 = vadd.f32 %v6145_v1, %v2903_v48  ;;  %v2907_v61 = vadd.f32 %v2906_v55, %v1433_v54  ;;  %1696 = vmatmul.mubr.bf16.gmra.mrb[208].mxu1 %v6377_v47  ;;  %v6475_v54 = vld [vmem:[%s7161_s0 + $0x3a4] ss:$8 sps:$4 sm:$0xff]  }
 0x1e3   :  { %v3474_v57 = vmax.f32 %v3346_v52, 0.0  ;;  %v3347_v58 = vadd.f32 %v6145_v1, %v2905_v53  ;;  %3169 = vmatmul.mubr.bf16.gmra.mrb[208].mxu0 %v6317_v3  ;;  %1705 = vmatprep.mubr.bf16.mxu1 %v6385_v51 }
 0x1e4   :  { %v3858_v59 = vmax.f32 %v3730_v56, 0.0  ;;  %v3731_v60 = vadd.f32 %v6145_v1, %v2907_v61  ;;  %3178 = vmatprep.mubr.bf16.mxu0 %v6325_v7 }
 0x1e5   :  { %3602 = vst [vmem:[%s7163_s3 + $0x310] sm:$0xff] %v3474_v57  ;;  %v3475_v62 = vmax.f32 %v3347_v58, 0.0  ;;  %v1437_v0 = vpop.f32.mrb[104].mxu1 }
 0x1e6   :  { %4601 = vst [vmem:[%s7163_s3 + $0x330] sm:$0xff] %v3858_v59  ;;  %v3859_v63 = vmax.f32 %v3731_v60, 0.0  ;;  %v2910_v2 = vpop.f32.mrb[104].mxu0  ;;  %v1439_v4 = vpop.f32.mrb[105].mxu1 }
 0x1e7   :  { %3603 = vst [vmem:[%s7163_s3 + $0x318] sm:$0xff] %v3475_v62  ;;  %v2911_v3 = vadd.f32 %v2910_v2, %v1437_v0  ;;  %v2912_v5 = vpop.f32.mrb[105].mxu0  ;;  %v1441_v8 = vpop.f32.mrb[106].mxu1 }
 0x1e8   :  { %4602 = vst [vmem:[%s7163_s3 + $0x338] sm:$0xff] %v3859_v63  ;;  %v2913_v7 = vadd.f32 %v2912_v5, %v1439_v4  ;;  %v2914_v9 = vpop.f32.mrb[106].mxu0  ;;  %v1443_v13 = vpop.f32.mrb[107].mxu1 }
 0x1e9   :  { %v3348_v11 = vadd.f32 %v6145_v1, %v2911_v3  ;;  %v2915_v12 = vadd.f32 %v2914_v9, %v1441_v8  ;;  %v2916_v14 = vpop.f32.mrb[107].mxu0  ;;  %v6497_v9 = vld [vmem:[%s7161_s0 + $0x3a0] ss:$8 sps:$4 sm:$0xff]  }
 0x1ea   :  { %v3732_v15 = vadd.f32 %v6145_v1, %v2913_v7  ;;  %v2917_v16 = vadd.f32 %v2916_v14, %v1443_v13  ;;  %1706 = vmatmul.mubr.bf16.gmra.mrb[212].mxu1 %v6407_v6  ;;  %v6505_v13 = vld [vmem:[%s7161_s0 + $0x3b4] ss:$8 sps:$4 sm:$0xff]  }
 0x1eb   :  { %v3476_v17 = vmax.f32 %v3348_v11, 0.0  ;;  %v3349_v18 = vadd.f32 %v6145_v1, %v2915_v12  ;;  %3179 = vmatmul.mubr.bf16.gmra.mrb[212].mxu0 %v6347_v25  ;;  %1715 = vmatprep.mubr.bf16.mxu1 %v6415_v10 }
 0x1ec   :  { %v3860_v19 = vmax.f32 %v3732_v15, 0.0  ;;  %v3733_v20 = vadd.f32 %v6145_v1, %v2917_v16  ;;  %3188 = vmatprep.mubr.bf16.mxu0 %v6355_v29 }
 0x1ed   :  { %3604 = vst [vmem:[%s7163_s3 + $0x340] sm:$0xff] %v3476_v17  ;;  %v3477_v21 = vmax.f32 %v3349_v18, 0.0  ;;  %v1447_v23 = vpop.f32.mrb[108].mxu1 }
 0x1ee   :  { %4603 = vst [vmem:[%s7163_s3 + $0x360] sm:$0xff] %v3860_v19  ;;  %v3861_v22 = vmax.f32 %v3733_v20, 0.0  ;;  %v2920_v24 = vpop.f32.mrb[108].mxu0  ;;  %v1449_v26 = vpop.f32.mrb[109].mxu1 }
 0x1ef   :  { %3605 = vst [vmem:[%s7163_s3 + $0x348] sm:$0xff] %v3477_v21  ;;  %v2921_v25 = vadd.f32 %v2920_v24, %v1447_v23  ;;  %v2922_v27 = vpop.f32.mrb[109].mxu0  ;;  %v1451_v30 = vpop.f32.mrb[110].mxu1 }
 0x1f0   :  { %4604 = vst [vmem:[%s7163_s3 + $0x368] sm:$0xff] %v3861_v22  ;;  %v2923_v29 = vadd.f32 %v2922_v27, %v1449_v26  ;;  %v2924_v31 = vpop.f32.mrb[110].mxu0  ;;  %v1453_v35 = vpop.f32.mrb[111].mxu1 }
 0x1f1   :  { %v3350_v33 = vadd.f32 %v6145_v1, %v2921_v25  ;;  %v2925_v34 = vadd.f32 %v2924_v31, %v1451_v30  ;;  %v2926_v36 = vpop.f32.mrb[111].mxu0  ;;  %v6527_v31 = vld [vmem:[%s7161_s0 + $0x3b0] ss:$8 sps:$4 sm:$0xff]  }
 0x1f2   :  { %v3734_v37 = vadd.f32 %v6145_v1, %v2923_v29  ;;  %v2927_v38 = vadd.f32 %v2926_v36, %v1453_v35  ;;  %1716 = vmatmul.mubr.bf16.gmra.mrb[216].mxu1 %v6437_v28  ;;  %v6535_v35 = vld [vmem:[%s7161_s0 + $0x3c4] ss:$8 sps:$4 sm:$0xff]  }
 0x1f3   :  { %v3478_v39 = vmax.f32 %v3350_v33, 0.0  ;;  %v3351_v40 = vadd.f32 %v6145_v1, %v2925_v34  ;;  %3189 = vmatmul.mubr.bf16.gmra.mrb[216].mxu0 %v6377_v47  ;;  %1725 = vmatprep.mubr.bf16.mxu1 %v6445_v32 }
 0x1f4   :  { %v3862_v41 = vmax.f32 %v3734_v37, 0.0  ;;  %v3735_v42 = vadd.f32 %v6145_v1, %v2927_v38  ;;  %3198 = vmatprep.mubr.bf16.mxu0 %v6385_v51 }
 0x1f5   :  { %3606 = vst [vmem:[%s7163_s3 + $0x350] sm:$0xff] %v3478_v39  ;;  %v3479_v43 = vmax.f32 %v3351_v40, 0.0  ;;  %v1457_v45 = vpop.f32.mrb[112].mxu1 }
 0x1f6   :  { %4605 = vst [vmem:[%s7163_s3 + $0x370] sm:$0xff] %v3862_v41  ;;  %v3863_v44 = vmax.f32 %v3735_v42, 0.0  ;;  %v2930_v46 = vpop.f32.mrb[112].mxu0  ;;  %v1459_v48 = vpop.f32.mrb[113].mxu1 }
 0x1f7   :  { %3607 = vst [vmem:[%s7163_s3 + $0x358] sm:$0xff] %v3479_v43  ;;  %v2931_v47 = vadd.f32 %v2930_v46, %v1457_v45  ;;  %v2932_v49 = vpop.f32.mrb[113].mxu0  ;;  %v1461_v52 = vpop.f32.mrb[114].mxu1 }
 0x1f8   :  { %4606 = vst [vmem:[%s7163_s3 + $0x378] sm:$0xff] %v3863_v44  ;;  %v2933_v51 = vadd.f32 %v2932_v49, %v1459_v48  ;;  %v2934_v53 = vpop.f32.mrb[114].mxu0  ;;  %v1463_v61 = vpop.f32.mrb[115].mxu1 }
 0x1f9   :  { %v3352_v55 = vadd.f32 %v6145_v1, %v2931_v47  ;;  %v2935_v56 = vadd.f32 %v2934_v53, %v1461_v52  ;;  %v2936_v57 = vpop.f32.mrb[115].mxu0  ;;  %v6557_v53 = vld [vmem:[%s7161_s0 + $0x3c0] ss:$8 sps:$4 sm:$0xff]  }
 0x1fa   :  { %v3736_v58 = vadd.f32 %v6145_v1, %v2933_v51  ;;  %v2937_v59 = vadd.f32 %v2936_v57, %v1463_v61  ;;  %1726 = vmatmul.mubr.bf16.gmra.mrb[220].mxu1 %v6467_v50  ;;  %v6565_v61 = vld [vmem:[%s7161_s0 + $0x3d4] ss:$8 sps:$4 sm:$0xff]  }
 0x1fb   :  { %v3480_v60 = vmax.f32 %v3352_v55, 0.0  ;;  %v3353_v62 = vadd.f32 %v6145_v1, %v2935_v56  ;;  %3199 = vmatmul.mubr.bf16.gmra.mrb[220].mxu0 %v6407_v6  ;;  %1735 = vmatprep.mubr.bf16.mxu1 %v6475_v54 }
 0x1fc   :  { %v3864_v63 = vmax.f32 %v3736_v58, 0.0  ;;  %v3737_v0 = vadd.f32 %v6145_v1, %v2937_v59  ;;  %3208 = vmatprep.mubr.bf16.mxu0 %v6415_v10 }
 0x1fd   :  { %3608 = vst [vmem:[%s7163_s3 + $0x380] sm:$0xff] %v3480_v60  ;;  %v3481_v2 = vmax.f32 %v3353_v62, 0.0  ;;  %v1467_v4 = vpop.f32.mrb[116].mxu1 }
 0x1fe   :  { %4607 = vst [vmem:[%s7163_s3 + $0x3a0] sm:$0xff] %v3864_v63  ;;  %v3865_v3 = vmax.f32 %v3737_v0, 0.0  ;;  %v2940_v5 = vpop.f32.mrb[116].mxu0  ;;  %v1469_v7 = vpop.f32.mrb[117].mxu1 }
 0x1ff   :  { %3609 = vst [vmem:[%s7163_s3 + $0x388] sm:$0xff] %v3481_v2  ;;  %v2941_v6 = vadd.f32 %v2940_v5, %v1467_v4  ;;  %v2942_v8 = vpop.f32.mrb[117].mxu0  ;;  %v1471_v11 = vpop.f32.mrb[118].mxu1 }
 0x200   :  { %4608 = vst [vmem:[%s7163_s3 + $0x3a8] sm:$0xff] %v3865_v3  ;;  %v2943_v10 = vadd.f32 %v2942_v8, %v1469_v7  ;;  %v2944_v12 = vpop.f32.mrb[118].mxu0  ;;  %v1473_v16 = vpop.f32.mrb[119].mxu1 }
 0x201   :  { %v3354_v14 = vadd.f32 %v6145_v1, %v2941_v6  ;;  %v2945_v15 = vadd.f32 %v2944_v12, %v1471_v11  ;;  %v2946_v17 = vpop.f32.mrb[119].mxu0  ;;  %v6587_v12 = vld [vmem:[%s7161_s0 + $0x3d0] ss:$8 sps:$4 sm:$0xff]  }
 0x202   :  { %v3738_v18 = vadd.f32 %v6145_v1, %v2943_v10  ;;  %v2947_v19 = vadd.f32 %v2946_v17, %v1473_v16  ;;  %1736 = vmatmul.mubr.bf16.gmra.mrb[224].mxu1 %v6497_v9  ;;  %v6595_v16 = vld [vmem:[%s7161_s0 + $0x3e4] ss:$8 sps:$4 sm:$0xff]  }
 0x203   :  { %v3482_v20 = vmax.f32 %v3354_v14, 0.0  ;;  %v3355_v21 = vadd.f32 %v6145_v1, %v2945_v15  ;;  %3209 = vmatmul.mubr.bf16.gmra.mrb[224].mxu0 %v6437_v28  ;;  %1745 = vmatprep.mubr.bf16.mxu1 %v6505_v13 }
 0x204   :  { %v3866_v22 = vmax.f32 %v3738_v18, 0.0  ;;  %v3739_v23 = vadd.f32 %v6145_v1, %v2947_v19  ;;  %3218 = vmatprep.mubr.bf16.mxu0 %v6445_v32 }
 0x205   :  { %3610 = vst [vmem:[%s7163_s3 + $0x390] sm:$0xff] %v3482_v20  ;;  %v3483_v24 = vmax.f32 %v3355_v21, 0.0  ;;  %v1477_v26 = vpop.f32.mrb[120].mxu1 }
 0x206   :  { %4609 = vst [vmem:[%s7163_s3 + $0x3b0] sm:$0xff] %v3866_v22  ;;  %v3867_v25 = vmax.f32 %v3739_v23, 0.0  ;;  %v2950_v27 = vpop.f32.mrb[120].mxu0  ;;  %v1479_v29 = vpop.f32.mrb[121].mxu1 }
 0x207   :  { %3611 = vst [vmem:[%s7163_s3 + $0x398] sm:$0xff] %v3483_v24  ;;  %v2951_v28 = vadd.f32 %v2950_v27, %v1477_v26  ;;  %v2952_v30 = vpop.f32.mrb[121].mxu0  ;;  %v1481_v33 = vpop.f32.mrb[122].mxu1 }
 0x208   :  { %4610 = vst [vmem:[%s7163_s3 + $0x3b8] sm:$0xff] %v3867_v25  ;;  %v2953_v32 = vadd.f32 %v2952_v30, %v1479_v29  ;;  %v2954_v34 = vpop.f32.mrb[122].mxu0  ;;  %v1483_v38 = vpop.f32.mrb[123].mxu1 }
 0x209   :  { %v3356_v36 = vadd.f32 %v6145_v1, %v2951_v28  ;;  %v2955_v37 = vadd.f32 %v2954_v34, %v1481_v33  ;;  %v2956_v39 = vpop.f32.mrb[123].mxu0  ;;  %v6617_v34 = vld [vmem:[%s7161_s0 + $0x3e0] ss:$8 sps:$4 sm:$0xff]  }
 0x20a   :  { %v3740_v40 = vadd.f32 %v6145_v1, %v2953_v32  ;;  %v2957_v41 = vadd.f32 %v2956_v39, %v1483_v38  ;;  %1746 = vmatmul.mubr.bf16.gmra.mrb[228].mxu1 %v6527_v31  ;;  %v6625_v38 = vld [vmem:[%s7161_s0 + $0x3f4] ss:$8 sps:$4 sm:$0xff]  }
 0x20b   :  { %v3484_v42 = vmax.f32 %v3356_v36, 0.0  ;;  %v3357_v43 = vadd.f32 %v6145_v1, %v2955_v37  ;;  %3219 = vmatmul.mubr.bf16.gmra.mrb[228].mxu0 %v6467_v50  ;;  %1755 = vmatprep.mubr.bf16.mxu1 %v6535_v35 }
 0x20c   :  { %v3868_v44 = vmax.f32 %v3740_v40, 0.0  ;;  %v3741_v45 = vadd.f32 %v6145_v1, %v2957_v41  ;;  %3228 = vmatprep.mubr.bf16.mxu0 %v6475_v54 }
 0x20d   :  { %3612 = vst [vmem:[%s7163_s3 + $0x3c0] sm:$0xff] %v3484_v42  ;;  %v3485_v46 = vmax.f32 %v3357_v43, 0.0  ;;  %v1487_v48 = vpop.f32.mrb[124].mxu1 }
 0x20e   :  { %4611 = vst [vmem:[%s7163_s3 + $0x3e0] sm:$0xff] %v3868_v44  ;;  %v3869_v47 = vmax.f32 %v3741_v45, 0.0  ;;  %v2960_v49 = vpop.f32.mrb[124].mxu0  ;;  %v1489_v51 = vpop.f32.mrb[125].mxu1 }
 0x20f   :  { %3613 = vst [vmem:[%s7163_s3 + $0x3c8] sm:$0xff] %v3485_v46  ;;  %v2961_v50 = vadd.f32 %v2960_v49, %v1487_v48  ;;  %v2962_v52 = vpop.f32.mrb[125].mxu0  ;;  %v1491_v55 = vpop.f32.mrb[126].mxu1 }
 0x210   :  { %4612 = vst [vmem:[%s7163_s3 + $0x3e8] sm:$0xff] %v3869_v47  ;;  %v2963_v54 = vadd.f32 %v2962_v52, %v1489_v51  ;;  %v2964_v56 = vpop.f32.mrb[126].mxu0  ;;  %v1493_v59 = vpop.f32.mrb[127].mxu1 }
 0x211   :  { %v3358_v57 = vadd.f32 %v6145_v1, %v2961_v50  ;;  %v2965_v58 = vadd.f32 %v2964_v56, %v1491_v55  ;;  %v2966_v60 = vpop.f32.mrb[127].mxu0  ;;  %v6647_v56 = vld [vmem:[%s7161_s0 + $0x3f0] ss:$8 sps:$4 sm:$0xff]  }
 0x212   :  { %v3742_v62 = vadd.f32 %v6145_v1, %v2963_v54  ;;  %v2967_v63 = vadd.f32 %v2966_v60, %v1493_v59  ;;  %1756 = vmatmul.mubr.bf16.gmra.mrb[232].mxu1 %v6557_v53  ;;  %v5223_v59 = vld [vmem:[%s7161_s0 + $0x404] ss:$8 sps:$4 sm:$0xff]  }
 0x213   :  { %v3486_v0 = vmax.f32 %v3358_v57, 0.0  ;;  %v3359_v2 = vadd.f32 %v6145_v1, %v2965_v58  ;;  %3229 = vmatmul.mubr.bf16.gmra.mrb[232].mxu0 %v6497_v9  ;;  %1765 = vmatprep.mubr.bf16.mxu1 %v6565_v61 }
 0x214   :  { %v3870_v3 = vmax.f32 %v3742_v62, 0.0  ;;  %v3743_v4 = vadd.f32 %v6145_v1, %v2967_v63  ;;  %3238 = vmatprep.mubr.bf16.mxu0 %v6505_v13 }
 0x215   :  { %3614 = vst [vmem:[%s7163_s3 + $0x3d0] sm:$0xff] %v3486_v0  ;;  %v3487_v5 = vmax.f32 %v3359_v2, 0.0  ;;  %v1497_v7 = vpop.f32.mrb[128].mxu1  ;;  %v6659_v2 = vld [vmem:[%s7162_s2] ss:$0 sm:$0xff] }
 0x216   :  { %4613 = vst [vmem:[%s7163_s3 + $0x3f0] sm:$0xff] %v3870_v3  ;;  %v3871_v6 = vmax.f32 %v3743_v4, 0.0  ;;  %v2970_v8 = vpop.f32.mrb[128].mxu0  ;;  %v1499_v10 = vpop.f32.mrb[129].mxu1 }
 0x217   :  { %3615 = vst [vmem:[%s7163_s3 + $0x3d8] sm:$0xff] %v3487_v5  ;;  %v2971_v9 = vadd.f32 %v2970_v8, %v1497_v7  ;;  %v2972_v11 = vpop.f32.mrb[129].mxu0  ;;  %v1501_v14 = vpop.f32.mrb[130].mxu1 }
 0x218   :  { %4614 = vst [vmem:[%s7163_s3 + $0x3f8] sm:$0xff] %v3871_v6  ;;  %v2973_v13 = vadd.f32 %v2972_v11, %v1499_v10  ;;  %v2974_v15 = vpop.f32.mrb[130].mxu0  ;;  %v1503_v19 = vpop.f32.mrb[131].mxu1 }
 0x219   :  { %v3360_v17 = vadd.f32 %v6145_v1, %v2971_v9  ;;  %v2975_v18 = vadd.f32 %v2974_v15, %v1501_v14  ;;  %v2976_v20 = vpop.f32.mrb[131].mxu0  ;;  %v5225_v15 = vld [vmem:[%s7161_s0 + $0x400] ss:$8 sps:$4 sm:$0xff]  }
 0x21a   :  { %v3744_v21 = vadd.f32 %v6145_v1, %v2973_v13  ;;  %v2977_v22 = vadd.f32 %v2976_v20, %v1503_v19  ;;  %1766 = vmatmul.mubr.bf16.gmra.mrb[236].mxu1 %v6587_v12  ;;  %v5226_v19 = vld [vmem:[%s7161_s0 + $0x414] ss:$8 sps:$4 sm:$0xff]  }
 0x21b   :  { %v3488_v23 = vmax.f32 %v3360_v17, 0.0  ;;  %v3361_v24 = vadd.f32 %v6145_v1, %v2975_v18  ;;  %3239 = vmatmul.mubr.bf16.gmra.mrb[236].mxu0 %v6527_v31  ;;  %1775 = vmatprep.mubr.bf16.mxu1 %v6595_v16 }
 0x21c   :  { %v3872_v25 = vmax.f32 %v3744_v21, 0.0  ;;  %v3745_v26 = vadd.f32 %v6145_v1, %v2977_v22  ;;  %3248 = vmatprep.mubr.bf16.mxu0 %v6535_v35 }
 0x21d   :  { %3616 = vst [vmem:[%s7163_s3 + $0x400] sm:$0xff] %v3488_v23  ;;  %v3489_v27 = vmax.f32 %v3361_v24, 0.0  ;;  %v1507_v29 = vpop.f32.mrb[132].mxu1 }
 0x21e   :  { %4615 = vst [vmem:[%s7163_s3 + $0x420] sm:$0xff] %v3872_v25  ;;  %v3873_v28 = vmax.f32 %v3745_v26, 0.0  ;;  %v2980_v30 = vpop.f32.mrb[132].mxu0  ;;  %v1509_v32 = vpop.f32.mrb[133].mxu1 }
 0x21f   :  { %3617 = vst [vmem:[%s7163_s3 + $0x408] sm:$0xff] %v3489_v27  ;;  %v2981_v31 = vadd.f32 %v2980_v30, %v1507_v29  ;;  %v2982_v33 = vpop.f32.mrb[133].mxu0  ;;  %v1511_v36 = vpop.f32.mrb[134].mxu1 }
 0x220   :  { %4616 = vst [vmem:[%s7163_s3 + $0x428] sm:$0xff] %v3873_v28  ;;  %v2983_v35 = vadd.f32 %v2982_v33, %v1509_v32  ;;  %v2984_v37 = vpop.f32.mrb[134].mxu0  ;;  %v1513_v41 = vpop.f32.mrb[135].mxu1 }
 0x221   :  { %v3362_v39 = vadd.f32 %v6145_v1, %v2981_v31  ;;  %v2985_v40 = vadd.f32 %v2984_v37, %v1511_v36  ;;  %v2986_v42 = vpop.f32.mrb[135].mxu0  ;;  %v5228_v37 = vld [vmem:[%s7161_s0 + $0x410] ss:$8 sps:$4 sm:$0xff]  }
 0x222   :  { %v3746_v43 = vadd.f32 %v6145_v1, %v2983_v35  ;;  %v2987_v44 = vadd.f32 %v2986_v42, %v1513_v41  ;;  %1776 = vmatmul.mubr.bf16.gmra.mrb[240].mxu1 %v6617_v34 }
 0x223   :  { %v3490_v45 = vmax.f32 %v3362_v39, 0.0  ;;  %v3363_v46 = vadd.f32 %v6145_v1, %v2985_v40  ;;  %3249 = vmatmul.mubr.bf16.gmra.mrb[240].mxu0 %v6557_v53  ;;  %1785 = vmatprep.mubr.bf16.mxu1 %v6625_v38 }
 0x224   :  { %v3874_v47 = vmax.f32 %v3746_v43, 0.0  ;;  %v3747_v48 = vadd.f32 %v6145_v1, %v2987_v44  ;;  %3258 = vmatprep.mubr.bf16.mxu0 %v6565_v61 }
 0x225   :  { %3618 = vst [vmem:[%s7163_s3 + $0x410] sm:$0xff] %v3490_v45  ;;  %v3491_v49 = vmax.f32 %v3363_v46, 0.0  ;;  %v1517_v51 = vpop.f32.mrb[136].mxu1 }
 0x226   :  { %4617 = vst [vmem:[%s7163_s3 + $0x430] sm:$0xff] %v3874_v47  ;;  %v3875_v50 = vmax.f32 %v3747_v48, 0.0  ;;  %v2990_v52 = vpop.f32.mrb[136].mxu0  ;;  %v1519_v54 = vpop.f32.mrb[137].mxu1 }
 0x227   :  { %3619 = vst [vmem:[%s7163_s3 + $0x418] sm:$0xff] %v3491_v49  ;;  %v2991_v53 = vadd.f32 %v2990_v52, %v1517_v51  ;;  %v2992_v55 = vpop.f32.mrb[137].mxu0  ;;  %v1521_v57 = vpop.f32.mrb[138].mxu1 }
 0x228   :  { %4618 = vst [vmem:[%s7163_s3 + $0x438] sm:$0xff] %v3875_v50  ;;  %v2993_v61 = vadd.f32 %v2992_v55, %v1519_v54  ;;  %v2994_v58 = vpop.f32.mrb[138].mxu0  ;;  %v1523_v63 = vpop.f32.mrb[139].mxu1 }
 0x229   :  { %v3364_v60 = vadd.f32 %v6145_v1, %v2991_v53  ;;  %v2995_v62 = vadd.f32 %v2994_v58, %v1521_v57  ;;  %v2996_v0 = vpop.f32.mrb[139].mxu0 }
 0x22a   :  { %v3748_v3 = vadd.f32 %v6659_v2, %v2993_v61  ;;  %v2997_v4 = vadd.f32 %v2996_v0, %v1523_v63  ;;  %1786 = vmatmul.mubr.bf16.gmra.mrb[244].mxu1 %v6647_v56 }
 0x22b   :  { %v3492_v5 = vmax.f32 %v3364_v60, 0.0  ;;  %v3365_v6 = vadd.f32 %v6659_v2, %v2995_v62  ;;  %3259 = vmatmul.mubr.bf16.gmra.mrb[244].mxu0 %v6587_v12  ;;  %1795 = vmatprep.mubr.bf16.mxu1 %v5223_v59 }
 0x22c   :  { %v3876_v7 = vmax.f32 %v3748_v3, 0.0  ;;  %v3749_v1 = vadd.f32 %v6659_v2, %v2997_v4  ;;  %3268 = vmatprep.mubr.bf16.mxu0 %v6595_v16 }
 0x22d   :  { %3620 = vst [vmem:[%s7163_s3 + $0x440] sm:$0xff] %v3492_v5  ;;  %v3493_v8 = vmax.f32 %v3365_v6, 0.0  ;;  %v1527_v10 = vpop.f32.mrb[140].mxu1 }
 0x22e   :  { %4619 = vst [vmem:[%s7163_s3 + $0x460] sm:$0xff] %v3876_v7  ;;  %v3877_v9 = vmax.f32 %v3749_v1, 0.0  ;;  %v3000_v11 = vpop.f32.mrb[140].mxu0  ;;  %v1529_v13 = vpop.f32.mrb[141].mxu1 }
 0x22f   :  { %3621 = vst [vmem:[%s7163_s3 + $0x448] sm:$0xff] %v3493_v8  ;;  %v3001_v12 = vadd.f32 %v3000_v11, %v1527_v10  ;;  %v3002_v14 = vpop.f32.mrb[141].mxu0  ;;  %v1531_v17 = vpop.f32.mrb[142].mxu1 }
 0x230   :  { %4620 = vst [vmem:[%s7163_s3 + $0x468] sm:$0xff] %v3877_v9  ;;  %v3003_v16 = vadd.f32 %v3002_v14, %v1529_v13  ;;  %v3004_v18 = vpop.f32.mrb[142].mxu0  ;;  %v1533_v22 = vpop.f32.mrb[143].mxu1 }
 0x231   :  { %v3366_v20 = vadd.f32 %v6659_v2, %v3001_v12  ;;  %v3005_v21 = vadd.f32 %v3004_v18, %v1531_v17  ;;  %v3006_v23 = vpop.f32.mrb[143].mxu0 }
 0x232   :  { %v3750_v24 = vadd.f32 %v6659_v2, %v3003_v16  ;;  %v3007_v25 = vadd.f32 %v3006_v23, %v1533_v22  ;;  %1796 = vmatmul.mubr.bf16.gmra.mrb[248].mxu1 %v5225_v15 }
 0x233   :  { %v3494_v26 = vmax.f32 %v3366_v20, 0.0  ;;  %v3367_v27 = vadd.f32 %v6659_v2, %v3005_v21  ;;  %3269 = vmatmul.mubr.bf16.gmra.mrb[248].mxu0 %v6617_v34  ;;  %1805 = vmatprep.mubr.bf16.mxu1 %v5226_v19 }
 0x234   :  { %v3878_v28 = vmax.f32 %v3750_v24, 0.0  ;;  %v3751_v29 = vadd.f32 %v6659_v2, %v3007_v25  ;;  %3278 = vmatprep.mubr.bf16.mxu0 %v6625_v38 }
 0x235   :  { %3622 = vst [vmem:[%s7163_s3 + $0x450] sm:$0xff] %v3494_v26  ;;  %v3495_v30 = vmax.f32 %v3367_v27, 0.0  ;;  %v1537_v32 = vpop.f32.mrb[144].mxu1 }
 0x236   :  { %4621 = vst [vmem:[%s7163_s3 + $0x470] sm:$0xff] %v3878_v28  ;;  %v3879_v31 = vmax.f32 %v3751_v29, 0.0  ;;  %v3010_v33 = vpop.f32.mrb[144].mxu0  ;;  %v1539_v35 = vpop.f32.mrb[145].mxu1 }
 0x237   :  { %3623 = vst [vmem:[%s7163_s3 + $0x458] sm:$0xff] %v3495_v30  ;;  %v3011_v34 = vadd.f32 %v3010_v33, %v1537_v32  ;;  %v3012_v36 = vpop.f32.mrb[145].mxu0  ;;  %v1541_v39 = vpop.f32.mrb[146].mxu1 }
 0x238   :  { %4622 = vst [vmem:[%s7163_s3 + $0x478] sm:$0xff] %v3879_v31  ;;  %v3013_v38 = vadd.f32 %v3012_v36, %v1539_v35  ;;  %v3014_v40 = vpop.f32.mrb[146].mxu0  ;;  %v1543_v43 = vpop.f32.mrb[147].mxu1 }
 0x239   :  { %v3368_v41 = vadd.f32 %v6659_v2, %v3011_v34  ;;  %v3015_v42 = vadd.f32 %v3014_v40, %v1541_v39  ;;  %v3016_v44 = vpop.f32.mrb[147].mxu0 }
 0x23a   :  { %v3752_v45 = vadd.f32 %v6659_v2, %v3013_v38  ;;  %v3017_v46 = vadd.f32 %v3016_v44, %v1543_v43  ;;  %1806 = vmatmul.mubr.bf16.gmra.mrb[252].mxu1 %v5228_v37 }
 0x23b   :  { %v3496_v47 = vmax.f32 %v3368_v41, 0.0  ;;  %v3369_v48 = vadd.f32 %v6659_v2, %v3015_v42  ;;  %3279 = vmatmul.mubr.bf16.gmra.mrb[252].mxu0 %v6647_v56 }
 0x23c   :  { %v3880_v49 = vmax.f32 %v3752_v45, 0.0  ;;  %v3753_v50 = vadd.f32 %v6659_v2, %v3017_v46 }
 0x23d   :  { %3624 = vst [vmem:[%s7163_s3 + $0x480] sm:$0xff] %v3496_v47  ;;  %v3497_v51 = vmax.f32 %v3369_v48, 0.0  ;;  %v1547_v53 = vpop.f32.mrb[148].mxu1 }
 0x23e   :  { %4623 = vst [vmem:[%s7163_s3 + $0x4a0] sm:$0xff] %v3880_v49  ;;  %v3881_v52 = vmax.f32 %v3753_v50, 0.0  ;;  %v3020_v54 = vpop.f32.mrb[148].mxu0  ;;  %v1549_v56 = vpop.f32.mrb[149].mxu1 }
 0x23f   :  { %3625 = vst [vmem:[%s7163_s3 + $0x488] sm:$0xff] %v3497_v51  ;;  %v3021_v55 = vadd.f32 %v3020_v54, %v1547_v53  ;;  %v3022_v61 = vpop.f32.mrb[149].mxu0  ;;  %v1551_v58 = vpop.f32.mrb[150].mxu1 }
 0x240   :  { %4624 = vst [vmem:[%s7163_s3 + $0x4a8] sm:$0xff] %v3881_v52  ;;  %v3023_v57 = vadd.f32 %v3022_v61, %v1549_v56  ;;  %v3024_v59 = vpop.f32.mrb[150].mxu0  ;;  %v1553_v63 = vpop.f32.mrb[151].mxu1 }
 0x241   :  { %v3370_v60 = vadd.f32 %v6659_v2, %v3021_v55  ;;  %v3025_v62 = vadd.f32 %v3024_v59, %v1551_v58  ;;  %v3026_v0 = vpop.f32.mrb[151].mxu0 }
 0x242   :  { %v3754_v3 = vadd.f32 %v6659_v2, %v3023_v57  ;;  %v3027_v4 = vadd.f32 %v3026_v0, %v1553_v63 }
 0x243   :  { %v3498_v5 = vmax.f32 %v3370_v60, 0.0  ;;  %v3371_v6 = vadd.f32 %v6659_v2, %v3025_v62 }
 0x244   :  { %v3882_v7 = vmax.f32 %v3754_v3, 0.0  ;;  %v3755_v1 = vadd.f32 %v6659_v2, %v3027_v4 }
 0x245   :  { %3626 = vst [vmem:[%s7163_s3 + $0x490] sm:$0xff] %v3498_v5  ;;  %v3499_v8 = vmax.f32 %v3371_v6, 0.0  ;;  %v1557_v10 = vpop.f32.mrb[152].mxu1 }
 0x246   :  { %4625 = vst [vmem:[%s7163_s3 + $0x4b0] sm:$0xff] %v3882_v7  ;;  %v3883_v9 = vmax.f32 %v3755_v1, 0.0  ;;  %v3030_v11 = vpop.f32.mrb[152].mxu0  ;;  %v1559_v13 = vpop.f32.mrb[153].mxu1 }
 0x247   :  { %3627 = vst [vmem:[%s7163_s3 + $0x498] sm:$0xff] %v3499_v8  ;;  %v3031_v12 = vadd.f32 %v3030_v11, %v1557_v10  ;;  %v3032_v14 = vpop.f32.mrb[153].mxu0  ;;  %v1561_v16 = vpop.f32.mrb[154].mxu1 }
 0x248   :  { %4626 = vst [vmem:[%s7163_s3 + $0x4b8] sm:$0xff] %v3883_v9  ;;  %v3033_v15 = vadd.f32 %v3032_v14, %v1559_v13  ;;  %v3034_v17 = vpop.f32.mrb[154].mxu0  ;;  %v1563_v20 = vpop.f32.mrb[155].mxu1 }
 0x249   :  { %v3372_v18 = vadd.f32 %v6659_v2, %v3031_v12  ;;  %v3035_v19 = vadd.f32 %v3034_v17, %v1561_v16  ;;  %v3036_v21 = vpop.f32.mrb[155].mxu0 }
 0x24a   :  { %v3756_v22 = vadd.f32 %v6659_v2, %v3033_v15  ;;  %v3037_v23 = vadd.f32 %v3036_v21, %v1563_v20 }
 0x24b   :  { %v3500_v24 = vmax.f32 %v3372_v18, 0.0  ;;  %v3373_v25 = vadd.f32 %v6659_v2, %v3035_v19 }
 0x24c   :  { %v3884_v26 = vmax.f32 %v3756_v22, 0.0  ;;  %v3757_v27 = vadd.f32 %v6659_v2, %v3037_v23 }
 0x24d   :  { %3628 = vst [vmem:[%s7163_s3 + $0x4c0] sm:$0xff] %v3500_v24  ;;  %v3501_v28 = vmax.f32 %v3373_v25, 0.0  ;;  %v1567_v30 = vpop.f32.mrb[156].mxu1 }
 0x24e   :  { %4627 = vst [vmem:[%s7163_s3 + $0x4e0] sm:$0xff] %v3884_v26  ;;  %v3885_v29 = vmax.f32 %v3757_v27, 0.0  ;;  %v3040_v31 = vpop.f32.mrb[156].mxu0  ;;  %v1569_v33 = vpop.f32.mrb[157].mxu1 }
 0x24f   :  { %3629 = vst [vmem:[%s7163_s3 + $0x4c8] sm:$0xff] %v3501_v28  ;;  %v3041_v32 = vadd.f32 %v3040_v31, %v1567_v30  ;;  %v3042_v34 = vpop.f32.mrb[157].mxu0  ;;  %v1571_v36 = vpop.f32.mrb[158].mxu1 }
 0x250   :  { %4628 = vst [vmem:[%s7163_s3 + $0x4e8] sm:$0xff] %v3885_v29  ;;  %v3043_v35 = vadd.f32 %v3042_v34, %v1569_v33  ;;  %v3044_v37 = vpop.f32.mrb[158].mxu0  ;;  %v1573_v40 = vpop.f32.mrb[159].mxu1 }
 0x251   :  { %v3374_v38 = vadd.f32 %v6659_v2, %v3041_v32  ;;  %v3045_v39 = vadd.f32 %v3044_v37, %v1571_v36  ;;  %v3046_v41 = vpop.f32.mrb[159].mxu0 }
 0x252   :  { %v3758_v42 = vadd.f32 %v6659_v2, %v3043_v35  ;;  %v3047_v43 = vadd.f32 %v3046_v41, %v1573_v40 }
 0x253   :  { %v3502_v44 = vmax.f32 %v3374_v38, 0.0  ;;  %v3375_v45 = vadd.f32 %v6659_v2, %v3045_v39 }
 0x254   :  { %v3886_v46 = vmax.f32 %v3758_v42, 0.0  ;;  %v3759_v47 = vadd.f32 %v6659_v2, %v3047_v43 }
 0x255   :  { %3630 = vst [vmem:[%s7163_s3 + $0x4d0] sm:$0xff] %v3502_v44  ;;  %v3503_v48 = vmax.f32 %v3375_v45, 0.0  ;;  %v1577_v50 = vpop.f32.mrb[160].mxu1 }
 0x256   :  { %4629 = vst [vmem:[%s7163_s3 + $0x4f0] sm:$0xff] %v3886_v46  ;;  %v3887_v49 = vmax.f32 %v3759_v47, 0.0  ;;  %v3050_v51 = vpop.f32.mrb[160].mxu0  ;;  %v1579_v53 = vpop.f32.mrb[161].mxu1 }
 0x257   :  { %3631 = vst [vmem:[%s7163_s3 + $0x4d8] sm:$0xff] %v3503_v48  ;;  %v3051_v52 = vadd.f32 %v3050_v51, %v1577_v50  ;;  %v3052_v54 = vpop.f32.mrb[161].mxu0  ;;  %v1581_v56 = vpop.f32.mrb[162].mxu1 }
 0x258   :  { %4630 = vst [vmem:[%s7163_s3 + $0x4f8] sm:$0xff] %v3887_v49  ;;  %v3053_v55 = vadd.f32 %v3052_v54, %v1579_v53  ;;  %v3054_v61 = vpop.f32.mrb[162].mxu0  ;;  %v1583_v59 = vpop.f32.mrb[163].mxu1 }
 0x259   :  { %v3376_v57 = vadd.f32 %v6659_v2, %v3051_v52  ;;  %v3055_v58 = vadd.f32 %v3054_v61, %v1581_v56  ;;  %v3056_v60 = vpop.f32.mrb[163].mxu0 }
 0x25a   :  { %v3760_v62 = vadd.f32 %v6659_v2, %v3053_v55  ;;  %v3057_v63 = vadd.f32 %v3056_v60, %v1583_v59 }
 0x25b   :  { %v3504_v0 = vmax.f32 %v3376_v57, 0.0  ;;  %v3377_v3 = vadd.f32 %v6659_v2, %v3055_v58 }
 0x25c   :  { %v3888_v4 = vmax.f32 %v3760_v62, 0.0  ;;  %v3761_v5 = vadd.f32 %v6659_v2, %v3057_v63 }
 0x25d   :  { %3632 = vst [vmem:[%s7163_s3 + $0x500] sm:$0xff] %v3504_v0  ;;  %v3505_v6 = vmax.f32 %v3377_v3, 0.0  ;;  %v1587_v1 = vpop.f32.mrb[164].mxu1 }
 0x25e   :  { %4631 = vst [vmem:[%s7163_s3 + $0x520] sm:$0xff] %v3888_v4  ;;  %v3889_v7 = vmax.f32 %v3761_v5, 0.0  ;;  %v3060_v8 = vpop.f32.mrb[164].mxu0  ;;  %v1589_v10 = vpop.f32.mrb[165].mxu1 }
 0x25f   :  { %3633 = vst [vmem:[%s7163_s3 + $0x508] sm:$0xff] %v3505_v6  ;;  %v3061_v9 = vadd.f32 %v3060_v8, %v1587_v1  ;;  %v3062_v11 = vpop.f32.mrb[165].mxu0  ;;  %v1591_v13 = vpop.f32.mrb[166].mxu1 }
 0x260   :  { %4632 = vst [vmem:[%s7163_s3 + $0x528] sm:$0xff] %v3889_v7  ;;  %v3063_v12 = vadd.f32 %v3062_v11, %v1589_v10  ;;  %v3064_v14 = vpop.f32.mrb[166].mxu0  ;;  %v1593_v17 = vpop.f32.mrb[167].mxu1 }
 0x261   :  { %v3378_v15 = vadd.f32 %v6659_v2, %v3061_v9  ;;  %v3065_v16 = vadd.f32 %v3064_v14, %v1591_v13  ;;  %v3066_v18 = vpop.f32.mrb[167].mxu0 }
 0x262   :  { %v3762_v19 = vadd.f32 %v6659_v2, %v3063_v12  ;;  %v3067_v20 = vadd.f32 %v3066_v18, %v1593_v17 }
 0x263   :  { %v3506_v21 = vmax.f32 %v3378_v15, 0.0  ;;  %v3379_v22 = vadd.f32 %v6659_v2, %v3065_v16 }
 0x264   :  { %v3890_v23 = vmax.f32 %v3762_v19, 0.0  ;;  %v3763_v24 = vadd.f32 %v6659_v2, %v3067_v20 }
 0x265   :  { %3634 = vst [vmem:[%s7163_s3 + $0x510] sm:$0xff] %v3506_v21  ;;  %v3507_v25 = vmax.f32 %v3379_v22, 0.0  ;;  %v1597_v27 = vpop.f32.mrb[168].mxu1 }
 0x266   :  { %4633 = vst [vmem:[%s7163_s3 + $0x530] sm:$0xff] %v3890_v23  ;;  %v3891_v26 = vmax.f32 %v3763_v24, 0.0  ;;  %v3070_v28 = vpop.f32.mrb[168].mxu0  ;;  %v1599_v30 = vpop.f32.mrb[169].mxu1 }
 0x267   :  { %3635 = vst [vmem:[%s7163_s3 + $0x518] sm:$0xff] %v3507_v25  ;;  %v3071_v29 = vadd.f32 %v3070_v28, %v1597_v27  ;;  %v3072_v31 = vpop.f32.mrb[169].mxu0  ;;  %v1601_v33 = vpop.f32.mrb[170].mxu1 }
 0x268   :  { %4634 = vst [vmem:[%s7163_s3 + $0x538] sm:$0xff] %v3891_v26  ;;  %v3073_v32 = vadd.f32 %v3072_v31, %v1599_v30  ;;  %v3074_v34 = vpop.f32.mrb[170].mxu0  ;;  %v1603_v37 = vpop.f32.mrb[171].mxu1 }
 0x269   :  { %v3380_v35 = vadd.f32 %v6659_v2, %v3071_v29  ;;  %v3075_v36 = vadd.f32 %v3074_v34, %v1601_v33  ;;  %v3076_v38 = vpop.f32.mrb[171].mxu0 }
 0x26a   :  { %v3764_v39 = vadd.f32 %v6659_v2, %v3073_v32  ;;  %v3077_v40 = vadd.f32 %v3076_v38, %v1603_v37 }
 0x26b   :  { %v3508_v41 = vmax.f32 %v3380_v35, 0.0  ;;  %v3381_v42 = vadd.f32 %v6659_v2, %v3075_v36 }
 0x26c   :  { %v3892_v43 = vmax.f32 %v3764_v39, 0.0  ;;  %v3765_v44 = vadd.f32 %v6659_v2, %v3077_v40 }
 0x26d   :  { %3636 = vst [vmem:[%s7163_s3 + $0x540] sm:$0xff] %v3508_v41  ;;  %v3509_v45 = vmax.f32 %v3381_v42, 0.0  ;;  %v1607_v47 = vpop.f32.mrb[172].mxu1 }
 0x26e   :  { %4635 = vst [vmem:[%s7163_s3 + $0x560] sm:$0xff] %v3892_v43  ;;  %v3893_v46 = vmax.f32 %v3765_v44, 0.0  ;;  %v3080_v48 = vpop.f32.mrb[172].mxu0  ;;  %v1609_v50 = vpop.f32.mrb[173].mxu1 }
 0x26f   :  { %3637 = vst [vmem:[%s7163_s3 + $0x548] sm:$0xff] %v3509_v45  ;;  %v3081_v49 = vadd.f32 %v3080_v48, %v1607_v47  ;;  %v3082_v51 = vpop.f32.mrb[173].mxu0  ;;  %v1611_v53 = vpop.f32.mrb[174].mxu1 }
 0x270   :  { %4636 = vst [vmem:[%s7163_s3 + $0x568] sm:$0xff] %v3893_v46  ;;  %v3083_v52 = vadd.f32 %v3082_v51, %v1609_v50  ;;  %v3084_v54 = vpop.f32.mrb[174].mxu0  ;;  %v1613_v61 = vpop.f32.mrb[175].mxu1 }
 0x271   :  { %v3382_v55 = vadd.f32 %v6659_v2, %v3081_v49  ;;  %v3085_v56 = vadd.f32 %v3084_v54, %v1611_v53  ;;  %v3086_v57 = vpop.f32.mrb[175].mxu0 }
 0x272   :  { %v3766_v58 = vadd.f32 %v6659_v2, %v3083_v52  ;;  %v3087_v59 = vadd.f32 %v3086_v57, %v1613_v61 }
 0x273   :  { %v3510_v60 = vmax.f32 %v3382_v55, 0.0  ;;  %v3383_v62 = vadd.f32 %v6659_v2, %v3085_v56 }
 0x274   :  { %v3894_v63 = vmax.f32 %v3766_v58, 0.0  ;;  %v3767_v0 = vadd.f32 %v6659_v2, %v3087_v59 }
 0x275   :  { %3638 = vst [vmem:[%s7163_s3 + $0x550] sm:$0xff] %v3510_v60  ;;  %v3511_v3 = vmax.f32 %v3383_v62, 0.0  ;;  %v1617_v5 = vpop.f32.mrb[176].mxu1 }
 0x276   :  { %4637 = vst [vmem:[%s7163_s3 + $0x570] sm:$0xff] %v3894_v63  ;;  %v3895_v4 = vmax.f32 %v3767_v0, 0.0  ;;  %v3090_v6 = vpop.f32.mrb[176].mxu0  ;;  %v1619_v1 = vpop.f32.mrb[177].mxu1 }
 0x277   :  { %3639 = vst [vmem:[%s7163_s3 + $0x558] sm:$0xff] %v3511_v3  ;;  %v3091_v7 = vadd.f32 %v3090_v6, %v1617_v5  ;;  %v3092_v8 = vpop.f32.mrb[177].mxu0  ;;  %v1621_v10 = vpop.f32.mrb[178].mxu1 }
 0x278   :  { %4638 = vst [vmem:[%s7163_s3 + $0x578] sm:$0xff] %v3895_v4  ;;  %v3093_v9 = vadd.f32 %v3092_v8, %v1619_v1  ;;  %v3094_v11 = vpop.f32.mrb[178].mxu0  ;;  %v1623_v14 = vpop.f32.mrb[179].mxu1 }
 0x279   :  { %v3384_v12 = vadd.f32 %v6659_v2, %v3091_v7  ;;  %v3095_v13 = vadd.f32 %v3094_v11, %v1621_v10  ;;  %v3096_v15 = vpop.f32.mrb[179].mxu0 }
 0x27a   :  { %v3768_v16 = vadd.f32 %v6659_v2, %v3093_v9  ;;  %v3097_v17 = vadd.f32 %v3096_v15, %v1623_v14 }
 0x27b   :  { %v3512_v18 = vmax.f32 %v3384_v12, 0.0  ;;  %v3385_v19 = vadd.f32 %v6659_v2, %v3095_v13 }
 0x27c   :  { %v3896_v20 = vmax.f32 %v3768_v16, 0.0  ;;  %v3769_v21 = vadd.f32 %v6659_v2, %v3097_v17 }
 0x27d   :  { %3640 = vst [vmem:[%s7163_s3 + $0x580] sm:$0xff] %v3512_v18  ;;  %v3513_v22 = vmax.f32 %v3385_v19, 0.0  ;;  %v1627_v24 = vpop.f32.mrb[180].mxu1 }
 0x27e   :  { %4639 = vst [vmem:[%s7163_s3 + $0x5a0] sm:$0xff] %v3896_v20  ;;  %v3897_v23 = vmax.f32 %v3769_v21, 0.0  ;;  %v3100_v25 = vpop.f32.mrb[180].mxu0  ;;  %v1629_v27 = vpop.f32.mrb[181].mxu1 }
 0x27f   :  { %3641 = vst [vmem:[%s7163_s3 + $0x588] sm:$0xff] %v3513_v22  ;;  %v3101_v26 = vadd.f32 %v3100_v25, %v1627_v24  ;;  %v3102_v28 = vpop.f32.mrb[181].mxu0  ;;  %v1631_v30 = vpop.f32.mrb[182].mxu1 }
 0x280   :  { %4640 = vst [vmem:[%s7163_s3 + $0x5a8] sm:$0xff] %v3897_v23  ;;  %v3103_v29 = vadd.f32 %v3102_v28, %v1629_v27  ;;  %v3104_v31 = vpop.f32.mrb[182].mxu0  ;;  %v1633_v34 = vpop.f32.mrb[183].mxu1 }
 0x281   :  { %v3386_v32 = vadd.f32 %v6659_v2, %v3101_v26  ;;  %v3105_v33 = vadd.f32 %v3104_v31, %v1631_v30  ;;  %v3106_v35 = vpop.f32.mrb[183].mxu0 }
 0x282   :  { %v3770_v36 = vadd.f32 %v6659_v2, %v3103_v29  ;;  %v3107_v37 = vadd.f32 %v3106_v35, %v1633_v34 }
 0x283   :  { %v3514_v38 = vmax.f32 %v3386_v32, 0.0  ;;  %v3387_v39 = vadd.f32 %v6659_v2, %v3105_v33 }
 0x284   :  { %v3898_v40 = vmax.f32 %v3770_v36, 0.0  ;;  %v3771_v41 = vadd.f32 %v6659_v2, %v3107_v37 }
 0x285   :  { %3642 = vst [vmem:[%s7163_s3 + $0x590] sm:$0xff] %v3514_v38  ;;  %v3515_v42 = vmax.f32 %v3387_v39, 0.0  ;;  %v1637_v44 = vpop.f32.mrb[184].mxu1 }
 0x286   :  { %4641 = vst [vmem:[%s7163_s3 + $0x5b0] sm:$0xff] %v3898_v40  ;;  %v3899_v43 = vmax.f32 %v3771_v41, 0.0  ;;  %v3110_v45 = vpop.f32.mrb[184].mxu0  ;;  %v1639_v47 = vpop.f32.mrb[185].mxu1 }
 0x287   :  { %3643 = vst [vmem:[%s7163_s3 + $0x598] sm:$0xff] %v3515_v42  ;;  %v3111_v46 = vadd.f32 %v3110_v45, %v1637_v44  ;;  %v3112_v48 = vpop.f32.mrb[185].mxu0  ;;  %v1641_v50 = vpop.f32.mrb[186].mxu1 }
 0x288   :  { %4642 = vst [vmem:[%s7163_s3 + $0x5b8] sm:$0xff] %v3899_v43  ;;  %v3113_v49 = vadd.f32 %v3112_v48, %v1639_v47  ;;  %v3114_v51 = vpop.f32.mrb[186].mxu0  ;;  %v1643_v54 = vpop.f32.mrb[187].mxu1 }
 0x289   :  { %v3388_v52 = vadd.f32 %v6659_v2, %v3111_v46  ;;  %v3115_v53 = vadd.f32 %v3114_v51, %v1641_v50  ;;  %v3116_v55 = vpop.f32.mrb[187].mxu0 }
 0x28a   :  { %v3772_v56 = vadd.f32 %v6659_v2, %v3113_v49  ;;  %v3117_v61 = vadd.f32 %v3116_v55, %v1643_v54 }
 0x28b   :  { %v3516_v57 = vmax.f32 %v3388_v52, 0.0  ;;  %v3389_v58 = vadd.f32 %v6659_v2, %v3115_v53 }
 0x28c   :  { %v3900_v59 = vmax.f32 %v3772_v56, 0.0  ;;  %v3773_v60 = vadd.f32 %v6659_v2, %v3117_v61 }
 0x28d   :  { %3644 = vst [vmem:[%s7163_s3 + $0x5c0] sm:$0xff] %v3516_v57  ;;  %v3517_v62 = vmax.f32 %v3389_v58, 0.0  ;;  %v1647_v0 = vpop.f32.mrb[188].mxu1 }
 0x28e   :  { %4643 = vst [vmem:[%s7163_s3 + $0x5e0] sm:$0xff] %v3900_v59  ;;  %v3901_v63 = vmax.f32 %v3773_v60, 0.0  ;;  %v3120_v3 = vpop.f32.mrb[188].mxu0  ;;  %v1649_v5 = vpop.f32.mrb[189].mxu1 }
 0x28f   :  { %3645 = vst [vmem:[%s7163_s3 + $0x5c8] sm:$0xff] %v3517_v62  ;;  %v3121_v4 = vadd.f32 %v3120_v3, %v1647_v0  ;;  %v3122_v6 = vpop.f32.mrb[189].mxu0  ;;  %v1651_v1 = vpop.f32.mrb[190].mxu1 }
 0x290   :  { %4644 = vst [vmem:[%s7163_s3 + $0x5e8] sm:$0xff] %v3901_v63  ;;  %v3123_v7 = vadd.f32 %v3122_v6, %v1649_v5  ;;  %v3124_v8 = vpop.f32.mrb[190].mxu0  ;;  %v1653_v11 = vpop.f32.mrb[191].mxu1 }
 0x291   :  { %v3390_v9 = vadd.f32 %v6659_v2, %v3121_v4  ;;  %v3125_v10 = vadd.f32 %v3124_v8, %v1651_v1  ;;  %v3126_v12 = vpop.f32.mrb[191].mxu0 }
 0x292   :  { %v3774_v13 = vadd.f32 %v6659_v2, %v3123_v7  ;;  %v3127_v14 = vadd.f32 %v3126_v12, %v1653_v11 }
 0x293   :  { %v3518_v15 = vmax.f32 %v3390_v9, 0.0  ;;  %v3391_v16 = vadd.f32 %v6659_v2, %v3125_v10 }
 0x294   :  { %v3902_v17 = vmax.f32 %v3774_v13, 0.0  ;;  %v3775_v18 = vadd.f32 %v6659_v2, %v3127_v14 }
 0x295   :  { %3646 = vst [vmem:[%s7163_s3 + $0x5d0] sm:$0xff] %v3518_v15  ;;  %v3519_v19 = vmax.f32 %v3391_v16, 0.0  ;;  %v1657_v21 = vpop.f32.mrb[192].mxu1 }
 0x296   :  { %4645 = vst [vmem:[%s7163_s3 + $0x5f0] sm:$0xff] %v3902_v17  ;;  %v3903_v20 = vmax.f32 %v3775_v18, 0.0  ;;  %v3130_v22 = vpop.f32.mrb[192].mxu0  ;;  %v1659_v24 = vpop.f32.mrb[193].mxu1 }
 0x297   :  { %3647 = vst [vmem:[%s7163_s3 + $0x5d8] sm:$0xff] %v3519_v19  ;;  %v3131_v23 = vadd.f32 %v3130_v22, %v1657_v21  ;;  %v3132_v25 = vpop.f32.mrb[193].mxu0  ;;  %v1661_v27 = vpop.f32.mrb[194].mxu1 }
 0x298   :  { %4646 = vst [vmem:[%s7163_s3 + $0x5f8] sm:$0xff] %v3903_v20  ;;  %v3133_v26 = vadd.f32 %v3132_v25, %v1659_v24  ;;  %v3134_v28 = vpop.f32.mrb[194].mxu0  ;;  %v1663_v31 = vpop.f32.mrb[195].mxu1 }
 0x299   :  { %v3392_v29 = vadd.f32 %v6659_v2, %v3131_v23  ;;  %v3135_v30 = vadd.f32 %v3134_v28, %v1661_v27  ;;  %v3136_v32 = vpop.f32.mrb[195].mxu0 }
 0x29a   :  { %v3776_v33 = vadd.f32 %v6659_v2, %v3133_v26  ;;  %v3137_v34 = vadd.f32 %v3136_v32, %v1663_v31 }
 0x29b   :  { %v3520_v35 = vmax.f32 %v3392_v29, 0.0  ;;  %v3393_v36 = vadd.f32 %v6659_v2, %v3135_v30 }
 0x29c   :  { %v3904_v37 = vmax.f32 %v3776_v33, 0.0  ;;  %v3777_v38 = vadd.f32 %v6659_v2, %v3137_v34 }
 0x29d   :  { %3648 = vst [vmem:[%s7163_s3 + $0x600] sm:$0xff] %v3520_v35  ;;  %v3521_v39 = vmax.f32 %v3393_v36, 0.0  ;;  %v1667_v41 = vpop.f32.mrb[196].mxu1 }
 0x29e   :  { %4647 = vst [vmem:[%s7163_s3 + $0x620] sm:$0xff] %v3904_v37  ;;  %v3905_v40 = vmax.f32 %v3777_v38, 0.0  ;;  %v3140_v42 = vpop.f32.mrb[196].mxu0  ;;  %v1669_v44 = vpop.f32.mrb[197].mxu1 }
 0x29f   :  { %3649 = vst [vmem:[%s7163_s3 + $0x608] sm:$0xff] %v3521_v39  ;;  %v3141_v43 = vadd.f32 %v3140_v42, %v1667_v41  ;;  %v3142_v45 = vpop.f32.mrb[197].mxu0  ;;  %v1671_v47 = vpop.f32.mrb[198].mxu1 }
 0x2a0   :  { %4648 = vst [vmem:[%s7163_s3 + $0x628] sm:$0xff] %v3905_v40  ;;  %v3143_v46 = vadd.f32 %v3142_v45, %v1669_v44  ;;  %v3144_v48 = vpop.f32.mrb[198].mxu0  ;;  %v1673_v51 = vpop.f32.mrb[199].mxu1 }
 0x2a1   :  { %v3394_v49 = vadd.f32 %v6659_v2, %v3141_v43  ;;  %v3145_v50 = vadd.f32 %v3144_v48, %v1671_v47  ;;  %v3146_v52 = vpop.f32.mrb[199].mxu0 }
 0x2a2   :  { %v3778_v53 = vadd.f32 %v6659_v2, %v3143_v46  ;;  %v3147_v54 = vadd.f32 %v3146_v52, %v1673_v51 }
 0x2a3   :  { %v3522_v55 = vmax.f32 %v3394_v49, 0.0  ;;  %v3395_v56 = vadd.f32 %v6659_v2, %v3145_v50 }
 0x2a4   :  { %v3906_v61 = vmax.f32 %v3778_v53, 0.0  ;;  %v3779_v57 = vadd.f32 %v6659_v2, %v3147_v54 }
 0x2a5   :  { %3650 = vst [vmem:[%s7163_s3 + $0x610] sm:$0xff] %v3522_v55  ;;  %v3523_v58 = vmax.f32 %v3395_v56, 0.0  ;;  %v1677_v60 = vpop.f32.mrb[200].mxu1 }
 0x2a6   :  { %4649 = vst [vmem:[%s7163_s3 + $0x630] sm:$0xff] %v3906_v61  ;;  %v3907_v59 = vmax.f32 %v3779_v57, 0.0  ;;  %v3150_v62 = vpop.f32.mrb[200].mxu0  ;;  %v1679_v0 = vpop.f32.mrb[201].mxu1 }
 0x2a7   :  { %3651 = vst [vmem:[%s7163_s3 + $0x618] sm:$0xff] %v3523_v58  ;;  %v3151_v63 = vadd.f32 %v3150_v62, %v1677_v60  ;;  %v3152_v3 = vpop.f32.mrb[201].mxu0  ;;  %v1681_v5 = vpop.f32.mrb[202].mxu1 }
 0x2a8   :  { %4650 = vst [vmem:[%s7163_s3 + $0x638] sm:$0xff] %v3907_v59  ;;  %v3153_v4 = vadd.f32 %v3152_v3, %v1679_v0  ;;  %v3154_v6 = vpop.f32.mrb[202].mxu0  ;;  %v1683_v8 = vpop.f32.mrb[203].mxu1 }
 0x2a9   :  { %v3396_v7 = vadd.f32 %v6659_v2, %v3151_v63  ;;  %v3155_v1 = vadd.f32 %v3154_v6, %v1681_v5  ;;  %v3156_v9 = vpop.f32.mrb[203].mxu0 }
 0x2aa   :  { %v3780_v10 = vadd.f32 %v6659_v2, %v3153_v4  ;;  %v3157_v11 = vadd.f32 %v3156_v9, %v1683_v8 }
 0x2ab   :  { %v3524_v12 = vmax.f32 %v3396_v7, 0.0  ;;  %v3397_v13 = vadd.f32 %v6659_v2, %v3155_v1 }
 0x2ac   :  { %v3908_v14 = vmax.f32 %v3780_v10, 0.0  ;;  %v3781_v15 = vadd.f32 %v6659_v2, %v3157_v11 }
 0x2ad   :  { %3652 = vst [vmem:[%s7163_s3 + $0x640] sm:$0xff] %v3524_v12  ;;  %v3525_v16 = vmax.f32 %v3397_v13, 0.0  ;;  %v1687_v18 = vpop.f32.mrb[204].mxu1 }
 0x2ae   :  { %4651 = vst [vmem:[%s7163_s3 + $0x660] sm:$0xff] %v3908_v14  ;;  %v3909_v17 = vmax.f32 %v3781_v15, 0.0  ;;  %v3160_v19 = vpop.f32.mrb[204].mxu0  ;;  %v1689_v21 = vpop.f32.mrb[205].mxu1 }
 0x2af   :  { %3653 = vst [vmem:[%s7163_s3 + $0x648] sm:$0xff] %v3525_v16  ;;  %v3161_v20 = vadd.f32 %v3160_v19, %v1687_v18  ;;  %v3162_v22 = vpop.f32.mrb[205].mxu0  ;;  %v1691_v24 = vpop.f32.mrb[206].mxu1 }
 0x2b0   :  { %4652 = vst [vmem:[%s7163_s3 + $0x668] sm:$0xff] %v3909_v17  ;;  %v3163_v23 = vadd.f32 %v3162_v22, %v1689_v21  ;;  %v3164_v25 = vpop.f32.mrb[206].mxu0  ;;  %v1693_v28 = vpop.f32.mrb[207].mxu1 }
 0x2b1   :  { %v3398_v26 = vadd.f32 %v6659_v2, %v3161_v20  ;;  %v3165_v27 = vadd.f32 %v3164_v25, %v1691_v24  ;;  %v3166_v29 = vpop.f32.mrb[207].mxu0 }
 0x2b2   :  { %v3782_v30 = vadd.f32 %v6659_v2, %v3163_v23  ;;  %v3167_v31 = vadd.f32 %v3166_v29, %v1693_v28 }
 0x2b3   :  { %v3526_v32 = vmax.f32 %v3398_v26, 0.0  ;;  %v3399_v33 = vadd.f32 %v6659_v2, %v3165_v27 }
 0x2b4   :  { %v3910_v34 = vmax.f32 %v3782_v30, 0.0  ;;  %v3783_v35 = vadd.f32 %v6659_v2, %v3167_v31 }
 0x2b5   :  { %3654 = vst [vmem:[%s7163_s3 + $0x650] sm:$0xff] %v3526_v32  ;;  %v3527_v36 = vmax.f32 %v3399_v33, 0.0  ;;  %v1697_v38 = vpop.f32.mrb[208].mxu1 }
 0x2b6   :  { %4653 = vst [vmem:[%s7163_s3 + $0x670] sm:$0xff] %v3910_v34  ;;  %v3911_v37 = vmax.f32 %v3783_v35, 0.0  ;;  %v3170_v39 = vpop.f32.mrb[208].mxu0  ;;  %v1699_v41 = vpop.f32.mrb[209].mxu1 }
 0x2b7   :  { %3655 = vst [vmem:[%s7163_s3 + $0x658] sm:$0xff] %v3527_v36  ;;  %v3171_v40 = vadd.f32 %v3170_v39, %v1697_v38  ;;  %v3172_v42 = vpop.f32.mrb[209].mxu0  ;;  %v1701_v44 = vpop.f32.mrb[210].mxu1 }
 0x2b8   :  { %4654 = vst [vmem:[%s7163_s3 + $0x678] sm:$0xff] %v3911_v37  ;;  %v3173_v43 = vadd.f32 %v3172_v42, %v1699_v41  ;;  %v3174_v45 = vpop.f32.mrb[210].mxu0  ;;  %v1703_v48 = vpop.f32.mrb[211].mxu1  ;;  %v7014_v42 = vld [vmem:[%s7162_s2] ss:$0 sm:$0xff] }
 0x2b9   :  { %v3400_v46 = vadd.f32 %v6659_v2, %v3171_v40  ;;  %v3175_v47 = vadd.f32 %v3174_v45, %v1701_v44  ;;  %v3176_v49 = vpop.f32.mrb[211].mxu0 }
 0x2ba   :  { %v3784_v50 = vadd.f32 %v6659_v2, %v3173_v43  ;;  %v3177_v51 = vadd.f32 %v3176_v49, %v1703_v48 }
 0x2bb   :  { %v3528_v52 = vmax.f32 %v3400_v46, 0.0  ;;  %v3401_v53 = vadd.f32 %v6659_v2, %v3175_v47 }
 0x2bc   :  { %v3912_v54 = vmax.f32 %v3784_v50, 0.0  ;;  %v3785_v55 = vadd.f32 %v6659_v2, %v3177_v51 }
 0x2bd   :  { %3656 = vst [vmem:[%s7163_s3 + $0x680] sm:$0xff] %v3528_v52  ;;  %v3529_v56 = vmax.f32 %v3401_v53, 0.0  ;;  %v1707_v57 = vpop.f32.mrb[212].mxu1 }
 0x2be   :  { %4655 = vst [vmem:[%s7163_s3 + $0x6a0] sm:$0xff] %v3912_v54  ;;  %v3913_v61 = vmax.f32 %v3785_v55, 0.0  ;;  %v3180_v58 = vpop.f32.mrb[212].mxu0  ;;  %v1709_v60 = vpop.f32.mrb[213].mxu1 }
 0x2bf   :  { %3657 = vst [vmem:[%s7163_s3 + $0x688] sm:$0xff] %v3529_v56  ;;  %v3181_v59 = vadd.f32 %v3180_v58, %v1707_v57  ;;  %v3182_v62 = vpop.f32.mrb[213].mxu0  ;;  %v1711_v0 = vpop.f32.mrb[214].mxu1 }
 0x2c0   :  { %4656 = vst [vmem:[%s7163_s3 + $0x6a8] sm:$0xff] %v3913_v61  ;;  %v3183_v63 = vadd.f32 %v3182_v62, %v1709_v60  ;;  %v3184_v3 = vpop.f32.mrb[214].mxu0  ;;  %v1713_v6 = vpop.f32.mrb[215].mxu1 }
 0x2c1   :  { %v3402_v4 = vadd.f32 %v6659_v2, %v3181_v59  ;;  %v3185_v5 = vadd.f32 %v3184_v3, %v1711_v0  ;;  %v3186_v7 = vpop.f32.mrb[215].mxu0 }
 0x2c2   :  { %v3786_v1 = vadd.f32 %v6659_v2, %v3183_v63  ;;  %v3187_v8 = vadd.f32 %v3186_v7, %v1713_v6 }
 0x2c3   :  { %v3530_v9 = vmax.f32 %v3402_v4, 0.0  ;;  %v3403_v10 = vadd.f32 %v6659_v2, %v3185_v5 }
 0x2c4   :  { %v3914_v11 = vmax.f32 %v3786_v1, 0.0  ;;  %v3787_v12 = vadd.f32 %v6659_v2, %v3187_v8 }
 0x2c5   :  { %3658 = vst [vmem:[%s7163_s3 + $0x690] sm:$0xff] %v3530_v9  ;;  %v3531_v13 = vmax.f32 %v3403_v10, 0.0  ;;  %v1717_v15 = vpop.f32.mrb[216].mxu1 }
 0x2c6   :  { %4657 = vst [vmem:[%s7163_s3 + $0x6b0] sm:$0xff] %v3914_v11  ;;  %v3915_v14 = vmax.f32 %v3787_v12, 0.0  ;;  %v3190_v16 = vpop.f32.mrb[216].mxu0  ;;  %v1719_v18 = vpop.f32.mrb[217].mxu1 }
 0x2c7   :  { %3659 = vst [vmem:[%s7163_s3 + $0x698] sm:$0xff] %v3531_v13  ;;  %v3191_v17 = vadd.f32 %v3190_v16, %v1717_v15  ;;  %v3192_v19 = vpop.f32.mrb[217].mxu0  ;;  %v1721_v21 = vpop.f32.mrb[218].mxu1 }
 0x2c8   :  { %4658 = vst [vmem:[%s7163_s3 + $0x6b8] sm:$0xff] %v3915_v14  ;;  %v3193_v20 = vadd.f32 %v3192_v19, %v1719_v18  ;;  %v3194_v22 = vpop.f32.mrb[218].mxu0  ;;  %v1723_v25 = vpop.f32.mrb[219].mxu1 }
 0x2c9   :  { %v3404_v23 = vadd.f32 %v6659_v2, %v3191_v17  ;;  %v3195_v24 = vadd.f32 %v3194_v22, %v1721_v21  ;;  %v3196_v26 = vpop.f32.mrb[219].mxu0 }
 0x2ca   :  { %v3788_v27 = vadd.f32 %v6659_v2, %v3193_v20  ;;  %v3197_v28 = vadd.f32 %v3196_v26, %v1723_v25 }
 0x2cb   :  { %v3532_v29 = vmax.f32 %v3404_v23, 0.0  ;;  %v3405_v30 = vadd.f32 %v6659_v2, %v3195_v24 }
 0x2cc   :  { %v3916_v31 = vmax.f32 %v3788_v27, 0.0  ;;  %v3789_v32 = vadd.f32 %v6659_v2, %v3197_v28 }
 0x2cd   :  { %3660 = vst [vmem:[%s7163_s3 + $0x6c0] sm:$0xff] %v3532_v29  ;;  %v3533_v33 = vmax.f32 %v3405_v30, 0.0  ;;  %v1727_v35 = vpop.f32.mrb[220].mxu1 }
 0x2ce   :  { %4659 = vst [vmem:[%s7163_s3 + $0x6e0] sm:$0xff] %v3916_v31  ;;  %v3917_v34 = vmax.f32 %v3789_v32, 0.0  ;;  %v3200_v36 = vpop.f32.mrb[220].mxu0  ;;  %v1729_v38 = vpop.f32.mrb[221].mxu1 }
 0x2cf   :  { %3661 = vst [vmem:[%s7163_s3 + $0x6c8] sm:$0xff] %v3533_v33  ;;  %v3201_v37 = vadd.f32 %v3200_v36, %v1727_v35  ;;  %v3202_v39 = vpop.f32.mrb[221].mxu0  ;;  %v1731_v40 = vpop.f32.mrb[222].mxu1 }
 0x2d0   :  { %4660 = vst [vmem:[%s7163_s3 + $0x6e8] sm:$0xff] %v3917_v34  ;;  %v3203_v2 = vadd.f32 %v3202_v39, %v1729_v38  ;;  %v3204_v41 = vpop.f32.mrb[222].mxu0  ;;  %v1733_v45 = vpop.f32.mrb[223].mxu1 }
 0x2d1   :  { %v3406_v43 = vadd.f32 %v7014_v42, %v3201_v37  ;;  %v3205_v44 = vadd.f32 %v3204_v41, %v1731_v40  ;;  %v3206_v46 = vpop.f32.mrb[223].mxu0 }
 0x2d2   :  { %v3790_v47 = vadd.f32 %v7014_v42, %v3203_v2  ;;  %v3207_v48 = vadd.f32 %v3206_v46, %v1733_v45 }
 0x2d3   :  { %v3534_v49 = vmax.f32 %v3406_v43, 0.0  ;;  %v3407_v50 = vadd.f32 %v7014_v42, %v3205_v44 }
 0x2d4   :  { %v3918_v51 = vmax.f32 %v3790_v47, 0.0  ;;  %v3791_v52 = vadd.f32 %v7014_v42, %v3207_v48 }
 0x2d5   :  { %3662 = vst [vmem:[%s7163_s3 + $0x6d0] sm:$0xff] %v3534_v49  ;;  %v3535_v53 = vmax.f32 %v3407_v50, 0.0  ;;  %v1737_v55 = vpop.f32.mrb[224].mxu1 }
 0x2d6   :  { %4661 = vst [vmem:[%s7163_s3 + $0x6f0] sm:$0xff] %v3918_v51  ;;  %v3919_v54 = vmax.f32 %v3791_v52, 0.0  ;;  %v3210_v56 = vpop.f32.mrb[224].mxu0  ;;  %v1739_v57 = vpop.f32.mrb[225].mxu1 }
 0x2d7   :  { %3663 = vst [vmem:[%s7163_s3 + $0x6d8] sm:$0xff] %v3535_v53  ;;  %v3211_v61 = vadd.f32 %v3210_v56, %v1737_v55  ;;  %v3212_v58 = vpop.f32.mrb[225].mxu0  ;;  %v1741_v60 = vpop.f32.mrb[226].mxu1 }
 0x2d8   :  { %4662 = vst [vmem:[%s7163_s3 + $0x6f8] sm:$0xff] %v3919_v54  ;;  %v3213_v59 = vadd.f32 %v3212_v58, %v1739_v57  ;;  %v3214_v62 = vpop.f32.mrb[226].mxu0  ;;  %v1743_v3 = vpop.f32.mrb[227].mxu1 }
 0x2d9   :  { %v3408_v63 = vadd.f32 %v7014_v42, %v3211_v61  ;;  %v3215_v0 = vadd.f32 %v3214_v62, %v1741_v60  ;;  %v3216_v4 = vpop.f32.mrb[227].mxu0 }
 0x2da   :  { %v3792_v5 = vadd.f32 %v7014_v42, %v3213_v59  ;;  %v3217_v6 = vadd.f32 %v3216_v4, %v1743_v3 }
 0x2db   :  { %v3536_v7 = vmax.f32 %v3408_v63, 0.0  ;;  %v3409_v1 = vadd.f32 %v7014_v42, %v3215_v0 }
 0x2dc   :  { %v3920_v8 = vmax.f32 %v3792_v5, 0.0  ;;  %v3793_v9 = vadd.f32 %v7014_v42, %v3217_v6 }
 0x2dd   :  { %3664 = vst [vmem:[%s7163_s3 + $0x700] sm:$0xff] %v3536_v7  ;;  %v3537_v10 = vmax.f32 %v3409_v1, 0.0  ;;  %v1747_v12 = vpop.f32.mrb[228].mxu1 }
 0x2de   :  { %4663 = vst [vmem:[%s7163_s3 + $0x720] sm:$0xff] %v3920_v8  ;;  %v3921_v11 = vmax.f32 %v3793_v9, 0.0  ;;  %v3220_v13 = vpop.f32.mrb[228].mxu0  ;;  %v1749_v15 = vpop.f32.mrb[229].mxu1 }
 0x2df   :  { %3665 = vst [vmem:[%s7163_s3 + $0x708] sm:$0xff] %v3537_v10  ;;  %v3221_v14 = vadd.f32 %v3220_v13, %v1747_v12  ;;  %v3222_v16 = vpop.f32.mrb[229].mxu0  ;;  %v1751_v18 = vpop.f32.mrb[230].mxu1 }
 0x2e0   :  { %4664 = vst [vmem:[%s7163_s3 + $0x728] sm:$0xff] %v3921_v11  ;;  %v3223_v17 = vadd.f32 %v3222_v16, %v1749_v15  ;;  %v3224_v19 = vpop.f32.mrb[230].mxu0  ;;  %v1753_v22 = vpop.f32.mrb[231].mxu1 }
 0x2e1   :  { %v3410_v20 = vadd.f32 %v7014_v42, %v3221_v14  ;;  %v3225_v21 = vadd.f32 %v3224_v19, %v1751_v18  ;;  %v3226_v23 = vpop.f32.mrb[231].mxu0 }
 0x2e2   :  { %v3794_v24 = vadd.f32 %v7014_v42, %v3223_v17  ;;  %v3227_v25 = vadd.f32 %v3226_v23, %v1753_v22 }
 0x2e3   :  { %v3538_v26 = vmax.f32 %v3410_v20, 0.0  ;;  %v3411_v27 = vadd.f32 %v7014_v42, %v3225_v21 }
 0x2e4   :  { %v3922_v28 = vmax.f32 %v3794_v24, 0.0  ;;  %v3795_v29 = vadd.f32 %v7014_v42, %v3227_v25 }
 0x2e5   :  { %3666 = vst [vmem:[%s7163_s3 + $0x710] sm:$0xff] %v3538_v26  ;;  %v3539_v30 = vmax.f32 %v3411_v27, 0.0  ;;  %v1757_v32 = vpop.f32.mrb[232].mxu1 }
 0x2e6   :  { %4665 = vst [vmem:[%s7163_s3 + $0x730] sm:$0xff] %v3922_v28  ;;  %v3923_v31 = vmax.f32 %v3795_v29, 0.0  ;;  %v3230_v33 = vpop.f32.mrb[232].mxu0  ;;  %v1759_v35 = vpop.f32.mrb[233].mxu1 }
 0x2e7   :  { %3667 = vst [vmem:[%s7163_s3 + $0x718] sm:$0xff] %v3539_v30  ;;  %v3231_v34 = vadd.f32 %v3230_v33, %v1757_v32  ;;  %v3232_v36 = vpop.f32.mrb[233].mxu0  ;;  %v1761_v38 = vpop.f32.mrb[234].mxu1 }
 0x2e8   :  { %4666 = vst [vmem:[%s7163_s3 + $0x738] sm:$0xff] %v3923_v31  ;;  %v3233_v37 = vadd.f32 %v3232_v36, %v1759_v35  ;;  %v3234_v39 = vpop.f32.mrb[234].mxu0  ;;  %v1763_v41 = vpop.f32.mrb[235].mxu1 }
 0x2e9   :  { %v3412_v2 = vadd.f32 %v7014_v42, %v3231_v34  ;;  %v3235_v40 = vadd.f32 %v3234_v39, %v1761_v38  ;;  %v3236_v43 = vpop.f32.mrb[235].mxu0 }
 0x2ea   :  { %v3796_v44 = vadd.f32 %v7014_v42, %v3233_v37  ;;  %v3237_v45 = vadd.f32 %v3236_v43, %v1763_v41 }
 0x2eb   :  { %v3540_v46 = vmax.f32 %v3412_v2, 0.0  ;;  %v3413_v47 = vadd.f32 %v7014_v42, %v3235_v40 }
 0x2ec   :  { %v3924_v48 = vmax.f32 %v3796_v44, 0.0  ;;  %v3797_v49 = vadd.f32 %v7014_v42, %v3237_v45 }
 0x2ed   :  { %3668 = vst [vmem:[%s7163_s3 + $0x740] sm:$0xff] %v3540_v46  ;;  %v3541_v50 = vmax.f32 %v3413_v47, 0.0  ;;  %v1767_v52 = vpop.f32.mrb[236].mxu1 }
 0x2ee   :  { %4667 = vst [vmem:[%s7163_s3 + $0x760] sm:$0xff] %v3924_v48  ;;  %v3925_v51 = vmax.f32 %v3797_v49, 0.0  ;;  %v3240_v53 = vpop.f32.mrb[236].mxu0  ;;  %v1769_v55 = vpop.f32.mrb[237].mxu1 }
 0x2ef   :  { %3669 = vst [vmem:[%s7163_s3 + $0x748] sm:$0xff] %v3541_v50  ;;  %v3241_v54 = vadd.f32 %v3240_v53, %v1767_v52  ;;  %v3242_v56 = vpop.f32.mrb[237].mxu0  ;;  %v1771_v57 = vpop.f32.mrb[238].mxu1 }
 0x2f0   :  { %4668 = vst [vmem:[%s7163_s3 + $0x768] sm:$0xff] %v3925_v51  ;;  %v3243_v61 = vadd.f32 %v3242_v56, %v1769_v55  ;;  %v3244_v58 = vpop.f32.mrb[238].mxu0  ;;  %v1773_v62 = vpop.f32.mrb[239].mxu1 }
 0x2f1   :  { %v3414_v59 = vadd.f32 %v7014_v42, %v3241_v54  ;;  %v3245_v60 = vadd.f32 %v3244_v58, %v1771_v57  ;;  %v3246_v63 = vpop.f32.mrb[239].mxu0 }
 0x2f2   :  { %v3798_v0 = vadd.f32 %v7014_v42, %v3243_v61  ;;  %v3247_v3 = vadd.f32 %v3246_v63, %v1773_v62 }
 0x2f3   :  { %v3542_v4 = vmax.f32 %v3414_v59, 0.0  ;;  %v3415_v5 = vadd.f32 %v7014_v42, %v3245_v60 }
 0x2f4   :  { %v3926_v6 = vmax.f32 %v3798_v0, 0.0  ;;  %v3799_v7 = vadd.f32 %v7014_v42, %v3247_v3 }
 0x2f5   :  { %3670 = vst [vmem:[%s7163_s3 + $0x750] sm:$0xff] %v3542_v4  ;;  %v3543_v1 = vmax.f32 %v3415_v5, 0.0  ;;  %v1777_v9 = vpop.f32.mrb[240].mxu1 }
 0x2f6   :  { %4669 = vst [vmem:[%s7163_s3 + $0x770] sm:$0xff] %v3926_v6  ;;  %v3927_v8 = vmax.f32 %v3799_v7, 0.0  ;;  %v3250_v10 = vpop.f32.mrb[240].mxu0  ;;  %v1779_v12 = vpop.f32.mrb[241].mxu1 }
 0x2f7   :  { %3671 = vst [vmem:[%s7163_s3 + $0x758] sm:$0xff] %v3543_v1  ;;  %v3251_v11 = vadd.f32 %v3250_v10, %v1777_v9  ;;  %v3252_v13 = vpop.f32.mrb[241].mxu0  ;;  %v1781_v15 = vpop.f32.mrb[242].mxu1 }
 0x2f8   :  { %4670 = vst [vmem:[%s7163_s3 + $0x778] sm:$0xff] %v3927_v8  ;;  %v3253_v14 = vadd.f32 %v3252_v13, %v1779_v12  ;;  %v3254_v16 = vpop.f32.mrb[242].mxu0  ;;  %v1783_v19 = vpop.f32.mrb[243].mxu1 }
 0x2f9   :  { %v3416_v17 = vadd.f32 %v7014_v42, %v3251_v11  ;;  %v3255_v18 = vadd.f32 %v3254_v16, %v1781_v15  ;;  %v3256_v20 = vpop.f32.mrb[243].mxu0 }
 0x2fa   :  { %v3800_v21 = vadd.f32 %v7014_v42, %v3253_v14  ;;  %v3257_v22 = vadd.f32 %v3256_v20, %v1783_v19 }
 0x2fb   :  { %v3544_v23 = vmax.f32 %v3416_v17, 0.0  ;;  %v3417_v24 = vadd.f32 %v7014_v42, %v3255_v18 }
 0x2fc   :  { %v3928_v25 = vmax.f32 %v3800_v21, 0.0  ;;  %v3801_v26 = vadd.f32 %v7014_v42, %v3257_v22 }
 0x2fd   :  { %3672 = vst [vmem:[%s7163_s3 + $0x780] sm:$0xff] %v3544_v23  ;;  %v3545_v27 = vmax.f32 %v3417_v24, 0.0  ;;  %v1787_v29 = vpop.f32.mrb[244].mxu1 }
 0x2fe   :  { %4671 = vst [vmem:[%s7163_s3 + $0x7a0] sm:$0xff] %v3928_v25  ;;  %v3929_v28 = vmax.f32 %v3801_v26, 0.0  ;;  %v3260_v30 = vpop.f32.mrb[244].mxu0  ;;  %v1789_v32 = vpop.f32.mrb[245].mxu1 }
 0x2ff   :  { %3673 = vst [vmem:[%s7163_s3 + $0x788] sm:$0xff] %v3545_v27  ;;  %v3261_v31 = vadd.f32 %v3260_v30, %v1787_v29  ;;  %v3262_v33 = vpop.f32.mrb[245].mxu0  ;;  %v1791_v35 = vpop.f32.mrb[246].mxu1 }
 0x300   :  { %4672 = vst [vmem:[%s7163_s3 + $0x7a8] sm:$0xff] %v3929_v28  ;;  %v3263_v34 = vadd.f32 %v3262_v33, %v1789_v32  ;;  %v3264_v36 = vpop.f32.mrb[246].mxu0  ;;  %v1793_v39 = vpop.f32.mrb[247].mxu1 }
 0x301   :  { %v3418_v37 = vadd.f32 %v7014_v42, %v3261_v31  ;;  %v3265_v38 = vadd.f32 %v3264_v36, %v1791_v35  ;;  %v3266_v2 = vpop.f32.mrb[247].mxu0 }
 0x302   :  { %v3802_v40 = vadd.f32 %v7014_v42, %v3263_v34  ;;  %v3267_v41 = vadd.f32 %v3266_v2, %v1793_v39 }
 0x303   :  { %v3546_v43 = vmax.f32 %v3418_v37, 0.0  ;;  %v3419_v44 = vadd.f32 %v7014_v42, %v3265_v38 }
 0x304   :  { %v3930_v45 = vmax.f32 %v3802_v40, 0.0  ;;  %v3803_v46 = vadd.f32 %v7014_v42, %v3267_v41 }
 0x305   :  { %3674 = vst [vmem:[%s7163_s3 + $0x790] sm:$0xff] %v3546_v43  ;;  %v3547_v47 = vmax.f32 %v3419_v44, 0.0  ;;  %v1797_v49 = vpop.f32.mrb[248].mxu1 }
 0x306   :  { %4673 = vst [vmem:[%s7163_s3 + $0x7b0] sm:$0xff] %v3930_v45  ;;  %v3931_v48 = vmax.f32 %v3803_v46, 0.0  ;;  %v3270_v50 = vpop.f32.mrb[248].mxu0  ;;  %v1799_v52 = vpop.f32.mrb[249].mxu1 }
 0x307   :  { %3675 = vst [vmem:[%s7163_s3 + $0x798] sm:$0xff] %v3547_v47  ;;  %v3271_v51 = vadd.f32 %v3270_v50, %v1797_v49  ;;  %v3272_v53 = vpop.f32.mrb[249].mxu0  ;;  %v1801_v55 = vpop.f32.mrb[250].mxu1 }
 0x308   :  { %4674 = vst [vmem:[%s7163_s3 + $0x7b8] sm:$0xff] %v3931_v48  ;;  %v3273_v54 = vadd.f32 %v3272_v53, %v1799_v52  ;;  %v3274_v56 = vpop.f32.mrb[250].mxu0  ;;  %v1803_v58 = vpop.f32.mrb[251].mxu1 }
 0x309   :  { %v3420_v61 = vadd.f32 %v7014_v42, %v3271_v51  ;;  %v3275_v57 = vadd.f32 %v3274_v56, %v1801_v55  ;;  %v3276_v59 = vpop.f32.mrb[251].mxu0 }
 0x30a   :  { %v3804_v60 = vadd.f32 %v7014_v42, %v3273_v54  ;;  %v3277_v62 = vadd.f32 %v3276_v59, %v1803_v58 }
 0x30b   :  { %v3548_v63 = vmax.f32 %v3420_v61, 0.0  ;;  %v3421_v0 = vadd.f32 %v7014_v42, %v3275_v57 }
 0x30c   :  { %v3932_v3 = vmax.f32 %v3804_v60, 0.0  ;;  %v3805_v4 = vadd.f32 %v7014_v42, %v3277_v62 }
 0x30d   :  { %3676 = vst [vmem:[%s7163_s3 + $0x7c0] sm:$0xff] %v3548_v63  ;;  %v3549_v5 = vmax.f32 %v3421_v0, 0.0  ;;  %v1807_v7 = vpop.f32.mrb[252].mxu1 }
 0x30e   :  { %4675 = vst [vmem:[%s7163_s3 + $0x7e0] sm:$0xff] %v3932_v3  ;;  %v3933_v6 = vmax.f32 %v3805_v4, 0.0  ;;  %v3280_v1 = vpop.f32.mrb[252].mxu0  ;;  %v1809_v9 = vpop.f32.mrb[253].mxu1 }
 0x30f   :  { %3677 = vst [vmem:[%s7163_s3 + $0x7c8] sm:$0xff] %v3549_v5  ;;  %v3281_v8 = vadd.f32 %v3280_v1, %v1807_v7  ;;  %v3282_v10 = vpop.f32.mrb[253].mxu0  ;;  %v1811_v12 = vpop.f32.mrb[254].mxu1 }
 0x310   :  { %4676 = vst [vmem:[%s7163_s3 + $0x7e8] sm:$0xff] %v3933_v6  ;;  %v3283_v11 = vadd.f32 %v3282_v10, %v1809_v9  ;;  %v3284_v13 = vpop.f32.mrb[254].mxu0  ;;  %v1813_v16 = vpop.f32.mrb[255].mxu1 }
 0x311   :  { %v3422_v14 = vadd.f32 %v7014_v42, %v3281_v8  ;;  %v3285_v15 = vadd.f32 %v3284_v13, %v1811_v12  ;;  %v3286_v17 = vpop.f32.mrb[255].mxu0 }
 0x312   :  { %v3806_v18 = vadd.f32 %v7014_v42, %v3283_v11  ;;  %v3287_v19 = vadd.f32 %v3286_v17, %v1813_v16 }
 0x313   :  { %v3550_v20 = vmax.f32 %v3422_v14, 0.0  ;;  %v3423_v21 = vadd.f32 %v7014_v42, %v3285_v15 }
 0x314   :  { %v3934_v22 = vmax.f32 %v3806_v18, 0.0  ;;  %v3807_v23 = vadd.f32 %v7014_v42, %v3287_v19 }
 0x315   :  { %3678 = vst [vmem:[%s7163_s3 + $0x7d0] sm:$0xff] %v3550_v20  ;;  %v3551_v24 = vmax.f32 %v3423_v21, 0.0 }
 0x316   :  { %4677 = vst [vmem:[%s7163_s3 + $0x7f0] sm:$0xff] %v3934_v22  ;;  %v3935_v25 = vmax.f32 %v3807_v23, 0.0 }
 0x317   :  { %3679 = vst [vmem:[%s7163_s3 + $0x7d8] sm:$0xff] %v3551_v24 }
 0x318   :  { %4678 = vst [vmem:[%s7163_s3 + $0x7f8] sm:$0xff] %v3935_v25 }

</bundles_post_ra>
